<compile_context>
chip_gen: v5e
topology: v5e:2x2
jax: 0.10.0
libtpu: 0.0.40
codegen_flags: <defaults>
</compile_context>

<pallas_src>
import jax
import jax.numpy as jnp
from jax import lax
from jax.experimental import pallas as pl
from jax.experimental.pallas import tpu as pltpu


def _round_up(x, m):
    return ((x + m - 1) // m) * m


def _pick_batch_tile(B):
    for cand in (128, 64, 32, 16, 8, 4):
        if B % cand == 0:
            return cand
    return B


# ----------------------------------------------------------------------------
# Kernel
# ----------------------------------------------------------------------------
def gru_classifier_kernel(gx_ref, valid_ref, bhhn_ref, whh_ref,
                          wlin_f_ref, wlin_b_ref, blin_ref, out_ref):
    # gx_ref    : (T, R, 3*HP)  f32  gathered+folded input gates (R = 2*bt rows:
    #                                 rows [0,bt) forward @ t=s, rows [bt,R) backward @ t=T-1-s)
    # valid_ref : (T, R, 1)     f32  packed-sequence validity mask per step/row
    # bhhn_ref  : (R, HP)       f32  per-row (direction) n-gate hidden bias
    # whh_ref   : (HP, 6*HP)    f32  [W_hh_f.T | W_hh_b.T], gate slots 128-lane aligned
    # wlin_*    : (HP, OP)      f32  split output weights, blin (1, OP)
    # out_ref   : (bt, OP)      f32
    T, R, GW = gx_ref.shape
    HP = GW // 3
    bt = R // 2

    whh = whh_ref[...]                                            # (HP, 2*GW)
    bhh_n = bhhn_ref[...]                                         # (R, HP)
    row = lax.broadcasted_iota(jnp.int32, (R, 1), 0)
    is_fwd = row < bt                                             # (R, 1) bool

    def step(s, h):
        gx = gx_ref[s]                                            # (R, 3*HP)
        v = valid_ref[s]                                          # (R, 1)
        # One wide matmul computes gh for both directions; aligned select picks
        # the right 3*HP block per row (no lane concat on the serial chain).
        gh2 = jnp.dot(h, whh, preferred_element_type=jnp.float32)  # (R, 6*HP)
        gh = jnp.where(is_fwd, gh2[:, :GW], gh2[:, GW:])
        # PyTorch GRU gate order (r, z, n); r and z activated together.
        rz = jax.nn.sigmoid(gx[:, :2 * HP] + gh[:, :2 * HP])
        r = rz[:, :HP]
        z = rz[:, HP:]
        n = jnp.tanh(gx[:, 2 * HP:] + r * (gh[:, 2 * HP:] + bhh_n))
        h_new = (1.0 - z) * n + z * h
        # packed-sequence mask (fwd rows: t=s valid; bwd rows: t=T-1-s valid)
        return jnp.where(v > 0.0, h_new, h)

    h = lax.fori_loop(0, T, step, jnp.zeros((R, HP), jnp.float32), unroll=True)

    # hidden_cat = [h_bwd, h_fwd]; split linear avoids any lane concat.
    out_ref[...] = (jnp.dot(h[bt:, :], wlin_b_ref[...], preferred_element_type=jnp.float32)
                    + jnp.dot(h[:bt, :], wlin_f_ref[...], preferred_element_type=jnp.float32)
                    + blin_ref[...])


# ----------------------------------------------------------------------------
# Parameter folding / padding (once per parameter set)
# ----------------------------------------------------------------------------
def prepare_tables(params):
    emb = params["embedding"].astype(jnp.float32)
    V, H = emb.shape
    O = params["w_lin"].shape[0]
    HP = _round_up(H, 128)
    OP = _round_up(O, 128)

    def pad_last(a, n):
        return jnp.pad(a, [(0, 0)] * (a.ndim - 1) + [(0, n - a.shape[-1])])

    def gate_pad(a3h):  # (..., 3H) -> (..., 3*HP): each gate in its own 128-lane slot
        r_, z_, n_ = a3h[..., :H], a3h[..., H:2 * H], a3h[..., 2 * H:]
        return jnp.concatenate([pad_last(r_, HP), pad_last(z_, HP), pad_last(n_, HP)],
                               axis=-1)

    def eproj(w_ih, b_ih, b_hh):
        # Fold input bias + the r/z part of the hidden bias (the n-gate hidden
        # bias must stay inside the r*(...) term and is added in-kernel).
        bias = b_ih + jnp.concatenate([b_hh[:2 * H], jnp.zeros((H,), jnp.float32)])
        return gate_pad(emb @ w_ih.T + bias)                      # (V, 3*HP)

    def whh_pad(w_hh):
        wt = gate_pad(w_hh.T)                                     # (H, 3*HP)
        return jnp.pad(wt, ((0, HP - H), (0, 0)))                 # (HP, 3*HP)

    wlin = params["w_lin"].astype(jnp.float32)                    # (O, 2H)
    return dict(
        H=H, O=O, HP=HP, OP=OP, V=V,
        eproj_f=eproj(params["w_ih_f"], params["b_ih_f"], params["b_hh_f"]),
        eproj_b=eproj(params["w_ih_b"], params["b_ih_b"], params["b_hh_b"]),
        whh_wide=jnp.concatenate([whh_pad(params["w_hh_f"]),
                                  whh_pad(params["w_hh_b"])], axis=1),   # (HP, 6*HP)
        bhh_n_f=pad_last(params["b_hh_f"][2 * H:], HP),
        bhh_n_b=pad_last(params["b_hh_b"][2 * H:], HP),
        wlin_b=jnp.pad(wlin[:, :H].T, ((0, HP - H), (0, OP - O))),       # applies to h_bwd
        wlin_f=jnp.pad(wlin[:, H:].T, ((0, HP - H), (0, OP - O))),       # applies to h_fwd
        blin=pad_last(params["b_lin"].reshape(1, -1), OP),
    )


# ----------------------------------------------------------------------------
# Forward wrapper
# ----------------------------------------------------------------------------
def classifier_forward(tokens, namelens, tables):
    """tokens: (B, T) int32, namelens: (B,) int32 (descending) -> logits (B, O)."""
    B, T = tokens.shape
    H, O, HP, OP = tables["H"], tables["O"], tables["HP"], tables["OP"]
    GW = 3 * HP
    bt = _pick_batch_tile(B)
    nt = B // bt
    R = 2 * bt

    # --- gather folded input projections per step / direction (vocab never
    #     enters the kernel). TODO(synk): PyTorch raises on out-of-range token
    #     ids; jnp.take clips instead.
    tok_tm = tokens.T.astype(jnp.int32)                               # (T, B)
    gx_f = jnp.take(tables["eproj_f"], tok_tm, axis=0)                # (T, B, 3*HP)
    gx_b = jnp.take(tables["eproj_b"], tok_tm[::-1], axis=0)          # step s -> t = T-1-s

    def fuse(f, b):
        # (T, B, ...) per-direction -> (nt, T, 2*bt, ...): per batch tile the
        # rows are [fwd rows ; bwd rows] so one block = one GRU state matrix.
        trail = f.shape[2:]
        f = f.reshape((T, nt, bt) + trail)
        b = b.reshape((T, nt, bt) + trail)
        x = jnp.stack([f, b], axis=2)                                 # (T, nt, 2, bt, ...)
        x = jnp.moveaxis(x, 1, 0)                                     # (nt, T, 2, bt, ...)
        return x.reshape((nt, T, R) + trail)

    gx = fuse(gx_f, gx_b)                                             # (nt, T, R, 3*HP)

    steps = jnp.arange(T, dtype=jnp.int32)
    lens = namelens.astype(jnp.int32)
    vf = (steps[:, None] < lens[None, :]).astype(jnp.float32)         # (T, B)
    vb = ((T - 1 - steps)[:, None] < lens[None, :]).astype(jnp.float32)
    valid = fuse(vf[..., None], vb[..., None])                        # (nt, T, R, 1)

    bhh_n_tile = jnp.concatenate([jnp.tile(tables["bhh_n_f"][None], (bt, 1)),
                                  jnp.tile(tables["bhh_n_b"][None], (bt, 1))], axis=0)
    bhh_n = jnp.tile(bhh_n_tile[None], (nt, 1, 1))                    # (nt, R, HP)

    args = (gx, valid, bhh_n, tables["whh_wide"],
            tables["wlin_f"], tables["wlin_b"], tables["blin"])

    flops = nt * (T * 2 * R * HP * (2 * GW) + 2 * (2 * bt * HP * OP))
    transcendentals = nt * T * R * GW
    bytes_accessed = 4 * (sum(int(a.size) for a in args) + nt * bt * OP)

    in_specs = [
        pl.BlockSpec((None, T, R, GW), lambda i: (i, 0, 0, 0)),       # gx (batch-tiled)
        pl.BlockSpec((None, T, R, 1), lambda i: (i, 0, 0, 0)),        # valid
        pl.BlockSpec((None, R, HP), lambda i: (i, 0, 0)),             # bhh_n
        pl.BlockSpec((HP, 2 * GW), lambda i: (0, 0)),                 # whh (shared)
        pl.BlockSpec((HP, OP), lambda i: (0, 0)),                     # wlin_f
        pl.BlockSpec((HP, OP), lambda i: (0, 0)),                     # wlin_b
        pl.BlockSpec((1, OP), lambda i: (0, 0)),                      # blin
    ]
    out = pl.pallas_call(
        gru_classifier_kernel,
        out_shape=jax.ShapeDtypeStruct((nt, bt, OP), jnp.float32),
        grid=(nt,),
        in_specs=in_specs,
        out_specs=pl.BlockSpec((None, bt, OP), lambda i: (i, 0, 0)),
        compiler_params=pltpu.CompilerParams(dimension_semantics=("parallel",)),
        cost_estimate=pl.CostEstimate(flops=int(flops),
                                      transcendentals=int(transcendentals),
                                      bytes_accessed=int(bytes_accessed)),
    )(*args)

    return out.reshape(B, OP)[:, :O]


# ----------------------------------------------------------------------------
# Params / reference
# ----------------------------------------------------------------------------
def init_params(key, vocab, H, O):
    ks = jax.random.split(key, 11)
    bound = 1.0 / float(H) ** 0.5

    def u(k, shape):
        return jax.random.uniform(k, shape, jnp.float32, -bound, bound)

    return dict(
        embedding=jax.random.normal(ks[0], (vocab, H), jnp.float32),
        w_ih_f=u(ks[1], (3 * H, H)), w_hh_f=u(ks[2], (3 * H, H)),
        b_ih_f=u(ks[3], (3 * H,)),   b_hh_f=u(ks[4], (3 * H,)),
        w_ih_b=u(ks[5], (3 * H, H)), w_hh_b=u(ks[6], (3 * H, H)),
        b_ih_b=u(ks[7], (3 * H,)),   b_hh_b=u(ks[8], (3 * H,)),
        w_lin=u(ks[9], (O, 2 * H)),  b_lin=u(ks[10], (O,)),
    )


def _reference_forward(tokens, namelens, params):
    """Pure-JAX reference with identical packed-GRU semantics (PyTorch layout)."""
    B, T = tokens.shape
    H = params["embedding"].shape[1]
    emb = params["embedding"][tokens.T]                               # (T, B, H)
    lens = namelens.astype(jnp.int32).reshape(B, 1)

    def cell(x_t, h, wih, whh, bih, bhh):
        gx = x_t @ wih.T + bih
        gh = h @ whh.T + bhh
        r = jax.nn.sigmoid(gx[:, :H] + gh[:, :H])
        z = jax.nn.sigmoid(gx[:, H:2 * H] + gh[:, H:2 * H])
        n = jnp.tanh(gx[:, 2 * H:] + r * gh[:, 2 * H:])
        return (1.0 - z) * n + z * h

    h_f = jnp.zeros((B, H), jnp.float32)
    for t in range(T):
        h_new = cell(emb[t], h_f, params["w_ih_f"], params["w_hh_f"],
                     params["b_ih_f"], params["b_hh_f"])
        h_f = jnp.where(t < lens, h_new, h_f)
    h_b = jnp.zeros((B, H), jnp.float32)
    for t in range(T - 1, -1, -1):
        h_new = cell(emb[t], h_b, params["w_ih_b"], params["w_hh_b"],
                     params["b_ih_b"], params["b_hh_b"])
        h_b = jnp.where(t < lens, h_new, h_b)
    hidden_cat = jnp.concatenate([h_b, h_f], axis=1)
    return hidden_cat @ params["w_lin"].T + params["b_lin"]


if __name__ == "__main__":
    vocab, hidden, out_size = 32, 32, 16   # inputsize, hiddensize, outputsize
    batch, seq = 4, 8

    key = jax.random.PRNGKey(0)
    k_par, k_tok = jax.random.split(key)
    params = init_params(k_par, vocab, hidden, out_size)
    tables = prepare_tables(params)        # once per parameter set

    tokens = jax.random.randint(k_tok, (batch, seq), 0, vocab, dtype=jnp.int32)
    # pack_padded_sequence default requires descending lengths.
    namelens = jnp.array([8, 6, 5, 3], dtype=jnp.int32)

    logits = classifier_forward(tokens, namelens, tables)
    jax.block_until_ready(logits)

    ref = _reference_forward(tokens, namelens, params)
    assert logits.shape == (batch, out_size)
    assert jnp.allclose(logits, ref, atol=1e-4, rtol=1e-4)

    print("KERNEL_OK")
</pallas_src>

<mosaic_0001>
module attributes {stable_mosaic.version = 11 : i64} {
  func.func @gru_classifier_kernel(%arg0: i32, %arg1: memref<1x8x8x384xf32, #tpu.memory_space<vmem>>, %arg2: memref<1x8x8x1xf32, #tpu.memory_space<vmem>>, %arg3: memref<1x8x128xf32, #tpu.memory_space<vmem>>, %arg4: memref<128x768xf32, #tpu.memory_space<vmem>>, %arg5: memref<128x128xf32, #tpu.memory_space<vmem>>, %arg6: memref<128x128xf32, #tpu.memory_space<vmem>>, %arg7: memref<1x128xf32, #tpu.memory_space<vmem>>, %arg8: memref<1x4x128xf32, #tpu.memory_space<vmem>>) attributes {dimension_semantics = [#tpu.dimension_semantics<parallel>], iteration_bounds = array<i64: 1>, scalar_prefetch = 0 : i64, scratch_operands = 0 : i64, tpu.core_type = #tpu.core_type<tc>, window_params = [{transform_indices = @transform_0, window_bounds = array<i64: 1, 8, 8, 384>}, {transform_indices = @transform_1, window_bounds = array<i64: 1, 8, 8, 1>}, {transform_indices = @transform_2, window_bounds = array<i64: 1, 8, 128>}, {pipeline_mode = #tpu.pipeline_mode<synchronous>, transform_indices = @transform_3, window_bounds = array<i64: 128, 768>}, {pipeline_mode = #tpu.pipeline_mode<synchronous>, transform_indices = @transform_4, window_bounds = array<i64: 128, 128>}, {pipeline_mode = #tpu.pipeline_mode<synchronous>, transform_indices = @transform_5, window_bounds = array<i64: 128, 128>}, {pipeline_mode = #tpu.pipeline_mode<synchronous>, transform_indices = @transform_6, window_bounds = array<i64: 1, 128>}, {transform_indices = @transform_7, window_bounds = array<i64: 1, 4, 128>}]} {
    %c0 = arith.constant 0 : index
    %c0_0 = arith.constant 0 : index
    %0 = vector.load %arg4[%c0, %c0_0] : memref<128x768xf32, #tpu.memory_space<vmem>>, vector<128x768xf32>
    %c0_1 = arith.constant 0 : index
    %c0_2 = arith.constant 0 : index
    %c0_3 = arith.constant 0 : index
    %1 = vector.load %arg3[%c0_1, %c0_2, %c0_3] : memref<1x8x128xf32, #tpu.memory_space<vmem>>, vector<1x8x128xf32>
    %2 = vector.shape_cast %1 : vector<1x8x128xf32> to vector<8x128xf32>
    %3 = tpu.iota {dimensions = array<i32: 0>} : vector<8x1xi32>
    %c4_i32 = arith.constant 4 : i32
    %4 = vector.broadcast %c4_i32 : i32 to vector<8x1xi32>
    %5 = arith.cmpi slt, %3, %4 : vector<8x1xi32>
    %cst = arith.constant 0.000000e+00 : f32
    %6 = vector.broadcast %cst : f32 to vector<8x128xf32>
    %c0_i32 = arith.constant 0 : i32
    %c0_4 = arith.constant 0 : index
    %7 = arith.index_cast %c0_i32 : i32 to index
    %c0_5 = arith.constant 0 : index
    %c0_6 = arith.constant 0 : index
    %8 = vector.load %arg1[%c0_4, %7, %c0_5, %c0_6] : memref<1x8x8x384xf32, #tpu.memory_space<vmem>>, vector<1x1x8x384xf32>
    %9 = vector.shape_cast %8 : vector<1x1x8x384xf32> to vector<8x384xf32>
    %c0_7 = arith.constant 0 : index
    %10 = arith.index_cast %c0_i32 : i32 to index
    %c0_8 = arith.constant 0 : index
    %c0_9 = arith.constant 0 : index
    %11 = vector.load %arg2[%c0_7, %10, %c0_8, %c0_9] : memref<1x8x8x1xf32, #tpu.memory_space<vmem>>, vector<1x1x8x1xf32>
    %12 = vector.shape_cast %11 : vector<1x1x8x1xf32> to vector<8x1xf32>
    %cst_10 = arith.constant dense<0.000000e+00> : vector<8x768xf32>
    %13 = tpu.matmul %6, %0, %cst_10 {dimension_numbers = #tpu.dot_dimension_numbers<[1], [0], [0], [1], [0, 0, 1, 1], [], []>} : vector<8x128xf32>, vector<128x768xf32>, vector<8x768xf32> -> vector<8x768xf32>
    %14 = vector.extract_strided_slice %13 {offsets = [0, 0], sizes = [8, 384], strides = [1, 1]} : vector<8x768xf32> to vector<8x384xf32>
    %15 = vector.extract_strided_slice %13 {offsets = [0, 384], sizes = [8, 384], strides = [1, 1]} : vector<8x768xf32> to vector<8x384xf32>
    %16 = vector.shape_cast %5 : vector<8x1xi1> to vector<8x1xi1>
    %17 = vector.broadcast %16 : vector<8x1xi1> to vector<8x384xi1>
    %18 = arith.select %17, %14, %15 : vector<8x384xi1>, vector<8x384xf32>
    %19 = vector.extract_strided_slice %9 {offsets = [0, 0], sizes = [8, 256], strides = [1, 1]} : vector<8x384xf32> to vector<8x256xf32>
    %20 = vector.extract_strided_slice %18 {offsets = [0, 0], sizes = [8, 256], strides = [1, 1]} : vector<8x384xf32> to vector<8x256xf32>
    %21 = arith.addf %19, %20 : vector<8x256xf32>
    %22 = arith.negf %21 : vector<8x256xf32>
    %23 = math.exp %22 : vector<8x256xf32>
    %cst_11 = arith.constant 1.000000e+00 : f32
    %24 = vector.broadcast %cst_11 : f32 to vector<8x256xf32>
    %25 = arith.addf %24, %23 : vector<8x256xf32>
    %26 = arith.divf %24, %25 : vector<8x256xf32>
    %27 = vector.extract_strided_slice %26 {offsets = [0, 0], sizes = [8, 128], strides = [1, 1]} : vector<8x256xf32> to vector<8x128xf32>
    %28 = vector.extract_strided_slice %26 {offsets = [0, 128], sizes = [8, 128], strides = [1, 1]} : vector<8x256xf32> to vector<8x128xf32>
    %29 = vector.extract_strided_slice %9 {offsets = [0, 256], sizes = [8, 128], strides = [1, 1]} : vector<8x384xf32> to vector<8x128xf32>
    %30 = vector.extract_strided_slice %18 {offsets = [0, 256], sizes = [8, 128], strides = [1, 1]} : vector<8x384xf32> to vector<8x128xf32>
    %31 = arith.addf %30, %2 : vector<8x128xf32>
    %32 = arith.mulf %27, %31 : vector<8x128xf32>
    %33 = arith.addf %29, %32 : vector<8x128xf32>
    %34 = math.tanh %33 : vector<8x128xf32>
    %cst_12 = arith.constant 1.000000e+00 : f32
    %35 = vector.broadcast %cst_12 : f32 to vector<8x128xf32>
    %36 = arith.subf %35, %28 : vector<8x128xf32>
    %37 = arith.mulf %36, %34 : vector<8x128xf32>
    %38 = arith.mulf %28, %6 : vector<8x128xf32>
    %39 = arith.addf %37, %38 : vector<8x128xf32>
    %cst_13 = arith.constant 0.000000e+00 : f32
    %40 = vector.broadcast %cst_13 : f32 to vector<8x1xf32>
    %41 = arith.cmpf ogt, %12, %40 : vector<8x1xf32>
    %42 = vector.shape_cast %41 : vector<8x1xi1> to vector<8x1xi1>
    %43 = vector.broadcast %42 : vector<8x1xi1> to vector<8x128xi1>
    %44 = arith.select %43, %39, %6 : vector<8x128xi1>, vector<8x128xf32>
    %c1_i32 = arith.constant 1 : i32
    %c0_14 = arith.constant 0 : index
    %45 = arith.index_cast %c1_i32 : i32 to index
    %c0_15 = arith.constant 0 : index
    %c0_16 = arith.constant 0 : index
    %46 = vector.load %arg1[%c0_14, %45, %c0_15, %c0_16] : memref<1x8x8x384xf32, #tpu.memory_space<vmem>>, vector<1x1x8x384xf32>
    %47 = vector.shape_cast %46 : vector<1x1x8x384xf32> to vector<8x384xf32>
    %c0_17 = arith.constant 0 : index
    %48 = arith.index_cast %c1_i32 : i32 to index
    %c0_18 = arith.constant 0 : index
    %c0_19 = arith.constant 0 : index
    %49 = vector.load %arg2[%c0_17, %48, %c0_18, %c0_19] : memref<1x8x8x1xf32, #tpu.memory_space<vmem>>, vector<1x1x8x1xf32>
    %50 = vector.shape_cast %49 : vector<1x1x8x1xf32> to vector<8x1xf32>
    %cst_20 = arith.constant dense<0.000000e+00> : vector<8x768xf32>
    %51 = tpu.matmul %44, %0, %cst_20 {dimension_numbers = #tpu.dot_dimension_numbers<[1], [0], [0], [1], [0, 0, 1, 1], [], []>} : vector<8x128xf32>, vector<128x768xf32>, vector<8x768xf32> -> vector<8x768xf32>
    %52 = vector.extract_strided_slice %51 {offsets = [0, 0], sizes = [8, 384], strides = [1, 1]} : vector<8x768xf32> to vector<8x384xf32>
    %53 = vector.extract_strided_slice %51 {offsets = [0, 384], sizes = [8, 384], strides = [1, 1]} : vector<8x768xf32> to vector<8x384xf32>
    %54 = vector.shape_cast %5 : vector<8x1xi1> to vector<8x1xi1>
    %55 = vector.broadcast %54 : vector<8x1xi1> to vector<8x384xi1>
    %56 = arith.select %55, %52, %53 : vector<8x384xi1>, vector<8x384xf32>
    %57 = vector.extract_strided_slice %47 {offsets = [0, 0], sizes = [8, 256], strides = [1, 1]} : vector<8x384xf32> to vector<8x256xf32>
    %58 = vector.extract_strided_slice %56 {offsets = [0, 0], sizes = [8, 256], strides = [1, 1]} : vector<8x384xf32> to vector<8x256xf32>
    %59 = arith.addf %57, %58 : vector<8x256xf32>
    %60 = arith.negf %59 : vector<8x256xf32>
    %61 = math.exp %60 : vector<8x256xf32>
    %cst_21 = arith.constant 1.000000e+00 : f32
    %62 = vector.broadcast %cst_21 : f32 to vector<8x256xf32>
    %63 = arith.addf %62, %61 : vector<8x256xf32>
    %64 = arith.divf %62, %63 : vector<8x256xf32>
    %65 = vector.extract_strided_slice %64 {offsets = [0, 0], sizes = [8, 128], strides = [1, 1]} : vector<8x256xf32> to vector<8x128xf32>
    %66 = vector.extract_strided_slice %64 {offsets = [0, 128], sizes = [8, 128], strides = [1, 1]} : vector<8x256xf32> to vector<8x128xf32>
    %67 = vector.extract_strided_slice %47 {offsets = [0, 256], sizes = [8, 128], strides = [1, 1]} : vector<8x384xf32> to vector<8x128xf32>
    %68 = vector.extract_strided_slice %56 {offsets = [0, 256], sizes = [8, 128], strides = [1, 1]} : vector<8x384xf32> to vector<8x128xf32>
    %69 = arith.addf %68, %2 : vector<8x128xf32>
    %70 = arith.mulf %65, %69 : vector<8x128xf32>
    %71 = arith.addf %67, %70 : vector<8x128xf32>
    %72 = math.tanh %71 : vector<8x128xf32>
    %cst_22 = arith.constant 1.000000e+00 : f32
    %73 = vector.broadcast %cst_22 : f32 to vector<8x128xf32>
    %74 = arith.subf %73, %66 : vector<8x128xf32>
    %75 = arith.mulf %74, %72 : vector<8x128xf32>
    %76 = arith.mulf %66, %44 : vector<8x128xf32>
    %77 = arith.addf %75, %76 : vector<8x128xf32>
    %cst_23 = arith.constant 0.000000e+00 : f32
    %78 = vector.broadcast %cst_23 : f32 to vector<8x1xf32>
    %79 = arith.cmpf ogt, %50, %78 : vector<8x1xf32>
    %80 = vector.shape_cast %79 : vector<8x1xi1> to vector<8x1xi1>
    %81 = vector.broadcast %80 : vector<8x1xi1> to vector<8x128xi1>
    %82 = arith.select %81, %77, %44 : vector<8x128xi1>, vector<8x128xf32>
    %c2_i32 = arith.constant 2 : i32
    %c0_24 = arith.constant 0 : index
    %83 = arith.index_cast %c2_i32 : i32 to index
    %c0_25 = arith.constant 0 : index
    %c0_26 = arith.constant 0 : index
    %84 = vector.load %arg1[%c0_24, %83, %c0_25, %c0_26] : memref<1x8x8x384xf32, #tpu.memory_space<vmem>>, vector<1x1x8x384xf32>
    %85 = vector.shape_cast %84 : vector<1x1x8x384xf32> to vector<8x384xf32>
    %c0_27 = arith.constant 0 : index
    %86 = arith.index_cast %c2_i32 : i32 to index
    %c0_28 = arith.constant 0 : index
    %c0_29 = arith.constant 0 : index
    %87 = vector.load %arg2[%c0_27, %86, %c0_28, %c0_29] : memref<1x8x8x1xf32, #tpu.memory_space<vmem>>, vector<1x1x8x1xf32>
    %88 = vector.shape_cast %87 : vector<1x1x8x1xf32> to vector<8x1xf32>
    %cst_30 = arith.constant dense<0.000000e+00> : vector<8x768xf32>
    %89 = tpu.matmul %82, %0, %cst_30 {dimension_numbers = #tpu.dot_dimension_numbers<[1], [0], [0], [1], [0, 0, 1, 1], [], []>} : vector<8x128xf32>, vector<128x768xf32>, vector<8x768xf32> -> vector<8x768xf32>
    %90 = vector.extract_strided_slice %89 {offsets = [0, 0], sizes = [8, 384], strides = [1, 1]} : vector<8x768xf32> to vector<8x384xf32>
    %91 = vector.extract_strided_slice %89 {offsets = [0, 384], sizes = [8, 384], strides = [1, 1]} : vector<8x768xf32> to vector<8x384xf32>
    %92 = vector.shape_cast %5 : vector<8x1xi1> to vector<8x1xi1>
    %93 = vector.broadcast %92 : vector<8x1xi1> to vector<8x384xi1>
    %94 = arith.select %93, %90, %91 : vector<8x384xi1>, vector<8x384xf32>
    %95 = vector.extract_strided_slice %85 {offsets = [0, 0], sizes = [8, 256], strides = [1, 1]} : vector<8x384xf32> to vector<8x256xf32>
    %96 = vector.extract_strided_slice %94 {offsets = [0, 0], sizes = [8, 256], strides = [1, 1]} : vector<8x384xf32> to vector<8x256xf32>
    %97 = arith.addf %95, %96 : vector<8x256xf32>
    %98 = arith.negf %97 : vector<8x256xf32>
    %99 = math.exp %98 : vector<8x256xf32>
    %cst_31 = arith.constant 1.000000e+00 : f32
    %100 = vector.broadcast %cst_31 : f32 to vector<8x256xf32>
    %101 = arith.addf %100, %99 : vector<8x256xf32>
    %102 = arith.divf %100, %101 : vector<8x256xf32>
    %103 = vector.extract_strided_slice %102 {offsets = [0, 0], sizes = [8, 128], strides = [1, 1]} : vector<8x256xf32> to vector<8x128xf32>
    %104 = vector.extract_strided_slice %102 {offsets = [0, 128], sizes = [8, 128], strides = [1, 1]} : vector<8x256xf32> to vector<8x128xf32>
    %105 = vector.extract_strided_slice %85 {offsets = [0, 256], sizes = [8, 128], strides = [1, 1]} : vector<8x384xf32> to vector<8x128xf32>
    %106 = vector.extract_strided_slice %94 {offsets = [0, 256], sizes = [8, 128], strides = [1, 1]} : vector<8x384xf32> to vector<8x128xf32>
    %107 = arith.addf %106, %2 : vector<8x128xf32>
    %108 = arith.mulf %103, %107 : vector<8x128xf32>
    %109 = arith.addf %105, %108 : vector<8x128xf32>
    %110 = math.tanh %109 : vector<8x128xf32>
    %cst_32 = arith.constant 1.000000e+00 : f32
    %111 = vector.broadcast %cst_32 : f32 to vector<8x128xf32>
    %112 = arith.subf %111, %104 : vector<8x128xf32>
    %113 = arith.mulf %112, %110 : vector<8x128xf32>
    %114 = arith.mulf %104, %82 : vector<8x128xf32>
    %115 = arith.addf %113, %114 : vector<8x128xf32>
    %cst_33 = arith.constant 0.000000e+00 : f32
    %116 = vector.broadcast %cst_33 : f32 to vector<8x1xf32>
    %117 = arith.cmpf ogt, %88, %116 : vector<8x1xf32>
    %118 = vector.shape_cast %117 : vector<8x1xi1> to vector<8x1xi1>
    %119 = vector.broadcast %118 : vector<8x1xi1> to vector<8x128xi1>
    %120 = arith.select %119, %115, %82 : vector<8x128xi1>, vector<8x128xf32>
    %c3_i32 = arith.constant 3 : i32
    %c0_34 = arith.constant 0 : index
    %121 = arith.index_cast %c3_i32 : i32 to index
    %c0_35 = arith.constant 0 : index
    %c0_36 = arith.constant 0 : index
    %122 = vector.load %arg1[%c0_34, %121, %c0_35, %c0_36] : memref<1x8x8x384xf32, #tpu.memory_space<vmem>>, vector<1x1x8x384xf32>
    %123 = vector.shape_cast %122 : vector<1x1x8x384xf32> to vector<8x384xf32>
    %c0_37 = arith.constant 0 : index
    %124 = arith.index_cast %c3_i32 : i32 to index
    %c0_38 = arith.constant 0 : index
    %c0_39 = arith.constant 0 : index
    %125 = vector.load %arg2[%c0_37, %124, %c0_38, %c0_39] : memref<1x8x8x1xf32, #tpu.memory_space<vmem>>, vector<1x1x8x1xf32>
    %126 = vector.shape_cast %125 : vector<1x1x8x1xf32> to vector<8x1xf32>
    %cst_40 = arith.constant dense<0.000000e+00> : vector<8x768xf32>
    %127 = tpu.matmul %120, %0, %cst_40 {dimension_numbers = #tpu.dot_dimension_numbers<[1], [0], [0], [1], [0, 0, 1, 1], [], []>} : vector<8x128xf32>, vector<128x768xf32>, vector<8x768xf32> -> vector<8x768xf32>
    %128 = vector.extract_strided_slice %127 {offsets = [0, 0], sizes = [8, 384], strides = [1, 1]} : vector<8x768xf32> to vector<8x384xf32>
    %129 = vector.extract_strided_slice %127 {offsets = [0, 384], sizes = [8, 384], strides = [1, 1]} : vector<8x768xf32> to vector<8x384xf32>
    %130 = vector.shape_cast %5 : vector<8x1xi1> to vector<8x1xi1>
    %131 = vector.broadcast %130 : vector<8x1xi1> to vector<8x384xi1>
    %132 = arith.select %131, %128, %129 : vector<8x384xi1>, vector<8x384xf32>
    %133 = vector.extract_strided_slice %123 {offsets = [0, 0], sizes = [8, 256], strides = [1, 1]} : vector<8x384xf32> to vector<8x256xf32>
    %134 = vector.extract_strided_slice %132 {offsets = [0, 0], sizes = [8, 256], strides = [1, 1]} : vector<8x384xf32> to vector<8x256xf32>
    %135 = arith.addf %133, %134 : vector<8x256xf32>
    %136 = arith.negf %135 : vector<8x256xf32>
    %137 = math.exp %136 : vector<8x256xf32>
    %cst_41 = arith.constant 1.000000e+00 : f32
    %138 = vector.broadcast %cst_41 : f32 to vector<8x256xf32>
    %139 = arith.addf %138, %137 : vector<8x256xf32>
    %140 = arith.divf %138, %139 : vector<8x256xf32>
    %141 = vector.extract_strided_slice %140 {offsets = [0, 0], sizes = [8, 128], strides = [1, 1]} : vector<8x256xf32> to vector<8x128xf32>
    %142 = vector.extract_strided_slice %140 {offsets = [0, 128], sizes = [8, 128], strides = [1, 1]} : vector<8x256xf32> to vector<8x128xf32>
    %143 = vector.extract_strided_slice %123 {offsets = [0, 256], sizes = [8, 128], strides = [1, 1]} : vector<8x384xf32> to vector<8x128xf32>
    %144 = vector.extract_strided_slice %132 {offsets = [0, 256], sizes = [8, 128], strides = [1, 1]} : vector<8x384xf32> to vector<8x128xf32>
    %145 = arith.addf %144, %2 : vector<8x128xf32>
    %146 = arith.mulf %141, %145 : vector<8x128xf32>
    %147 = arith.addf %143, %146 : vector<8x128xf32>
    %148 = math.tanh %147 : vector<8x128xf32>
    %cst_42 = arith.constant 1.000000e+00 : f32
    %149 = vector.broadcast %cst_42 : f32 to vector<8x128xf32>
    %150 = arith.subf %149, %142 : vector<8x128xf32>
    %151 = arith.mulf %150, %148 : vector<8x128xf32>
    %152 = arith.mulf %142, %120 : vector<8x128xf32>
    %153 = arith.addf %151, %152 : vector<8x128xf32>
    %cst_43 = arith.constant 0.000000e+00 : f32
    %154 = vector.broadcast %cst_43 : f32 to vector<8x1xf32>
    %155 = arith.cmpf ogt, %126, %154 : vector<8x1xf32>
    %156 = vector.shape_cast %155 : vector<8x1xi1> to vector<8x1xi1>
    %157 = vector.broadcast %156 : vector<8x1xi1> to vector<8x128xi1>
    %158 = arith.select %157, %153, %120 : vector<8x128xi1>, vector<8x128xf32>
    %c4_i32_44 = arith.constant 4 : i32
    %c0_45 = arith.constant 0 : index
    %159 = arith.index_cast %c4_i32_44 : i32 to index
    %c0_46 = arith.constant 0 : index
    %c0_47 = arith.constant 0 : index
    %160 = vector.load %arg1[%c0_45, %159, %c0_46, %c0_47] : memref<1x8x8x384xf32, #tpu.memory_space<vmem>>, vector<1x1x8x384xf32>
    %161 = vector.shape_cast %160 : vector<1x1x8x384xf32> to vector<8x384xf32>
    %c0_48 = arith.constant 0 : index
    %162 = arith.index_cast %c4_i32_44 : i32 to index
    %c0_49 = arith.constant 0 : index
    %c0_50 = arith.constant 0 : index
    %163 = vector.load %arg2[%c0_48, %162, %c0_49, %c0_50] : memref<1x8x8x1xf32, #tpu.memory_space<vmem>>, vector<1x1x8x1xf32>
    %164 = vector.shape_cast %163 : vector<1x1x8x1xf32> to vector<8x1xf32>
    %cst_51 = arith.constant dense<0.000000e+00> : vector<8x768xf32>
    %165 = tpu.matmul %158, %0, %cst_51 {dimension_numbers = #tpu.dot_dimension_numbers<[1], [0], [0], [1], [0, 0, 1, 1], [], []>} : vector<8x128xf32>, vector<128x768xf32>, vector<8x768xf32> -> vector<8x768xf32>
    %166 = vector.extract_strided_slice %165 {offsets = [0, 0], sizes = [8, 384], strides = [1, 1]} : vector<8x768xf32> to vector<8x384xf32>
    %167 = vector.extract_strided_slice %165 {offsets = [0, 384], sizes = [8, 384], strides = [1, 1]} : vector<8x768xf32> to vector<8x384xf32>
    %168 = vector.shape_cast %5 : vector<8x1xi1> to vector<8x1xi1>
    %169 = vector.broadcast %168 : vector<8x1xi1> to vector<8x384xi1>
    %170 = arith.select %169, %166, %167 : vector<8x384xi1>, vector<8x384xf32>
    %171 = vector.extract_strided_slice %161 {offsets = [0, 0], sizes = [8, 256], strides = [1, 1]} : vector<8x384xf32> to vector<8x256xf32>
    %172 = vector.extract_strided_slice %170 {offsets = [0, 0], sizes = [8, 256], strides = [1, 1]} : vector<8x384xf32> to vector<8x256xf32>
    %173 = arith.addf %171, %172 : vector<8x256xf32>
    %174 = arith.negf %173 : vector<8x256xf32>
    %175 = math.exp %174 : vector<8x256xf32>
    %cst_52 = arith.constant 1.000000e+00 : f32
    %176 = vector.broadcast %cst_52 : f32 to vector<8x256xf32>
    %177 = arith.addf %176, %175 : vector<8x256xf32>
    %178 = arith.divf %176, %177 : vector<8x256xf32>
    %179 = vector.extract_strided_slice %178 {offsets = [0, 0], sizes = [8, 128], strides = [1, 1]} : vector<8x256xf32> to vector<8x128xf32>
    %180 = vector.extract_strided_slice %178 {offsets = [0, 128], sizes = [8, 128], strides = [1, 1]} : vector<8x256xf32> to vector<8x128xf32>
    %181 = vector.extract_strided_slice %161 {offsets = [0, 256], sizes = [8, 128], strides = [1, 1]} : vector<8x384xf32> to vector<8x128xf32>
    %182 = vector.extract_strided_slice %170 {offsets = [0, 256], sizes = [8, 128], strides = [1, 1]} : vector<8x384xf32> to vector<8x128xf32>
    %183 = arith.addf %182, %2 : vector<8x128xf32>
    %184 = arith.mulf %179, %183 : vector<8x128xf32>
    %185 = arith.addf %181, %184 : vector<8x128xf32>
    %186 = math.tanh %185 : vector<8x128xf32>
    %cst_53 = arith.constant 1.000000e+00 : f32
    %187 = vector.broadcast %cst_53 : f32 to vector<8x128xf32>
    %188 = arith.subf %187, %180 : vector<8x128xf32>
    %189 = arith.mulf %188, %186 : vector<8x128xf32>
    %190 = arith.mulf %180, %158 : vector<8x128xf32>
    %191 = arith.addf %189, %190 : vector<8x128xf32>
    %cst_54 = arith.constant 0.000000e+00 : f32
    %192 = vector.broadcast %cst_54 : f32 to vector<8x1xf32>
    %193 = arith.cmpf ogt, %164, %192 : vector<8x1xf32>
    %194 = vector.shape_cast %193 : vector<8x1xi1> to vector<8x1xi1>
    %195 = vector.broadcast %194 : vector<8x1xi1> to vector<8x128xi1>
    %196 = arith.select %195, %191, %158 : vector<8x128xi1>, vector<8x128xf32>
    %c5_i32 = arith.constant 5 : i32
    %c0_55 = arith.constant 0 : index
    %197 = arith.index_cast %c5_i32 : i32 to index
    %c0_56 = arith.constant 0 : index
    %c0_57 = arith.constant 0 : index
    %198 = vector.load %arg1[%c0_55, %197, %c0_56, %c0_57] : memref<1x8x8x384xf32, #tpu.memory_space<vmem>>, vector<1x1x8x384xf32>
    %199 = vector.shape_cast %198 : vector<1x1x8x384xf32> to vector<8x384xf32>
    %c0_58 = arith.constant 0 : index
    %200 = arith.index_cast %c5_i32 : i32 to index
    %c0_59 = arith.constant 0 : index
    %c0_60 = arith.constant 0 : index
    %201 = vector.load %arg2[%c0_58, %200, %c0_59, %c0_60] : memref<1x8x8x1xf32, #tpu.memory_space<vmem>>, vector<1x1x8x1xf32>
    %202 = vector.shape_cast %201 : vector<1x1x8x1xf32> to vector<8x1xf32>
    %cst_61 = arith.constant dense<0.000000e+00> : vector<8x768xf32>
    %203 = tpu.matmul %196, %0, %cst_61 {dimension_numbers = #tpu.dot_dimension_numbers<[1], [0], [0], [1], [0, 0, 1, 1], [], []>} : vector<8x128xf32>, vector<128x768xf32>, vector<8x768xf32> -> vector<8x768xf32>
    %204 = vector.extract_strided_slice %203 {offsets = [0, 0], sizes = [8, 384], strides = [1, 1]} : vector<8x768xf32> to vector<8x384xf32>
    %205 = vector.extract_strided_slice %203 {offsets = [0, 384], sizes = [8, 384], strides = [1, 1]} : vector<8x768xf32> to vector<8x384xf32>
    %206 = vector.shape_cast %5 : vector<8x1xi1> to vector<8x1xi1>
    %207 = vector.broadcast %206 : vector<8x1xi1> to vector<8x384xi1>
    %208 = arith.select %207, %204, %205 : vector<8x384xi1>, vector<8x384xf32>
    %209 = vector.extract_strided_slice %199 {offsets = [0, 0], sizes = [8, 256], strides = [1, 1]} : vector<8x384xf32> to vector<8x256xf32>
    %210 = vector.extract_strided_slice %208 {offsets = [0, 0], sizes = [8, 256], strides = [1, 1]} : vector<8x384xf32> to vector<8x256xf32>
    %211 = arith.addf %209, %210 : vector<8x256xf32>
    %212 = arith.negf %211 : vector<8x256xf32>
    %213 = math.exp %212 : vector<8x256xf32>
    %cst_62 = arith.constant 1.000000e+00 : f32
    %214 = vector.broadcast %cst_62 : f32 to vector<8x256xf32>
    %215 = arith.addf %214, %213 : vector<8x256xf32>
    %216 = arith.divf %214, %215 : vector<8x256xf32>
    %217 = vector.extract_strided_slice %216 {offsets = [0, 0], sizes = [8, 128], strides = [1, 1]} : vector<8x256xf32> to vector<8x128xf32>
    %218 = vector.extract_strided_slice %216 {offsets = [0, 128], sizes = [8, 128], strides = [1, 1]} : vector<8x256xf32> to vector<8x128xf32>
    %219 = vector.extract_strided_slice %199 {offsets = [0, 256], sizes = [8, 128], strides = [1, 1]} : vector<8x384xf32> to vector<8x128xf32>
    %220 = vector.extract_strided_slice %208 {offsets = [0, 256], sizes = [8, 128], strides = [1, 1]} : vector<8x384xf32> to vector<8x128xf32>
    %221 = arith.addf %220, %2 : vector<8x128xf32>
    %222 = arith.mulf %217, %221 : vector<8x128xf32>
    %223 = arith.addf %219, %222 : vector<8x128xf32>
    %224 = math.tanh %223 : vector<8x128xf32>
    %cst_63 = arith.constant 1.000000e+00 : f32
    %225 = vector.broadcast %cst_63 : f32 to vector<8x128xf32>
    %226 = arith.subf %225, %218 : vector<8x128xf32>
    %227 = arith.mulf %226, %224 : vector<8x128xf32>
    %228 = arith.mulf %218, %196 : vector<8x128xf32>
    %229 = arith.addf %227, %228 : vector<8x128xf32>
    %cst_64 = arith.constant 0.000000e+00 : f32
    %230 = vector.broadcast %cst_64 : f32 to vector<8x1xf32>
    %231 = arith.cmpf ogt, %202, %230 : vector<8x1xf32>
    %232 = vector.shape_cast %231 : vector<8x1xi1> to vector<8x1xi1>
    %233 = vector.broadcast %232 : vector<8x1xi1> to vector<8x128xi1>
    %234 = arith.select %233, %229, %196 : vector<8x128xi1>, vector<8x128xf32>
    %c6_i32 = arith.constant 6 : i32
    %c0_65 = arith.constant 0 : index
    %235 = arith.index_cast %c6_i32 : i32 to index
    %c0_66 = arith.constant 0 : index
    %c0_67 = arith.constant 0 : index
    %236 = vector.load %arg1[%c0_65, %235, %c0_66, %c0_67] : memref<1x8x8x384xf32, #tpu.memory_space<vmem>>, vector<1x1x8x384xf32>
    %237 = vector.shape_cast %236 : vector<1x1x8x384xf32> to vector<8x384xf32>
    %c0_68 = arith.constant 0 : index
    %238 = arith.index_cast %c6_i32 : i32 to index
    %c0_69 = arith.constant 0 : index
    %c0_70 = arith.constant 0 : index
    %239 = vector.load %arg2[%c0_68, %238, %c0_69, %c0_70] : memref<1x8x8x1xf32, #tpu.memory_space<vmem>>, vector<1x1x8x1xf32>
    %240 = vector.shape_cast %239 : vector<1x1x8x1xf32> to vector<8x1xf32>
    %cst_71 = arith.constant dense<0.000000e+00> : vector<8x768xf32>
    %241 = tpu.matmul %234, %0, %cst_71 {dimension_numbers = #tpu.dot_dimension_numbers<[1], [0], [0], [1], [0, 0, 1, 1], [], []>} : vector<8x128xf32>, vector<128x768xf32>, vector<8x768xf32> -> vector<8x768xf32>
    %242 = vector.extract_strided_slice %241 {offsets = [0, 0], sizes = [8, 384], strides = [1, 1]} : vector<8x768xf32> to vector<8x384xf32>
    %243 = vector.extract_strided_slice %241 {offsets = [0, 384], sizes = [8, 384], strides = [1, 1]} : vector<8x768xf32> to vector<8x384xf32>
    %244 = vector.shape_cast %5 : vector<8x1xi1> to vector<8x1xi1>
    %245 = vector.broadcast %244 : vector<8x1xi1> to vector<8x384xi1>
    %246 = arith.select %245, %242, %243 : vector<8x384xi1>, vector<8x384xf32>
    %247 = vector.extract_strided_slice %237 {offsets = [0, 0], sizes = [8, 256], strides = [1, 1]} : vector<8x384xf32> to vector<8x256xf32>
    %248 = vector.extract_strided_slice %246 {offsets = [0, 0], sizes = [8, 256], strides = [1, 1]} : vector<8x384xf32> to vector<8x256xf32>
    %249 = arith.addf %247, %248 : vector<8x256xf32>
    %250 = arith.negf %249 : vector<8x256xf32>
    %251 = math.exp %250 : vector<8x256xf32>
    %cst_72 = arith.constant 1.000000e+00 : f32
    %252 = vector.broadcast %cst_72 : f32 to vector<8x256xf32>
    %253 = arith.addf %252, %251 : vector<8x256xf32>
    %254 = arith.divf %252, %253 : vector<8x256xf32>
    %255 = vector.extract_strided_slice %254 {offsets = [0, 0], sizes = [8, 128], strides = [1, 1]} : vector<8x256xf32> to vector<8x128xf32>
    %256 = vector.extract_strided_slice %254 {offsets = [0, 128], sizes = [8, 128], strides = [1, 1]} : vector<8x256xf32> to vector<8x128xf32>
    %257 = vector.extract_strided_slice %237 {offsets = [0, 256], sizes = [8, 128], strides = [1, 1]} : vector<8x384xf32> to vector<8x128xf32>
    %258 = vector.extract_strided_slice %246 {offsets = [0, 256], sizes = [8, 128], strides = [1, 1]} : vector<8x384xf32> to vector<8x128xf32>
    %259 = arith.addf %258, %2 : vector<8x128xf32>
    %260 = arith.mulf %255, %259 : vector<8x128xf32>
    %261 = arith.addf %257, %260 : vector<8x128xf32>
    %262 = math.tanh %261 : vector<8x128xf32>
    %cst_73 = arith.constant 1.000000e+00 : f32
    %263 = vector.broadcast %cst_73 : f32 to vector<8x128xf32>
    %264 = arith.subf %263, %256 : vector<8x128xf32>
    %265 = arith.mulf %264, %262 : vector<8x128xf32>
    %266 = arith.mulf %256, %234 : vector<8x128xf32>
    %267 = arith.addf %265, %266 : vector<8x128xf32>
    %cst_74 = arith.constant 0.000000e+00 : f32
    %268 = vector.broadcast %cst_74 : f32 to vector<8x1xf32>
    %269 = arith.cmpf ogt, %240, %268 : vector<8x1xf32>
    %270 = vector.shape_cast %269 : vector<8x1xi1> to vector<8x1xi1>
    %271 = vector.broadcast %270 : vector<8x1xi1> to vector<8x128xi1>
    %272 = arith.select %271, %267, %234 : vector<8x128xi1>, vector<8x128xf32>
    %c7_i32 = arith.constant 7 : i32
    %c0_75 = arith.constant 0 : index
    %273 = arith.index_cast %c7_i32 : i32 to index
    %c0_76 = arith.constant 0 : index
    %c0_77 = arith.constant 0 : index
    %274 = vector.load %arg1[%c0_75, %273, %c0_76, %c0_77] : memref<1x8x8x384xf32, #tpu.memory_space<vmem>>, vector<1x1x8x384xf32>
    %275 = vector.shape_cast %274 : vector<1x1x8x384xf32> to vector<8x384xf32>
    %c0_78 = arith.constant 0 : index
    %276 = arith.index_cast %c7_i32 : i32 to index
    %c0_79 = arith.constant 0 : index
    %c0_80 = arith.constant 0 : index
    %277 = vector.load %arg2[%c0_78, %276, %c0_79, %c0_80] : memref<1x8x8x1xf32, #tpu.memory_space<vmem>>, vector<1x1x8x1xf32>
    %278 = vector.shape_cast %277 : vector<1x1x8x1xf32> to vector<8x1xf32>
    %cst_81 = arith.constant dense<0.000000e+00> : vector<8x768xf32>
    %279 = tpu.matmul %272, %0, %cst_81 {dimension_numbers = #tpu.dot_dimension_numbers<[1], [0], [0], [1], [0, 0, 1, 1], [], []>} : vector<8x128xf32>, vector<128x768xf32>, vector<8x768xf32> -> vector<8x768xf32>
    %280 = vector.extract_strided_slice %279 {offsets = [0, 0], sizes = [8, 384], strides = [1, 1]} : vector<8x768xf32> to vector<8x384xf32>
    %281 = vector.extract_strided_slice %279 {offsets = [0, 384], sizes = [8, 384], strides = [1, 1]} : vector<8x768xf32> to vector<8x384xf32>
    %282 = vector.shape_cast %5 : vector<8x1xi1> to vector<8x1xi1>
    %283 = vector.broadcast %282 : vector<8x1xi1> to vector<8x384xi1>
    %284 = arith.select %283, %280, %281 : vector<8x384xi1>, vector<8x384xf32>
    %285 = vector.extract_strided_slice %275 {offsets = [0, 0], sizes = [8, 256], strides = [1, 1]} : vector<8x384xf32> to vector<8x256xf32>
    %286 = vector.extract_strided_slice %284 {offsets = [0, 0], sizes = [8, 256], strides = [1, 1]} : vector<8x384xf32> to vector<8x256xf32>
    %287 = arith.addf %285, %286 : vector<8x256xf32>
    %288 = arith.negf %287 : vector<8x256xf32>
    %289 = math.exp %288 : vector<8x256xf32>
    %cst_82 = arith.constant 1.000000e+00 : f32
    %290 = vector.broadcast %cst_82 : f32 to vector<8x256xf32>
    %291 = arith.addf %290, %289 : vector<8x256xf32>
    %292 = arith.divf %290, %291 : vector<8x256xf32>
    %293 = vector.extract_strided_slice %292 {offsets = [0, 0], sizes = [8, 128], strides = [1, 1]} : vector<8x256xf32> to vector<8x128xf32>
    %294 = vector.extract_strided_slice %292 {offsets = [0, 128], sizes = [8, 128], strides = [1, 1]} : vector<8x256xf32> to vector<8x128xf32>
    %295 = vector.extract_strided_slice %275 {offsets = [0, 256], sizes = [8, 128], strides = [1, 1]} : vector<8x384xf32> to vector<8x128xf32>
    %296 = vector.extract_strided_slice %284 {offsets = [0, 256], sizes = [8, 128], strides = [1, 1]} : vector<8x384xf32> to vector<8x128xf32>
    %297 = arith.addf %296, %2 : vector<8x128xf32>
    %298 = arith.mulf %293, %297 : vector<8x128xf32>
    %299 = arith.addf %295, %298 : vector<8x128xf32>
    %300 = math.tanh %299 : vector<8x128xf32>
    %cst_83 = arith.constant 1.000000e+00 : f32
    %301 = vector.broadcast %cst_83 : f32 to vector<8x128xf32>
    %302 = arith.subf %301, %294 : vector<8x128xf32>
    %303 = arith.mulf %302, %300 : vector<8x128xf32>
    %304 = arith.mulf %294, %272 : vector<8x128xf32>
    %305 = arith.addf %303, %304 : vector<8x128xf32>
    %cst_84 = arith.constant 0.000000e+00 : f32
    %306 = vector.broadcast %cst_84 : f32 to vector<8x1xf32>
    %307 = arith.cmpf ogt, %278, %306 : vector<8x1xf32>
    %308 = vector.shape_cast %307 : vector<8x1xi1> to vector<8x1xi1>
    %309 = vector.broadcast %308 : vector<8x1xi1> to vector<8x128xi1>
    %310 = arith.select %309, %305, %272 : vector<8x128xi1>, vector<8x128xf32>
    %c8_i32 = arith.constant 8 : i32
    %311 = vector.extract_strided_slice %310 {offsets = [4, 0], sizes = [4, 128], strides = [1, 1]} : vector<8x128xf32> to vector<4x128xf32>
    %c0_85 = arith.constant 0 : index
    %c0_86 = arith.constant 0 : index
    %312 = vector.load %arg6[%c0_85, %c0_86] : memref<128x128xf32, #tpu.memory_space<vmem>>, vector<128x128xf32>
    %cst_87 = arith.constant dense<0.000000e+00> : vector<4x128xf32>
    %313 = tpu.matmul %311, %312, %cst_87 {dimension_numbers = #tpu.dot_dimension_numbers<[1], [0], [0], [1], [0, 0, 1, 1], [], []>} : vector<4x128xf32>, vector<128x128xf32>, vector<4x128xf32> -> vector<4x128xf32>
    %314 = vector.extract_strided_slice %310 {offsets = [0, 0], sizes = [4, 128], strides = [1, 1]} : vector<8x128xf32> to vector<4x128xf32>
    %c0_88 = arith.constant 0 : index
    %c0_89 = arith.constant 0 : index
    %315 = vector.load %arg5[%c0_88, %c0_89] : memref<128x128xf32, #tpu.memory_space<vmem>>, vector<128x128xf32>
    %cst_90 = arith.constant dense<0.000000e+00> : vector<4x128xf32>
    %316 = tpu.matmul %314, %315, %cst_90 {dimension_numbers = #tpu.dot_dimension_numbers<[1], [0], [0], [1], [0, 0, 1, 1], [], []>} : vector<4x128xf32>, vector<128x128xf32>, vector<4x128xf32> -> vector<4x128xf32>
    %317 = arith.addf %313, %316 : vector<4x128xf32>
    %c0_91 = arith.constant 0 : index
    %c0_92 = arith.constant 0 : index
    %318 = vector.load %arg7[%c0_91, %c0_92] : memref<1x128xf32, #tpu.memory_space<vmem>>, vector<1x128xf32>
    %319 = vector.broadcast %318 : vector<1x128xf32> to vector<4x128xf32>
    %320 = arith.addf %317, %319 : vector<4x128xf32>
    %c0_93 = arith.constant 0 : index
    %c0_94 = arith.constant 0 : index
    %c0_95 = arith.constant 0 : index
    %321 = vector.load %arg8[%c0_93, %c0_94, %c0_95] : memref<1x4x128xf32, #tpu.memory_space<vmem>>, vector<1x4x128xf32>
    %322 = vector.shape_cast %321 : vector<1x4x128xf32> to vector<4x128xf32>
    %323 = vector.shape_cast %320 : vector<4x128xf32> to vector<1x4x128xf32>
    tpu.vector_store %arg8[%c0_93, %c0_94, %c0_95], %323 {strides = array<i32>} : memref<1x4x128xf32, #tpu.memory_space<vmem>>, vector<1x4x128xf32>,
    return
  }
  func.func @transform_0(%arg0: i32) -> (i32, i32, i32, i32) {
    %c0_i32 = arith.constant 0 : i32
    %c0_i32_0 = arith.constant 0 : i32
    %c0_i32_1 = arith.constant 0 : i32
    %c0_i32_2 = arith.constant 0 : i32
    return %arg0, %c0_i32, %c0_i32_0, %c0_i32_1 : i32, i32, i32, i32
  }
  func.func @transform_1(%arg0: i32) -> (i32, i32, i32, i32) {
    %c0_i32 = arith.constant 0 : i32
    %c0_i32_0 = arith.constant 0 : i32
    %c0_i32_1 = arith.constant 0 : i32
    %c0_i32_2 = arith.constant 0 : i32
    return %arg0, %c0_i32, %c0_i32_0, %c0_i32_1 : i32, i32, i32, i32
  }
  func.func @transform_2(%arg0: i32) -> (i32, i32, i32) {
    %c0_i32 = arith.constant 0 : i32
    %c0_i32_0 = arith.constant 0 : i32
    %c0_i32_1 = arith.constant 0 : i32
    return %arg0, %c0_i32, %c0_i32_0 : i32, i32, i32
  }
  func.func @transform_3(%arg0: i32) -> (i32, i32) {
    %c0_i32 = arith.constant 0 : i32
    %c0_i32_0 = arith.constant 0 : i32
    %c0_i32_1 = arith.constant 0 : i32
    return %c0_i32, %c0_i32_0 : i32, i32
  }
  func.func @transform_4(%arg0: i32) -> (i32, i32) {
    %c0_i32 = arith.constant 0 : i32
    %c0_i32_0 = arith.constant 0 : i32
    %c0_i32_1 = arith.constant 0 : i32
    return %c0_i32, %c0_i32_0 : i32, i32
  }
  func.func @transform_5(%arg0: i32) -> (i32, i32) {
    %c0_i32 = arith.constant 0 : i32
    %c0_i32_0 = arith.constant 0 : i32
    %c0_i32_1 = arith.constant 0 : i32
    return %c0_i32, %c0_i32_0 : i32, i32
  }
  func.func @transform_6(%arg0: i32) -> (i32, i32) {
    %c0_i32 = arith.constant 0 : i32
    %c0_i32_0 = arith.constant 0 : i32
    %c0_i32_1 = arith.constant 0 : i32
    return %c0_i32, %c0_i32_0 : i32, i32
  }
  func.func @transform_7(%arg0: i32) -> (i32, i32, i32) {
    %c0_i32 = arith.constant 0 : i32
    %c0_i32_0 = arith.constant 0 : i32
    %c0_i32_1 = arith.constant 0 : i32
    return %arg0, %c0_i32, %c0_i32_0 : i32, i32, i32
  }
}

</mosaic_0001>

<bundles_post_ra>
// kernel: tpu_custom_call.1
= control target key start
LH: loop header
LB: loop body
LE: loop exit
PB: predicated region body
PF: predicated region fallthrough
CT: control target
= control target key end

     0   :  { %12 = vsyncpa [#allocation3], 0  ;;  %s3520_s0 = inlined_call_operand.hbm [shape: f32[1,8,8,384], index: 0, kind: input, shape index: {}]   ;;  %s3521_s1 = inlined_call_operand.vmem [shape: f32[1,8,8,1], index: 1, kind: input, shape index: {}]   ;;  %s3522_s2 = inlined_call_operand.vmem [shape: f32[1,8,128], index: 2, kind: input, shape index: {}]   ;;  %s3523_s3 = inlined_call_operand.hbm [shape: f32[128,768], index: 3, kind: input, shape index: {}]   ;;  %s3524_s4 = inlined_call_operand.hbm [shape: f32[128,128], index: 4, kind: input, shape index: {}]   ;;  %s3525_s5 = inlined_call_operand.hbm [shape: f32[128,128], index: 5, kind: input, shape index: {}]   ;;  %s3526_s6 = inlined_call_operand.vmem [shape: f32[1,128], index: 6, kind: input, shape index: {}]   ;;  %s3527_s7 = inlined_call_operand.hbm [shape: f32[1,4,128], index: 7, kind: output, shape index: {}]  }
   0x1   :  { %13 = vsyncpa [#allocation6], 0 }
   0x2   :  { %14 = vsyncpa [#allocation9], 0  ;;  %s37_s26 = sshll.u32 %s3523_s3, 4  ;;  %s38_s26 = int_to_ptr.hbm [resolvable:$true] %s37_s26 }
   0x3   :  { %15 = vsyncpa [#allocation4], 0  ;;  %s2139_s27 = smov [#allocation5]   ;;  %s20_s8 = sshll.u32 %s3520_s0, 4  ;;  %s21_s8 = int_to_ptr.hbm [resolvable:$true] %s20_s8 }
   0x4   :  { %s39_s28 = sshll.u32 %s2139_s27, 4  ;;  %s2140_s9 = smov 768   ;;  %s40_s28 = int_to_ptr.vmem [resolvable:$true] %s39_s28 }
   0x5   :  { %s2141_s10 = smov 48   ;;  %s2142_s11 = smov [#allocation2]  }
   0x6   :  { %45 = dma.hbm_to_vmem [thread:$0]  %s38_s26, 12288, %s40_s28, [#allocation6], %s2140_s9, %s2140_s9, %s2141_s10  }
   0x7   :  { %s22_s12 = sshll.u32 %s2142_s11, 4  ;;  %s2143_s13 = smov 384   ;;  %s23_s12 = int_to_ptr.vmem [resolvable:$true] %s22_s12 }
   0x8   :  { %s2144_s14 = smov 24   ;;  %s50_s16 = sshll.u32 %s3524_s4, 4  ;;  %s51_s16 = int_to_ptr.hbm [resolvable:$true] %s50_s16 }
   0x9   :  { %28 = dma.hbm_to_vmem [thread:$0]  %s21_s8, 3072, %s23_s12, [#allocation3], %s2143_s13, %s2143_s13, %s2144_s14  }
   0xa   :  { %s2145_s17 = smov [#allocation7]   ;;  %s63_s20 = sshll.u32 %s3525_s5, 4  ;;  %s64_s20 = int_to_ptr.hbm [resolvable:$true] %s63_s20 }
   0xb   :  { %s52_s18 = sshll.u32 %s2145_s17, 4  ;;  %s2146_s21 = smov 128   ;;  %s53_s18 = int_to_ptr.vmem [resolvable:$true] %s52_s18 }
   0xc   :  { %s2147_s22 = smov 8   ;;  %s2148_s23 = smov [#allocation8]  }
   0xd   :  { %58 = dma.hbm_to_vmem [thread:$0]  %s51_s16, 2048, %s53_s18, [#allocation6], %s2146_s21, %s2146_s21, %s2147_s22  }
   0xe   :  { %s65_s24 = sshll.u32 %s2148_s23, 4  ;;  %s66_s24 = int_to_ptr.vmem [resolvable:$true] %s65_s24 }
   0xf   :  { %71 = dma.hbm_to_vmem [thread:$0]  %s64_s20, 2048, %s66_s24, [#allocation9], %s2146_s21, %s2146_s21, %s2147_s22  }
  0x10   :  { %2131 = dma.done.wait [#allocation3], 3072  }
  0x11   :  { %2132 = vsyncadd [#allocation3], 4294964224 }
  0x12   :  { %2133 = dma.done.wait [#allocation6], 14336  }
  0x13   :  { %2134 = vsyncadd [#allocation6], 4294952960 }
  0x14   :  { %2135 = dma.done.wait [#allocation9], 2048  }
  0x15   :  { %2136 = vsyncadd [#allocation9], 4294965248  ;;  %v2204_v0 = vld [vmem:[#allocation5 + $0x2d0] sm:$0xff]  ;;  %v2206_v1 = vld [vmem:[#allocation5 + $0x2a0] sm:$0xff]  ;;  %v3532_v60 = vmov 0.0   ;;  %s2151_s20 = smov [#allocation10]  }
  0x16   :  { %3764 = vst [vmem:[#allocation15_spill] sm:$0xff] %v2204_v0  ;;  %v2208_v2 = vld [vmem:[#allocation5 + $0x2e8] sm:$0xff]  ;;  %194 = vmatpush.msra.mxu0 %v2204_v0  ;;  %v2212_v3 = vld [vmem:[#allocation5 + $0x2b8] sm:$0xff]  ;;  %v2214_v4 = vld [vmem:[#allocation5 + $0x270] sm:$0xff]  ;;  %s1748_s21 = sshll.u32 %s2151_s20, 4  ;;  %s1750_s24 = sshll.u32 %s3527_s7, 4  ;;  %s1749_s21 = int_to_ptr.vmem [resolvable:$true] %s1748_s21  ;;  %s1751_s24 = int_to_ptr.hbm [resolvable:$true] %s1750_s24 }
  0x17   :  { %254 = vmatpush.msra.mxu3 %v2208_v2  ;;  %3765 = vst [vmem:[#allocation16_spill] sm:$0xff] %v2214_v4  ;;  %v2216_v5 = vld [vmem:[#allocation5 + $0x2d8] sm:$0xff]  ;;  %v2218_v6 = vld [vmem:[#allocation5 + $0x288] sm:$0xff]  ;;  %v2224_v8 = vld [vmem:[#allocation5 + $0x240] sm:$0xff] }
  0x18   :  { %3766 = vst [vmem:[#allocation17_spill] sm:$0xff] %v2216_v5  ;;  %195 = vmatpush.msra.mxu0 %v2206_v1  ;;  %v2222_v7 = vld [vmem:[#allocation5 + $0x2a8] sm:$0xff]  ;;  %214 = vmatpush.msra.mxu1 %v2216_v5  ;;  %v2227_v9 = vld [vmem:[#allocation5 + $0x258] sm:$0xff]  ;;  %v2233_v11 = vld [vmem:[#allocation5 + $0x210] sm:$0xff] }
  0x19   :  { %255 = vmatpush.msra.mxu3 %v2212_v3  ;;  %3767 = vst [vmem:[#allocation18_spill] sm:$0xff] %v2222_v7  ;;  %v2231_v10 = vld [vmem:[#allocation5 + $0x278] sm:$0xff]  ;;  %v2236_v12 = vld [vmem:[#allocation5 + $0x228] sm:$0xff]  ;;  %v2242_v14 = vld [vmem:[#allocation5 + $0x1e0] sm:$0xff] }
  0x1a   :  { %3768 = vst [vmem:[#allocation19_spill] sm:$0xff] %v2227_v9  ;;  %196 = vmatpush.msra.mxu0 %v2214_v4  ;;  %215 = vmatpush.msra.mxu1 %v2222_v7  ;;  %v2240_v13 = vld [vmem:[#allocation5 + $0x248] sm:$0xff]  ;;  %v2245_v15 = vld [vmem:[#allocation5 + $0x1f8] sm:$0xff]  ;;  %v2251_v17 = vld [vmem:[#allocation5 + $0x1b0] sm:$0xff] }
  0x1b   :  { %256 = vmatpush.msra.mxu3 %v2218_v6  ;;  %3769 = vst [vmem:[#allocation20_spill] sm:$0xff] %v2231_v10  ;;  %v2249_v16 = vld [vmem:[#allocation5 + $0x218] sm:$0xff]  ;;  %v2254_v18 = vld [vmem:[#allocation5 + $0x1c8] sm:$0xff]  ;;  %v2260_v20 = vld [vmem:[#allocation5 + $0x180] sm:$0xff] }
  0x1c   :  { %3770 = vst [vmem:[#allocation21_spill] sm:$0xff] %v2236_v12  ;;  %197 = vmatpush.msra.mxu0 %v2224_v8  ;;  %216 = vmatpush.msra.mxu1 %v2231_v10  ;;  %v2258_v19 = vld [vmem:[#allocation5 + $0x1e8] sm:$0xff]  ;;  %v2263_v21 = vld [vmem:[#allocation5 + $0x198] sm:$0xff]  ;;  %v2269_v23 = vld [vmem:[#allocation5 + $0x150] sm:$0xff] }
  0x1d   :  { %257 = vmatpush.msra.mxu3 %v2227_v9  ;;  %3771 = vst [vmem:[#allocation22_spill] sm:$0xff] %v2240_v13  ;;  %v2267_v22 = vld [vmem:[#allocation5 + $0x1b8] sm:$0xff]  ;;  %v2272_v24 = vld [vmem:[#allocation5 + $0x168] sm:$0xff]  ;;  %v2274_v25 = vld [vmem:[#allocation5 + $0x2e0] sm:$0xff] }
  0x1e   :  { %3772 = vst [vmem:[#allocation23_spill] sm:$0xff] %v2242_v14  ;;  %198 = vmatpush.msra.mxu0 %v2233_v11  ;;  %217 = vmatpush.msra.mxu1 %v2240_v13  ;;  %v2278_v26 = vld [vmem:[#allocation5 + $0x188] sm:$0xff]  ;;  %v2280_v27 = vld [vmem:[#allocation5 + $0x2b0] sm:$0xff]  ;;  %v2282_v28 = vld [vmem:[#allocation5 + $0x120] sm:$0xff] }
  0x1f   :  { %3773 = vst [vmem:[#allocation24_spill] sm:$0xff] %v2245_v15  ;;  %258 = vmatpush.msra.mxu3 %v2236_v12  ;;  %v2285_v29 = vld [vmem:[#allocation5 + $0x138] sm:$0xff]  ;;  %234 = vmatpush.msra.mxu2 %v2274_v25  ;;  %v2292_v31 = vld [vmem:[#allocation5 + $0x280] sm:$0xff]  ;;  %v2294_v32 = vld [vmem:[#allocation5 + $0xf0] sm:$0xff] }
  0x20   :  { %3774 = vst [vmem:[#allocation25_spill] sm:$0xff] %v2249_v16  ;;  %199 = vmatpush.msra.mxu0 %v2242_v14  ;;  %218 = vmatpush.msra.mxu1 %v2249_v16  ;;  %v2290_v30 = vld [vmem:[#allocation5 + $0x158] sm:$0xff]  ;;  %v2297_v33 = vld [vmem:[#allocation5 + $0x108] sm:$0xff]  ;;  %v2304_v35 = vld [vmem:[#allocation5 + $0x250] sm:$0xff] }
  0x21   :  { %3775 = vst [vmem:[#allocation26_spill] sm:$0xff] %v2251_v17  ;;  %259 = vmatpush.msra.mxu3 %v2245_v15  ;;  %235 = vmatpush.msra.mxu2 %v2280_v27  ;;  %v2302_v34 = vld [vmem:[#allocation5 + $0x128] sm:$0xff]  ;;  %v2306_v36 = vld [vmem:[#allocation5 + $0xc0] sm:$0xff]  ;;  %v2309_v37 = vld [vmem:[#allocation5 + $0xd8] sm:$0xff] }
  0x22   :  { %3776 = vst [vmem:[#allocation27_spill] sm:$0xff] %v2254_v18  ;;  %200 = vmatpush.msra.mxu0 %v2251_v17  ;;  %219 = vmatpush.msra.mxu1 %v2258_v19  ;;  %v2314_v38 = vld [vmem:[#allocation5 + $0xf8] sm:$0xff]  ;;  %v2316_v39 = vld [vmem:[#allocation5 + $0x220] sm:$0xff]  ;;  %v2318_v40 = vld [vmem:[#allocation5 + $0x90] sm:$0xff] }
  0x23   :  { %3777 = vst [vmem:[#allocation28_spill] sm:$0xff] %v2258_v19  ;;  %260 = vmatpush.msra.mxu3 %v2254_v18  ;;  %236 = vmatpush.msra.mxu2 %v2292_v31  ;;  %v2321_v41 = vld [vmem:[#allocation5 + $0xa8] sm:$0xff]  ;;  %v2328_v43 = vld [vmem:[#allocation5 + $0x1f0] sm:$0xff]  ;;  %v2330_v44 = vld [vmem:[#allocation5 + $0x60] sm:$0xff] }
  0x24   :  { %3778 = vst [vmem:[#allocation29_spill] sm:$0xff] %v2260_v20  ;;  %201 = vmatpush.msra.mxu0 %v2260_v20  ;;  %220 = vmatpush.msra.mxu1 %v2267_v22  ;;  %v2326_v42 = vld [vmem:[#allocation5 + $0xc8] sm:$0xff]  ;;  %v2333_v45 = vld [vmem:[#allocation5 + $0x78] sm:$0xff]  ;;  %v2340_v47 = vld [vmem:[#allocation5 + $0x1c0] sm:$0xff] }
  0x25   :  { %3779 = vst [vmem:[#allocation30_spill] sm:$0xff] %v2263_v21  ;;  %261 = vmatpush.msra.mxu3 %v2263_v21  ;;  %237 = vmatpush.msra.mxu2 %v2304_v35  ;;  %v2338_v46 = vld [vmem:[#allocation5 + $0x98] sm:$0xff]  ;;  %v2342_v48 = vld [vmem:[#allocation5 + $0x30] sm:$0xff]  ;;  %v2345_v49 = vld [vmem:[#allocation5 + $0x48] sm:$0xff] }
  0x26   :  { %3780 = vst [vmem:[#allocation31_spill] sm:$0xff] %v2267_v22  ;;  %202 = vmatpush.msra.mxu0 %v2269_v23  ;;  %221 = vmatpush.msra.mxu1 %v2278_v26  ;;  %v2350_v50 = vld [vmem:[#allocation5 + $0x68] sm:$0xff]  ;;  %v2352_v51 = vld [vmem:[#allocation5 + $0x190] sm:$0xff]  ;;  %v2354_v52 = vld [vmem:[#allocation5] sm:$0xff] }
  0x27   :  { %3781 = vst [vmem:[#allocation32_spill] sm:$0xff] %v2269_v23  ;;  %262 = vmatpush.msra.mxu3 %v2272_v24  ;;  %238 = vmatpush.msra.mxu2 %v2316_v39  ;;  %v2357_v53 = vld [vmem:[#allocation5 + $0x18] sm:$0xff]  ;;  %v2362_v54 = vld [vmem:[#allocation5 + $0x2f0] sm:$0xff]  ;;  %v2370_v56 = vld [vmem:[#allocation5 + $0x2c0] sm:$0xff] }
  0x28   :  { %3782 = vst [vmem:[#allocation33_spill] sm:$0xff] %v2272_v24  ;;  %203 = vmatpush.msra.mxu0 %v2282_v28  ;;  %222 = vmatpush.msra.mxu1 %v2290_v30  ;;  %v2364_v55 = vld [vmem:[#allocation5 + $0x38] sm:$0xff]  ;;  %v2372_v57 = vld [vmem:[#allocation5 + $0x8] sm:$0xff]  ;;  %v2378_v59 = vld [vmem:[#allocation5 + $0x160] sm:$0xff] }
  0x29   :  { %3783 = vst [vmem:[#allocation34_spill] sm:$0xff] %v2278_v26  ;;  %263 = vmatpush.msra.mxu3 %v2285_v29  ;;  %239 = vmatpush.msra.mxu2 %v2328_v43  ;;  %v2376_v58 = vld [vmem:[#allocation5 + $0x2f8] sm:$0xff]  ;;  %v2381_v61 = vld [vmem:[#allocation5 + $0x290] sm:$0xff]  ;;  %v2386_v62 = vld [vmem:[#allocation5 + $0x2c8] sm:$0xff] }
  0x2a   :  { %3784 = vst [vmem:[#allocation35_spill] sm:$0xff] %v2282_v28  ;;  %204 = vmatpush.msra.mxu0 %v2294_v32  ;;  %223 = vmatpush.msra.mxu1 %v2302_v34  ;;  %v2388_v63 = vld [vmem:[#allocation5 + $0x130] sm:$0xff]  ;;  %v2422_v24 = vld [vmem:[#allocation5 + $0x238] sm:$0xff] }
  0x2b   :  { %3785 = vst [vmem:[#allocation36_spill] sm:$0xff] %v2285_v29  ;;  %264 = vmatpush.msra.mxu3 %v2297_v33  ;;  %240 = vmatpush.msra.mxu2 %v2340_v47 }
  0x2c   :  { %3786 = vst [vmem:[#allocation37_spill] sm:$0xff] %v2290_v30  ;;  %205 = vmatpush.msra.mxu0 %v2306_v36  ;;  %224 = vmatpush.msra.mxu1 %v2314_v38 }
  0x2d   :  { %3787 = vst [vmem:[#allocation38_spill] sm:$0xff] %v2294_v32  ;;  %265 = vmatpush.msra.mxu3 %v2309_v37  ;;  %241 = vmatpush.msra.mxu2 %v2352_v51 }
  0x2e   :  { %3788 = vst [vmem:[#allocation39_spill] sm:$0xff] %v2297_v33  ;;  %206 = vmatpush.msra.mxu0 %v2318_v40  ;;  %225 = vmatpush.msra.mxu1 %v2326_v42  ;;  %v3556_v33 = vmov 0  }
  0x2f   :  { %3789 = vst [vmem:[#allocation40_spill] sm:$0xff] %v2302_v34  ;;  %266 = vmatpush.msra.mxu3 %v2321_v41  ;;  %242 = vmatpush.msra.mxu2 %v2378_v59 }
  0x30   :  { %3790 = vst [vmem:[#allocation41_spill] sm:$0xff] %v2306_v36  ;;  %207 = vmatpush.msra.mxu0 %v2330_v44  ;;  %226 = vmatpush.msra.mxu1 %v2338_v46 }
  0x31   :  { %3791 = vst [vmem:[#allocation42_spill] sm:$0xff] %v2309_v37  ;;  %267 = vmatpush.msra.mxu3 %v2333_v45  ;;  %v2403_v37 = vld [vmem:[#allocation5 + $0x230] sm:$0xff]  ;;  %243 = vmatpush.msra.mxu2 %v2388_v63 }
  0x32   :  { %3792 = vst [vmem:[#allocation43_spill] sm:$0xff] %v2314_v38  ;;  %208 = vmatpush.msra.mxu0 %v2342_v48  ;;  %227 = vmatpush.msra.mxu1 %v2350_v50 }
  0x33   :  { %3793 = vst [vmem:[#allocation44_spill] sm:$0xff] %v2316_v39  ;;  %268 = vmatpush.msra.mxu3 %v2345_v49  ;;  %1804 = vset.pattern.permute.xlu0 %v3556_v33 }
  0x34   :  { %3794 = vst [vmem:[#allocation45_spill] sm:$0xff] %v2318_v40  ;;  %209 = vmatpush.msra.mxu0 %v2354_v52  ;;  %228 = vmatpush.msra.mxu1 %v2364_v55 }
  0x35   :  { %3795 = vst [vmem:[#allocation46_spill] sm:$0xff] %v2321_v41  ;;  %269 = vmatpush.msra.mxu3 %v2357_v53  ;;  %210 = vmatmul.f32.vlgmr.msra.gmra.mxu0 %v3532_v60  ;;  %v3816_v41 = vmov 0.0  }
  0x36   :  { %3796 = vst [vmem:[#allocation47_spill] sm:$0xff] %v2326_v42  ;;  %274 = vmatpush.msrb.mxu0 %v2362_v54  ;;  %270 = vmatmul.f32.vlgmr.msra.gmra.mxu3 %v3532_v60  ;;  %v2398_v60 = vld [vmem:[#allocation5 + $0x298] sm:$0xff] }
  0x37   :  { %3797 = vst [vmem:[#allocation48_spill] sm:$0xff] %v2328_v43  ;;  %229 = vmatpush.msra.mxu1 %v2372_v57  ;;  %400 = vmatpush.msrb.mxu3 %v2216_v5 }
  0x38   :  { %3798 = vst [vmem:[#allocation49_spill] sm:$0xff] %v2330_v44  ;;  %275 = vmatpush.msrb.mxu0 %v2370_v56  ;;  %230 = vmatmul.f32.vlgmr.msra.gmra.mxu1 %v3816_v41 }
  0x39   :  { %3799 = vst [vmem:[#allocation50_spill] sm:$0xff] %v2333_v45  ;;  %294 = vmatpush.msrb.mxu1 %v2376_v58  ;;  %v2400_v45 = vld [vmem:[#allocation5 + $0x100] sm:$0xff]  ;;  %401 = vmatpush.msrb.mxu3 %v2222_v7  ;;  %v1785_v7 = vld [vmem:[%s3521_s1 + $0x30] sm:$0xff] }
  0x3a   :  { %3800 = vst [vmem:[#allocation51_spill] sm:$0xff] %v2338_v46  ;;  %276 = vmatpush.msrb.mxu0 %v2381_v61  ;;  %244 = vmatpush.msra.mxu2 %v2400_v45  ;;  %vm1471_vm2 = vcmp.gt.f32.partialorder %v1785_v7, 0.0  ;;  %v2489_v7 = vld [vmem:[#allocation5 + $0xe8] sm:$0xff] }
  0x3b   :  { %3801 = vst [vmem:[#allocation52_spill] sm:$0xff] %v2340_v47  ;;  %295 = vmatpush.msrb.mxu1 %v2386_v62  ;;  %402 = vmatpush.msrb.mxu3 %v2231_v10  ;;  %v2472_v10 = vld [vmem:[#allocation5 + $0x148] sm:$0xff] }
  0x3c   :  { %3802 = vst [vmem:[#allocation53_spill] sm:$0xff] %v2342_v48 }
  0x3d   :  { %3803 = vst [vmem:[#allocation54_spill] sm:$0xff] %v2345_v49  ;;  %v2393_v49 = vld [vmem:[#allocation5 + $0x260] sm:$0xff]  ;;  %296 = vmatpush.msrb.mxu1 %v2398_v60  ;;  %403 = vmatpush.msrb.mxu3 %v2240_v13  ;;  %v2497_v13 = vld [vmem:[#allocation5 + $0xb8] sm:$0xff] }
  0x3e   :  { %3804 = vst [vmem:[#allocation55_spill] sm:$0xff] %v2350_v50  ;;  %277 = vmatpush.msrb.mxu0 %v2393_v49 }
  0x3f   :  { %3805 = vst [vmem:[#allocation56_spill] sm:$0xff] %v2352_v51  ;;  %404 = vmatpush.msrb.mxu3 %v2249_v16  ;;  %v2504_v16 = vld [vmem:[#allocation5 + $0x88] sm:$0xff] }
  0x40   :  { %3806 = vst [vmem:[#allocation57_spill] sm:$0xff] %v2354_v52  ;;  %278 = vmatpush.msrb.mxu0 %v2403_v37 }
  0x41   :  { %3807 = vst [vmem:[#allocation58_spill] sm:$0xff] %v2357_v53  ;;  %v193_v53 = vld [vmem:[%s3521_s1] sm:$0xff]  ;;  %405 = vmatpush.msrb.mxu3 %v2258_v19 }
  0x42   :  { %3808 = vst [vmem:[#allocation59_spill] sm:$0xff] %v2364_v55  ;;  %vm367_vm0 = vcmp.gt.f32.partialorder %v193_v53, 0.0  ;;  %v2409_v53 = vld [vmem:[#allocation5 + $0x268] sm:$0xff] }
  0x43   :  { %3809 = vst [vmem:[#allocation60_spill] sm:$0xff] %v2370_v56  ;;  %v368_v29 = vsel %vm367_vm0, 1, %v3556_v33  ;;  %v2414_v56 = vld [vmem:[#allocation5 + $0x200] sm:$0xff]  ;;  %297 = vmatpush.msrb.mxu1 %v2409_v53  ;;  %v2431_v33 = vld [vmem:[#allocation5 + $0x208] sm:$0xff]  ;;  %406 = vmatpush.msrb.mxu3 %v2267_v22 }
  0x44   :  { %3810 = vst [vmem:[#allocation61_spill] sm:$0xff] %v2372_v57  ;;  %370 = vperm.xlu0 %1804, %v368_v29   ;;  %279 = vmatpush.msrb.mxu0 %v2414_v56  ;;  %v2441_v29 = vld [vmem:[#allocation5 + $0x1d8] sm:$0xff] }
  0x45   :  { %3811 = vst [vmem:[#allocation62_spill] sm:$0xff] %v2378_v59  ;;  %v2426_v59 = vld [vmem:[#allocation5 + $0x1d0] sm:$0xff]  ;;  %298 = vmatpush.msrb.mxu1 %v2422_v24  ;;  %407 = vmatpush.msrb.mxu3 %v2278_v26 }
  0x46   :  { %3812 = vst [vmem:[#allocation63_spill] sm:$0xff] %v2381_v61  ;;  %v2411_v61 = vld [vmem:[#allocation5 + $0xd0] sm:$0xff]  ;;  %280 = vmatpush.msrb.mxu0 %v2426_v59 }
  0x47   :  { %3813 = vst [vmem:[#allocation64_spill] sm:$0xff] %v2388_v63  ;;  %v1764_v63 = vld [vmem:[%s3521_s1 + $0x8] sm:$0xff]  ;;  %245 = vmatpush.msra.mxu2 %v2411_v61  ;;  %299 = vmatpush.msrb.mxu1 %v2431_v33 }
  0x48   :  { %3814 = vst [vmem:[#allocation65_spill] sm:$0xff] %v2393_v49  ;;  %v2424_v49 = vld [vmem:[#allocation5 + $0xa0] sm:$0xff]  ;;  %vm551_vm1 = vcmp.gt.f32.partialorder %v1764_v63, 0.0  ;;  %v3829_v63 = vmov 0   ;;  %408 = vmatpush.msrb.mxu3 %v2290_v30 }
  0x49   :  { %3815 = vst [vmem:[#allocation66_spill] sm:$0xff] %v2400_v45  ;;  %v2433_v45 = vld [vmem:[#allocation5 + $0x70] sm:$0xff]  ;;  %246 = vmatpush.msra.mxu2 %v2424_v49  ;;  %v552_v5 = vsel %vm551_vm1, 1, %v3829_v63  ;;  %300 = vmatpush.msrb.mxu1 %v2441_v29 }
  0x4a   :  { %3817 = vst [vmem:[#allocation67_spill] sm:$0xff] %v2403_v37  ;;  %v2436_v37 = vld [vmem:[#allocation5 + $0x1a0] sm:$0xff]  ;;  %409 = vmatpush.msrb.mxu3 %v2302_v34 }
  0x4b   :  { %3818 = vst [vmem:[#allocation68_spill] sm:$0xff] %v2409_v53  ;;  %247 = vmatpush.msra.mxu2 %v2433_v45  ;;  %281 = vmatpush.msrb.mxu0 %v2436_v37 }
  0x4c   :  { %3819 = vst [vmem:[#allocation69_spill] sm:$0xff] %v2411_v61  ;;  %v2443_v61 = vld [vmem:[#allocation5 + $0x40] sm:$0xff]  ;;  %554 = vperm.xlu0 %1804, %v552_v5   ;;  %v2480_v5 = vld [vmem:[#allocation5 + $0x118] sm:$0xff]  ;;  %410 = vmatpush.msrb.mxu3 %v2314_v38 }
  0x4d   :  { %3820 = vst [vmem:[#allocation70_spill] sm:$0xff] %v2414_v56  ;;  %v2446_v56 = vld [vmem:[#allocation5 + $0x170] sm:$0xff]  ;;  %248 = vmatpush.msra.mxu2 %v2443_v61 }
  0x4e   :  { %3821 = vst [vmem:[#allocation71_spill] sm:$0xff] %v2422_v24  ;;  %v2452_v24 = vld [vmem:[#allocation5 + $0x1a8] sm:$0xff]  ;;  %282 = vmatpush.msrb.mxu0 %v2446_v56  ;;  %411 = vmatpush.msrb.mxu3 %v2326_v42 }
  0x4f   :  { %3822 = vst [vmem:[#allocation72_spill] sm:$0xff] %v2424_v49  ;;  %v2454_v49 = vld [vmem:[#allocation5 + $0x10] sm:$0xff]  ;;  %301 = vmatpush.msrb.mxu1 %v2452_v24 }
  0x50   :  { %3823 = vst [vmem:[#allocation73_spill] sm:$0xff] %v2426_v59  ;;  %v2457_v59 = vld [vmem:[#allocation5 + $0x140] sm:$0xff]  ;;  %249 = vmatpush.msra.mxu2 %v2454_v49  ;;  %412 = vmatpush.msrb.mxu3 %v2338_v46 }
  0x51   :  { %3824 = vst [vmem:[#allocation74_spill] sm:$0xff] %v2431_v33  ;;  %283 = vmatpush.msrb.mxu0 %v2457_v59  ;;  %250 = vmatmul.f32.vlgmr.msra.gmra.mxu2 %v3816_v41 }
  0x52   :  { %3825 = vst [vmem:[#allocation75_spill] sm:$0xff] %v2433_v45  ;;  %v2465_v45 = vld [vmem:[#allocation5 + $0x178] sm:$0xff]  ;;  %380 = vmatpush.msrb.mxu2 %v2204_v0  ;;  %v2492_v0 = vld [vmem:[#allocation5 + $0x80] sm:$0xff]  ;;  %413 = vmatpush.msrb.mxu3 %v2350_v50 }
  0x53   :  { %3826 = vst [vmem:[#allocation76_spill] sm:$0xff] %v2436_v37  ;;  %v2467_v37 = vld [vmem:[#allocation5 + $0x110] sm:$0xff]  ;;  %302 = vmatpush.msrb.mxu1 %v2465_v45 }
  0x54   :  { %3827 = vst [vmem:[#allocation77_spill] sm:$0xff] %v2443_v61  ;;  %v2475_v61 = vld [vmem:[#allocation5 + $0xe0] sm:$0xff]  ;;  %284 = vmatpush.msrb.mxu0 %v2467_v37  ;;  %381 = vmatpush.msrb.mxu2 %v2206_v1 }
  0x55   :  { %3828 = vst [vmem:[#allocation78_spill] sm:$0xff] %v2446_v56  ;;  %v2483_v56 = vld [vmem:[#allocation5 + $0xb0] sm:$0xff]  ;;  %303 = vmatpush.msrb.mxu1 %v2472_v10  ;;  %414 = vmatpush.msrb.mxu3 %v2364_v55 }
  0x56   :  { %3830 = vst [vmem:[#allocation79_spill] sm:$0xff] %v2452_v24  ;;  %285 = vmatpush.msrb.mxu0 %v2475_v61  ;;  %382 = vmatpush.msrb.mxu2 %v2214_v4 }
  0x57   :  { %3831 = vst [vmem:[#allocation80_spill] sm:$0xff] %v2457_v59  ;;  %v1472_v59 = vsel %vm1471_vm2, 1, %v3829_v63  ;;  %304 = vmatpush.msrb.mxu1 %v2480_v5  ;;  %v2499_v63 = vld [vmem:[#allocation5 + $0x50] sm:$0xff]  ;;  %415 = vmatpush.msrb.mxu3 %v2372_v57 }
  0x58   :  { %3832 = vst [vmem:[#allocation81_spill] sm:$0xff] %v2475_v61  ;;  %286 = vmatpush.msrb.mxu0 %v2483_v56  ;;  %1474 = vperm.xlu0 %1804, %v1472_v59   ;;  %v2507_v61 = vld [vmem:[#allocation5 + $0x20] sm:$0xff]  ;;  %v2512_v59 = vld [vmem:[#allocation5 + $0x58] sm:$0xff] }
  0x59   :  { %3833 = vst [vmem:[#allocation82_spill] sm:$0xff] %v2492_v0  ;;  %305 = vmatpush.msrb.mxu1 %v2489_v7  ;;  %383 = vmatpush.msrb.mxu2 %v2224_v8 }
  0x5a   :  { %287 = vmatpush.msrb.mxu0 %v2492_v0  ;;  %v2518_v0 = vld [vmem:[#allocation5 + $0x28] sm:$0xff]  ;;  %480 = vmatpush.msra.mxu3 %v2376_v58 }
  0x5b   :  { %306 = vmatpush.msrb.mxu1 %v2497_v13  ;;  %384 = vmatpush.msrb.mxu2 %v2233_v11  ;;  %3834 = vst [vmem:[#allocation83_spill] sm:$0xff] %v2518_v0 }
  0x5c   :  { %288 = vmatpush.msrb.mxu0 %v2499_v63  ;;  %481 = vmatpush.msra.mxu3 %v2386_v62 }
  0x5d   :  { %307 = vmatpush.msrb.mxu1 %v2504_v16  ;;  %385 = vmatpush.msrb.mxu2 %v2242_v14 }
  0x5e   :  { %289 = vmatpush.msrb.mxu0 %v2507_v61  ;;  %482 = vmatpush.msra.mxu3 %v2398_v60 }
  0x5f   :  { %290 = vmatmul.f32.vlgmr.msrb.gmra.mxu0 %v3816_v41  ;;  %308 = vmatpush.msrb.mxu1 %v2512_v59 }
  0x60   :  { %386 = vmatpush.msrb.mxu2 %v2251_v17  ;;  %420 = vmatpush.msra.mxu0 %v2274_v25 }
  0x61   :  { %309 = vmatpush.msrb.mxu1 %v2518_v0  ;;  %483 = vmatpush.msra.mxu3 %v2409_v53  ;;  %v3848_v53 = vld [vmem:[#allocation72_spill] sm:$0xff] }
  0x62   :  { %310 = vmatmul.f32.vlgmr.msrb.gmra.mxu1 %v3816_v41  ;;  %387 = vmatpush.msrb.mxu2 %v2260_v20  ;;  %v3835_v41 = vld [vmem:[#allocation62_spill] sm:$0xff] }
  0x63   :  { %440 = vmatpush.msra.mxu1 %v2208_v2  ;;  %421 = vmatpush.msra.mxu0 %v2280_v27 }
  0x64   :  { %388 = vmatpush.msrb.mxu2 %v2269_v23 }
  0x65   :  { %441 = vmatpush.msra.mxu1 %v2212_v3  ;;  %422 = vmatpush.msra.mxu0 %v2292_v31 }
  0x66   :  { %389 = vmatpush.msrb.mxu2 %v2282_v28 }
  0x67   :  { %442 = vmatpush.msra.mxu1 %v2218_v6  ;;  %423 = vmatpush.msra.mxu0 %v2304_v35 }
  0x68   :  { %390 = vmatpush.msrb.mxu2 %v2294_v32 }
  0x69   :  { %443 = vmatpush.msra.mxu1 %v2227_v9  ;;  %424 = vmatpush.msra.mxu0 %v2316_v39  ;;  %v3843_v39 = vld [vmem:[#allocation39_spill] sm:$0xff]  ;;  %v3845_v9 = vld [vmem:[#allocation69_spill] sm:$0xff] }
  0x6a   :  { %391 = vmatpush.msrb.mxu2 %v2306_v36 }
  0x6b   :  { %444 = vmatpush.msra.mxu1 %v2236_v12  ;;  %425 = vmatpush.msra.mxu0 %v2328_v43  ;;  %v3841_v43 = vld [vmem:[#allocation66_spill] sm:$0xff]  ;;  %v3842_v12 = vld [vmem:[#allocation71_spill] sm:$0xff] }
  0x6c   :  { %392 = vmatpush.msrb.mxu2 %v2318_v40  ;;  %484 = vmatpush.msra.mxu3 %v3842_v12  ;;  %v3851_v12 = vld [vmem:[#allocation75_spill] sm:$0xff] }
  0x6d   :  { %445 = vmatpush.msra.mxu1 %v2245_v15  ;;  %426 = vmatpush.msra.mxu0 %v2340_v47  ;;  %v3836_v47 = vld [vmem:[#allocation33_spill] sm:$0xff]  ;;  %v3838_v15 = vld [vmem:[#allocation64_spill] sm:$0xff] }
  0x6e   :  { %393 = vmatpush.msrb.mxu2 %v2330_v44  ;;  %485 = vmatpush.msra.mxu3 %v2431_v33  ;;  %v3854_v33 = vld [vmem:[#allocation77_spill] sm:$0xff] }
  0x6f   :  { %446 = vmatpush.msra.mxu1 %v2254_v18  ;;  %427 = vmatpush.msra.mxu0 %v2352_v51  ;;  %v3837_v18 = vld [vmem:[#allocation60_spill] sm:$0xff] }
  0x70   :  { %394 = vmatpush.msrb.mxu2 %v2342_v48  ;;  %v3839_v51 = vld [vmem:[#allocation36_spill] sm:$0xff]  ;;  %486 = vmatpush.msra.mxu3 %v2441_v29 }
  0x71   :  { %447 = vmatpush.msra.mxu1 %v2263_v21  ;;  %428 = vmatpush.msra.mxu0 %v3835_v41  ;;  %v3840_v21 = vld [vmem:[#allocation63_spill] sm:$0xff]  ;;  %v3844_v41 = vld [vmem:[#allocation65_spill] sm:$0xff] }
  0x72   :  { %395 = vmatpush.msrb.mxu2 %v2354_v52  ;;  %487 = vmatpush.msra.mxu3 %v2452_v24  ;;  %v3859_v24 = vld [vmem:[#allocation15_spill] sm:$0xff] }
  0x73   :  { %448 = vmatpush.msra.mxu1 %v3836_v47  ;;  %429 = vmatpush.msra.mxu0 %v3838_v15  ;;  %v3846_v47 = vld [vmem:[#allocation42_spill] sm:$0xff]  ;;  %v3847_v15 = vld [vmem:[#allocation67_spill] sm:$0xff] }
  0x74   :  { %460 = vmatpush.msra.mxu2 %v2362_v54  ;;  %488 = vmatpush.msra.mxu3 %v2465_v45 }
  0x75   :  { %449 = vmatpush.msra.mxu1 %v3839_v51  ;;  %430 = vmatpush.msra.mxu0 %v3841_v43  ;;  %v3849_v51 = vld [vmem:[#allocation46_spill] sm:$0xff] }
  0x76   :  { %461 = vmatpush.msra.mxu2 %v3837_v18  ;;  %v3850_v43 = vld [vmem:[#allocation70_spill] sm:$0xff]  ;;  %489 = vmatpush.msra.mxu3 %v2472_v10 }
  0x77   :  { %450 = vmatpush.msra.mxu1 %v3843_v39  ;;  %431 = vmatpush.msra.mxu0 %v3845_v9  ;;  %v3852_v39 = vld [vmem:[#allocation50_spill] sm:$0xff]  ;;  %v3853_v9 = vld [vmem:[#allocation73_spill] sm:$0xff] }
  0x78   :  { %462 = vmatpush.msra.mxu2 %v3840_v21  ;;  %490 = vmatpush.msra.mxu3 %v2480_v5 }
  0x79   :  { %451 = vmatpush.msra.mxu1 %v3846_v47  ;;  %432 = vmatpush.msra.mxu0 %v3848_v53  ;;  %v3855_v47 = vld [vmem:[#allocation54_spill] sm:$0xff]  ;;  %v3856_v53 = vld [vmem:[#allocation76_spill] sm:$0xff] }
  0x7a   :  { %463 = vmatpush.msra.mxu2 %v3844_v41  ;;  %491 = vmatpush.msra.mxu3 %v2489_v7 }
  0x7b   :  { %452 = vmatpush.msra.mxu1 %v3849_v51  ;;  %433 = vmatpush.msra.mxu0 %v3851_v12  ;;  %v3857_v51 = vld [vmem:[#allocation58_spill] sm:$0xff] }
  0x7c   :  { %464 = vmatpush.msra.mxu2 %v3847_v15  ;;  %v3858_v12 = vld [vmem:[#allocation78_spill] sm:$0xff]  ;;  %492 = vmatpush.msra.mxu3 %v2497_v13 }
  0x7d   :  { %453 = vmatpush.msra.mxu1 %v3852_v39  ;;  %434 = vmatpush.msra.mxu0 %v3854_v33  ;;  %v3860_v39 = vld [vmem:[#allocation17_spill] sm:$0xff]  ;;  %v3861_v33 = vld [vmem:[#allocation80_spill] sm:$0xff] }
  0x7e   :  { %465 = vmatpush.msra.mxu2 %v3850_v43  ;;  %493 = vmatpush.msra.mxu3 %v2504_v16 }
  0x7f   :  { %454 = vmatpush.msra.mxu1 %v3855_v47  ;;  %435 = vmatpush.msra.mxu0 %v2454_v49  ;;  %v3862_v47 = vld [vmem:[#allocation18_spill] sm:$0xff] }
  0x80   :  { %466 = vmatpush.msra.mxu2 %v3853_v9  ;;  %494 = vmatpush.msra.mxu3 %v2512_v59 }
  0x81   :  { %455 = vmatpush.msra.mxu1 %v3857_v51  ;;  %564 = vmatpush.msrb.mxu0 %v3859_v24  ;;  %v3863_v51 = vld [vmem:[#allocation20_spill] sm:$0xff]  ;;  %v3864_v24 = vld [vmem:[#allocation81_spill] sm:$0xff] }
  0x82   :  { %467 = vmatpush.msra.mxu2 %v3856_v53  ;;  %495 = vmatpush.msra.mxu3 %v2518_v0 }
  0x83   :  { %584 = vmatpush.msrb.mxu1 %v3860_v39  ;;  %565 = vmatpush.msrb.mxu0 %v2206_v1  ;;  %v3865_v39 = vld [vmem:[#allocation22_spill] sm:$0xff] }
  0x84   :  { %468 = vmatpush.msra.mxu2 %v3858_v12 }
  0x85   :  { %585 = vmatpush.msrb.mxu1 %v3862_v47  ;;  %566 = vmatpush.msrb.mxu0 %v2214_v4  ;;  %v3866_v47 = vld [vmem:[#allocation25_spill] sm:$0xff]  ;;  %v3867_v4 = vld [vmem:[#allocation82_spill] sm:$0xff] }
  0x86   :  { %469 = vmatpush.msra.mxu2 %v3861_v33 }
  0x87   :  { %586 = vmatpush.msrb.mxu1 %v3863_v51  ;;  %567 = vmatpush.msrb.mxu0 %v2224_v8 }
  0x88   :  { %470 = vmatpush.msra.mxu2 %v2467_v37 }
  0x89   :  { %587 = vmatpush.msrb.mxu1 %v3865_v39  ;;  %568 = vmatpush.msrb.mxu0 %v2233_v11  ;;  %v3868_v39 = vmov 0  }
  0x8a   :  { %471 = vmatpush.msra.mxu2 %v3864_v24  ;;  %1805 = vset.pattern.permute.xlu1 %v3868_v39 }
  0x8b   :  { %588 = vmatpush.msrb.mxu1 %v3866_v47  ;;  %569 = vmatpush.msrb.mxu0 %v2242_v14 }
  0x8c   :  { %472 = vmatpush.msra.mxu2 %v2483_v56  ;;  %1806 = vset.pattern.permute.xlu2 %v3868_v39  ;;  %v187_v39 = vlaneseq }
  0x8d   :  { %589 = vmatpush.msrb.mxu1 %v2258_v19  ;;  %570 = vmatpush.msrb.mxu0 %v2251_v17 }
  0x8e   :  { %473 = vmatpush.msra.mxu2 %v3867_v4 }
  0x8f   :  { %590 = vmatpush.msrb.mxu1 %v2267_v22  ;;  %571 = vmatpush.msrb.mxu0 %v2260_v20 }
  0x90   :  { %474 = vmatpush.msra.mxu2 %v2499_v63 }
  0x91   :  { %591 = vmatpush.msrb.mxu1 %v2278_v26  ;;  %572 = vmatpush.msrb.mxu0 %v2269_v23 }
  0x92   :  { %475 = vmatpush.msra.mxu2 %v2507_v61 }
  0x93   :  { %592 = vmatpush.msrb.mxu1 %v2290_v30  ;;  %573 = vmatpush.msrb.mxu0 %v2282_v28 }
  0x95   :  { %593 = vmatpush.msrb.mxu1 %v2302_v34  ;;  %574 = vmatpush.msrb.mxu0 %v2294_v32  ;;  %v191_v34 = vld [vmem:[#allocation2 + $0x8] sm:$0xff] }
  0x97   :  { %594 = vmatpush.msrb.mxu1 %v2314_v38  ;;  %575 = vmatpush.msrb.mxu0 %v2306_v36  ;;  %v2641_v36 = vshrl.u32 %v187_v39, 7 }
  0x99   :  { %595 = vmatpush.msrb.mxu1 %v2326_v42  ;;  %576 = vmatpush.msrb.mxu0 %v2318_v40  ;;  %3869 = vst [vmem:[#allocation60_spill] sm:$0xff] %v2641_v36  ;;  %vm189_vm3 = vcmp.lt.s32.totalorder %v2641_v36, 4  ;;  %v190_v40 = vld [vmem:[#allocation2] sm:$0xff] }
  0x9b   :  { %596 = vmatpush.msrb.mxu1 %v2338_v46  ;;  %577 = vmatpush.msrb.mxu0 %v2330_v44 }
  0x9d   :  { %597 = vmatpush.msrb.mxu1 %v2350_v50  ;;  %578 = vmatpush.msrb.mxu0 %v2342_v48 }
  0x9f   :  { %598 = vmatpush.msrb.mxu1 %v2364_v55  ;;  %579 = vmatpush.msrb.mxu0 %v2354_v52 }
  0xa1   :  { %599 = vmatpush.msrb.mxu1 %v2372_v57 }
  0xb2   :  { %v211_v42 = vpop.f32.mrf.mxu0 }
  0xb5   :  { %v231_v57 = vpop.f32.mrf.mxu1 }
  0xb9   :  { %v271_v46 = vpop.f32.mrf.mxu3 }
  0xba   :  { %v316_v44 = vsel %vm189_vm3, %v211_v42, %v271_v46 }
  0xbb   :  { %v319_v50 = vadd.f32 %v316_v44, %v190_v40 }
  0xbd   :  { %v1762_v38 = vmul.f32 -1.442695, %v319_v50  ;;  %v2651_v50 = vld [vmem:[%s3522_s2] sm:$0xff] }
  0xbf   :  { %1808 = vpow2.f32 %v1762_v38 }
  0xc5   :  { %v1809_v48 = vpop.eup %1808 }
  0xc6   :  { %v327_v55 = vadd.f32 1.0, %v1809_v48 }
  0xc8   :  { %1810 = vrcp.f32 %v327_v55  ;;  %vm334_vm4 = vweird.f32 %v327_v55  ;;  %v340_v40 = vand.u32 2147483648, %v327_v55  ;;  %v338_v46 = vand.u32 2147483647, %v327_v55 }
  0xca   :  { %vm339_vm7 = vcmp.eq.f32.partialorder %v338_v46, 8.507059e+37 }
  0xce   :  { %v1811_v52 = vpop.eup %1810 }
  0xcf   :  { %v330_v32 = vmul.f32 %v1811_v52, %v327_v55  ;;  %vm335_vm5 = vweird.f32 %v1811_v52  ;;  %v192_v55 = vld [vmem:[#allocation2 + $0x10] sm:$0xff] }
  0xd0   :  { %vm336_vm6 = vmor %vm334_vm4, %vm335_vm5 }
  0xd1   :  { %v331_v30 = vsub.f32 1.0, %v330_v32 }
  0xd3   :  { %v332_v20 = vmul.f32 %v1811_v52, %v331_v30 }
  0xd4   :  { %v251_v38 = vpop.f32.mrf.mxu2 }
  0xd5   :  { %v333_v44 = vadd.f32 %v1811_v52, %v332_v20 }
  0xdc   :  { %v291_v39 = vpop.f32.mrf.mxu0 }
  0xdd   :  { %v317_v28 = vsel %vm189_vm3, %v231_v57, %v291_v39 }
  0xde   :  { %v320_v23 = vadd.f32 %v317_v28, %v191_v34 }
  0xdf   :  { %v311_v42 = vpop.f32.mrf.mxu1 }
  0xe0   :  { %v1763_v26 = vmul.f32 -1.442695, %v320_v23  ;;  %v318_v28 = vsel %vm189_vm3, %v251_v38, %v311_v42  ;;  %v341_v23 = vor.u32 1.1754944e-38, %v340_v40 }
  0xe1   :  { %v359_v32 = vadd.f32 %v318_v28, %v2651_v50 }
  0xe2   :  { %1812 = vpow2.f32 %v1763_v26  ;;  %v337_v26 = vsel %vm336_vm6, %v1811_v52, %v333_v44 }
  0xe3   :  { %v342_v34 = vsel %vm339_vm7, %v341_v23, %v337_v26  ;;  %v371_v23 = vpop.permute.xlu0 %370 }
  0xe4   :  { %v360_v20 = vmul.f32 %v359_v32, %v342_v34  ;;  %vm372_vm12 = vcmp.eq.s32.totalorder %v371_v23, 1  ;;  %v3883_v34 = vld [vmem:[#allocation62_spill] sm:$0xff] }
  0xe5   :  { %v3896_v23 = vld [vmem:[#allocation54_spill] sm:$0xff] }
  0xe6   :  { %v361_v22 = vadd.f32 %v360_v20, %v192_v55  ;;  %v3884_v20 = vld [vmem:[#allocation33_spill] sm:$0xff]  ;;  %v3885_v55 = vld [vmem:[#allocation64_spill] sm:$0xff] }
  0xe8   :  { %v1813_v48 = vpop.eup %1812 }
  0xe9   :  { %v328_v30 = vadd.f32 1.0, %v1813_v48 }
  0xeb   :  { %1814 = vrcp.f32 %v328_v30  ;;  %v355_v19 = vand.u32 2147483648, %v328_v30  ;;  %v353_v47 = vand.u32 2147483647, %v328_v30  ;;  %vm349_vm9 = vweird.f32 %v328_v30 }
  0xec   :  { %1816 = vtanh.f32 %v361_v22  ;;  %v3876_v22 = vld [vmem:[#allocation24_spill] sm:$0xff] }
  0xed   :  { %v356_v52 = vor.u32 1.1754944e-38, %v355_v19  ;;  %vm354_vm11 = vcmp.eq.f32.partialorder %v353_v47, 8.507059e+37  ;;  %v3875_v19 = vld [vmem:[#allocation48_spill] sm:$0xff]  ;;  %v3881_v47 = vld [vmem:[#allocation30_spill] sm:$0xff] }
  0xf1   :  { %v1815_v57 = vpop.eup %1814 }
  0xf2   :  { %v345_v39 = vmul.f32 %v1815_v57, %v328_v30  ;;  %vm350_vm8 = vweird.f32 %v1815_v57  ;;  %v1817_v46 = vpop.eup %1816  ;;  %v3882_v30 = vld [vmem:[#allocation79_spill] sm:$0xff] }
  0xf3   :  { %vm351_vm10 = vmor %vm349_vm9, %vm350_vm8 }
  0xf4   :  { %v346_v17 = vsub.f32 1.0, %v345_v39  ;;  %v3887_v39 = vld [vmem:[#allocation66_spill] sm:$0xff] }
  0xf6   :  { %v347_v14 = vmul.f32 %v1815_v57, %v346_v17  ;;  %v3873_v17 = vld [vmem:[#allocation21_spill] sm:$0xff] }
  0xf8   :  { %v348_v38 = vadd.f32 %v1815_v57, %v347_v14  ;;  %v3872_v14 = vld [vmem:[#allocation44_spill] sm:$0xff] }
  0xfa   :  { %v352_v40 = vsel %vm351_vm10, %v1815_v57, %v348_v38  ;;  %v3886_v57 = vld [vmem:[#allocation36_spill] sm:$0xff]  ;;  %v3888_v38 = vld [vmem:[#allocation39_spill] sm:$0xff] }
  0xfb   :  { %v357_v42 = vsel %vm354_vm11, %v356_v52, %v352_v40  ;;  %v3889_v52 = vld [vmem:[#allocation69_spill] sm:$0xff]  ;;  %v3890_v40 = vld [vmem:[#allocation42_spill] sm:$0xff] }
  0xfc   :  { %v363_v44 = vsub.f32 1.0, %v357_v42  ;;  %v365_v28 = vmul.f32 0.0, %v357_v42  ;;  %v3891_v42 = vld [vmem:[#allocation72_spill] sm:$0xff] }
  0xfe   :  { %v364_v48 = vmul.f32 %v1817_v46, %v363_v44  ;;  %v3892_v44 = vld [vmem:[#allocation46_spill] sm:$0xff]  ;;  %v3893_v46 = vld [vmem:[#allocation75_spill] sm:$0xff] }
 0x100   :  { %v366_v26 = vadd.f32 %v365_v28, %v364_v48  ;;  %v3894_v48 = vld [vmem:[#allocation50_spill] sm:$0xff]  ;;  %v3895_v28 = vld [vmem:[#allocation77_spill] sm:$0xff] }
 0x102   :  { %v2657_v32 = vsel %vm372_vm12, %v366_v26, 0.0  ;;  %1765 = vmatmul.msk.f32.vlgmr.msrb.gmra.mxu2 %vm372_vm12, %v366_v26  ;;  %1766 = vmatmul.msk.f32.vlgmr.msrb.gmra.mxu3 %vm372_vm12, %v366_v26 }
 0x103   :  { %1767 = vmatmul.msk.f32.vlgmr.msra.gmra.mxu0 %vm372_vm12, %v366_v26  ;;  %1768 = vmatmul.msk.f32.vlgmr.msra.gmra.mxu1 %vm372_vm12, %v366_v26 }
 0x104   :  { %604 = vmatpush.msrb.mxu2 %v2274_v25  ;;  %624 = vmatpush.msrb.mxu3 %v2208_v2  ;;  %v3870_v2 = vld [vmem:[#allocation19_spill] sm:$0xff]  ;;  %v3877_v25 = vld [vmem:[#allocation74_spill] sm:$0xff] }
 0x105   :  { %644 = vmatpush.msra.mxu0 %v2362_v54  ;;  %664 = vmatpush.msra.mxu1 %v2376_v58 }
 0x106   :  { %605 = vmatpush.msrb.mxu2 %v2280_v27  ;;  %625 = vmatpush.msrb.mxu3 %v2212_v3  ;;  %v3871_v3 = vld [vmem:[#allocation68_spill] sm:$0xff] }
 0x107   :  { %645 = vmatpush.msra.mxu0 %v3837_v18  ;;  %665 = vmatpush.msra.mxu1 %v2386_v62  ;;  %v3878_v27 = vld [vmem:[#allocation52_spill] sm:$0xff] }
 0x108   :  { %606 = vmatpush.msrb.mxu2 %v2292_v31  ;;  %626 = vmatpush.msrb.mxu3 %v2218_v6  ;;  %v3874_v6 = vld [vmem:[#allocation71_spill] sm:$0xff] }
 0x109   :  { %646 = vmatpush.msra.mxu0 %v3840_v21  ;;  %666 = vmatpush.msra.mxu1 %v2398_v60  ;;  %v3879_v31 = vld [vmem:[#allocation27_spill] sm:$0xff] }
 0x10a   :  { %1769 = vmatmul.msk.f32.vlgmr.msra.gmra.mxu2 %vm372_vm12, %v366_v26  ;;  %1770 = vmatmul.msk.f32.vlgmr.msra.gmra.mxu3 %vm372_vm12, %v366_v26  ;;  %v3897_v26 = vld [vmem:[#allocation58_spill] sm:$0xff] }
 0x10b   :  { %607 = vmatpush.msrb.mxu2 %v2304_v35  ;;  %627 = vmatpush.msrb.mxu3 %v3870_v2  ;;  %v3880_v35 = vld [vmem:[#allocation56_spill] sm:$0xff]  ;;  %v3898_v2 = vld [vmem:[#allocation15_spill] sm:$0xff] }
 0x10c   :  { %647 = vmatpush.msra.mxu0 %v3844_v41  ;;  %667 = vmatpush.msra.mxu1 %v3871_v3 }
 0x10d   :  { %608 = vmatpush.msrb.mxu2 %v3872_v14  ;;  %628 = vmatpush.msrb.mxu3 %v3873_v17  ;;  %v3899_v14 = vld [vmem:[#allocation17_spill] sm:$0xff]  ;;  %v3900_v17 = vld [vmem:[#allocation18_spill] sm:$0xff] }
 0x10e   :  { %648 = vmatpush.msra.mxu0 %v3847_v15  ;;  %668 = vmatpush.msra.mxu1 %v3874_v6 }
 0x10f   :  { %609 = vmatpush.msrb.mxu2 %v3875_v19  ;;  %629 = vmatpush.msrb.mxu3 %v3876_v22  ;;  %v3901_v19 = vld [vmem:[#allocation16_spill] sm:$0xff]  ;;  %v3902_v22 = vld [vmem:[#allocation22_spill] sm:$0xff] }
 0x110   :  { %649 = vmatpush.msra.mxu0 %v3850_v43  ;;  %669 = vmatpush.msra.mxu1 %v3877_v25 }
 0x111   :  { %610 = vmatpush.msrb.mxu2 %v3878_v27  ;;  %630 = vmatpush.msrb.mxu3 %v3879_v31  ;;  %v3903_v27 = vld [vmem:[#allocation25_spill] sm:$0xff]  ;;  %v3904_v31 = vld [vmem:[#allocation23_spill] sm:$0xff] }
 0x112   :  { %650 = vmatpush.msra.mxu0 %v3853_v9  ;;  %670 = vmatpush.msra.mxu1 %v2441_v29 }
 0x113   :  { %611 = vmatpush.msrb.mxu2 %v3880_v35  ;;  %631 = vmatpush.msrb.mxu3 %v3881_v47  ;;  %v3905_v35 = vld [vmem:[#allocation28_spill] sm:$0xff]  ;;  %v3906_v47 = vld [vmem:[#allocation26_spill] sm:$0xff] }
 0x114   :  { %651 = vmatpush.msra.mxu0 %v3856_v53  ;;  %671 = vmatpush.msra.mxu1 %v3882_v30 }
 0x115   :  { %612 = vmatpush.msrb.mxu2 %v3883_v34  ;;  %632 = vmatpush.msrb.mxu3 %v3884_v20  ;;  %v3908_v34 = vld [vmem:[#allocation29_spill] sm:$0xff]  ;;  %v3909_v20 = vld [vmem:[#allocation34_spill] sm:$0xff] }
 0x116   :  { %652 = vmatpush.msra.mxu0 %v3858_v12  ;;  %672 = vmatpush.msra.mxu1 %v2465_v45 }
 0x117   :  { %613 = vmatpush.msrb.mxu2 %v3885_v55  ;;  %633 = vmatpush.msrb.mxu3 %v3886_v57  ;;  %v3912_v57 = vld [vmem:[#allocation35_spill] sm:$0xff] }
 0x118   :  { %653 = vmatpush.msra.mxu0 %v3861_v33  ;;  %673 = vmatpush.msra.mxu1 %v2472_v10 }
 0x119   :  { %614 = vmatpush.msrb.mxu2 %v3887_v39  ;;  %634 = vmatpush.msrb.mxu3 %v3888_v38  ;;  %v3914_v38 = vld [vmem:[#allocation38_spill] sm:$0xff] }
 0x11a   :  { %654 = vmatpush.msra.mxu0 %v2467_v37  ;;  %674 = vmatpush.msra.mxu1 %v2480_v5 }
 0x11b   :  { %615 = vmatpush.msrb.mxu2 %v3889_v52  ;;  %635 = vmatpush.msrb.mxu3 %v3890_v40  ;;  %v3915_v40 = vld [vmem:[#allocation43_spill] sm:$0xff] }
 0x11c   :  { %655 = vmatpush.msra.mxu0 %v3864_v24  ;;  %675 = vmatpush.msra.mxu1 %v2489_v7 }
 0x11d   :  { %616 = vmatpush.msrb.mxu2 %v3891_v42  ;;  %636 = vmatpush.msrb.mxu3 %v3892_v44  ;;  %v3916_v44 = vld [vmem:[#allocation41_spill] sm:$0xff] }
 0x11e   :  { %656 = vmatpush.msra.mxu0 %v2483_v56  ;;  %676 = vmatpush.msra.mxu1 %v2497_v13 }
 0x11f   :  { %617 = vmatpush.msrb.mxu2 %v3893_v46  ;;  %637 = vmatpush.msrb.mxu3 %v3894_v48  ;;  %v3917_v48 = vld [vmem:[#allocation47_spill] sm:$0xff] }
 0x120   :  { %657 = vmatpush.msra.mxu0 %v3867_v4  ;;  %677 = vmatpush.msra.mxu1 %v2504_v16 }
 0x121   :  { %618 = vmatpush.msrb.mxu2 %v3895_v28  ;;  %638 = vmatpush.msrb.mxu3 %v3896_v23  ;;  %v3918_v23 = vld [vmem:[#allocation45_spill] sm:$0xff] }
 0x122   :  { %658 = vmatpush.msra.mxu0 %v2499_v63  ;;  %678 = vmatpush.msra.mxu1 %v2512_v59 }
 0x123   :  { %619 = vmatpush.msrb.mxu2 %v2454_v49  ;;  %639 = vmatpush.msrb.mxu3 %v3897_v26  ;;  %v3919_v26 = vld [vmem:[#allocation51_spill] sm:$0xff] }
 0x124   :  { %659 = vmatpush.msra.mxu0 %v2507_v61  ;;  %679 = vmatpush.msra.mxu1 %v2518_v0 }
 0x125   :  { %748 = vmatpush.msra.mxu2 %v3898_v2  ;;  %768 = vmatpush.msra.mxu3 %v3899_v14  ;;  %v3920_v2 = vld [vmem:[#allocation49_spill] sm:$0xff]  ;;  %v3921_v14 = vld [vmem:[#allocation55_spill] sm:$0xff] }
 0x127   :  { %749 = vmatpush.msra.mxu2 %v2206_v1  ;;  %769 = vmatpush.msra.mxu3 %v3900_v17  ;;  %v3907_v1 = vld [vmem:[#allocation31_spill] sm:$0xff]  ;;  %v3922_v17 = vld [vmem:[#allocation53_spill] sm:$0xff] }
 0x129   :  { %750 = vmatpush.msra.mxu2 %v3901_v19  ;;  %770 = vmatpush.msra.mxu3 %v3863_v51  ;;  %v3910_v51 = vld [vmem:[#allocation32_spill] sm:$0xff]  ;;  %v3923_v19 = vld [vmem:[#allocation59_spill] sm:$0xff] }
 0x12b   :  { %751 = vmatpush.msra.mxu2 %v2224_v8  ;;  %771 = vmatpush.msra.mxu3 %v3902_v22  ;;  %v3911_v8 = vld [vmem:[#allocation37_spill] sm:$0xff] }
 0x12c   :  { %v3924_v22 = vld [vmem:[#allocation57_spill] sm:$0xff] }
 0x12d   :  { %752 = vmatpush.msra.mxu2 %v2233_v11  ;;  %772 = vmatpush.msra.mxu3 %v3903_v27  ;;  %v3913_v11 = vld [vmem:[#allocation40_spill] sm:$0xff]  ;;  %v3925_v27 = vld [vmem:[#allocation61_spill] sm:$0xff] }
 0x12f   :  { %753 = vmatpush.msra.mxu2 %v3904_v31  ;;  %773 = vmatpush.msra.mxu3 %v3905_v35  ;;  %v375_v31 = vld [vmem:[#allocation2 + $0x18] sm:$0xff] }
 0x131   :  { %754 = vmatpush.msra.mxu2 %v3906_v47  ;;  %774 = vmatpush.msra.mxu3 %v3907_v1 }
 0x133   :  { %755 = vmatpush.msra.mxu2 %v3908_v34  ;;  %775 = vmatpush.msra.mxu3 %v3909_v20 }
 0x135   :  { %756 = vmatpush.msra.mxu2 %v3910_v51  ;;  %776 = vmatpush.msra.mxu3 %v3911_v8  ;;  %v376_v51 = vld [vmem:[#allocation2 + $0x20] sm:$0xff] }
 0x137   :  { %757 = vmatpush.msra.mxu2 %v3912_v57  ;;  %777 = vmatpush.msra.mxu3 %v3913_v11 }
 0x139   :  { %758 = vmatpush.msra.mxu2 %v3914_v38  ;;  %778 = vmatpush.msra.mxu3 %v3915_v40 }
 0x13b   :  { %759 = vmatpush.msra.mxu2 %v3916_v44  ;;  %779 = vmatpush.msra.mxu3 %v3917_v48 }
 0x13d   :  { %760 = vmatpush.msra.mxu2 %v3918_v23  ;;  %780 = vmatpush.msra.mxu3 %v3919_v26 }
 0x13f   :  { %761 = vmatpush.msra.mxu2 %v3920_v2  ;;  %781 = vmatpush.msra.mxu3 %v3921_v14 }
 0x141   :  { %762 = vmatpush.msra.mxu2 %v3922_v17  ;;  %782 = vmatpush.msra.mxu3 %v3923_v19 }
 0x143   :  { %763 = vmatpush.msra.mxu2 %v3924_v22  ;;  %783 = vmatpush.msra.mxu3 %v3925_v27  ;;  %v1773_v22 = vld [vmem:[%s3521_s1 + $0x10] sm:$0xff] }
 0x144   :  { %vm735_vm13 = vcmp.gt.f32.partialorder %v1773_v22, 0.0 }
 0x180   :  { %v457_v35 = vpop.f32.mrf.mxu1 }
 0x185   :  { %v397_v47 = vpop.f32.mrf.mxu2  ;;  %v417_v8 = vpop.f32.mrf.mxu3 }
 0x186   :  { %v500_v1 = vsel %vm189_vm3, %v397_v47, %v457_v35 }
 0x187   :  { %v503_v34 = vadd.f32 %v500_v1, %v375_v31  ;;  %v437_v31 = vpop.f32.mrf.mxu0  ;;  %v3926_v1 = vmov 0  }
 0x189   :  { %v1771_v20 = vmul.f32 -1.442695, %v503_v34  ;;  %v736_v34 = vsel %vm735_vm13, 1, %v3926_v1 }
 0x18a   :  { %738 = vperm.xlu1 %1805, %v736_v34  }
 0x18b   :  { %1818 = vpow2.f32 %v1771_v20  ;;  %v1776_v20 = vld [vmem:[%s3521_s1 + $0x18] sm:$0xff] }
 0x18c   :  { %vm919_vm1 = vcmp.gt.f32.partialorder %v1776_v20, 0.0 }
 0x18d   :  { %v477_v57 = vpop.f32.mrf.mxu2  ;;  %v497_v17 = vpop.f32.mrf.mxu3  ;;  %v920_v0 = vsel %vm919_vm1, 1, %v3926_v1 }
 0x18e   :  { %v501_v11 = vsel %vm189_vm3, %v417_v8, %v477_v57 }
 0x18f   :  { %v504_v38 = vadd.f32 %v501_v11, %v376_v51  ;;  %v502_v51 = vsel %vm189_vm3, %v437_v31, %v497_v17 }
 0x191   :  { %v1819_v40 = vpop.eup %1818  ;;  %v1772_v44 = vmul.f32 -1.442695, %v504_v38 }
 0x192   :  { %v511_v48 = vadd.f32 1.0, %v1819_v40  ;;  %922 = vperm.xlu1 %1805, %v920_v0  }
 0x193   :  { %1820 = vpow2.f32 %v1772_v44  ;;  %v543_v44 = vadd.f32 %v502_v51, %v2651_v50 }
 0x194   :  { %1822 = vrcp.f32 %v511_v48  ;;  %v524_v27 = vand.u32 2147483648, %v511_v48  ;;  %v522_v47 = vand.u32 2147483647, %v511_v48  ;;  %vm518_vm15 = vweird.f32 %v511_v48 }
 0x196   :  { %v525_v11 = vor.u32 1.1754944e-38, %v524_v27  ;;  %vm523_vm2 = vcmp.eq.f32.partialorder %v522_v47, 8.507059e+37  ;;  %v1788_v27 = vld [vmem:[%s3521_s1 + $0x38] sm:$0xff] }
 0x197   :  { %vm1655_vm7 = vcmp.gt.f32.partialorder %v1788_v27, 0.0  ;;  %v2973_v27 = vld [vmem:[#allocation5 + $0xc8] sm:$0xff] }
 0x198   :  { %v1656_v51 = vsel %vm1655_vm7, 1, %v3926_v1  ;;  %3958 = vst [vmem:[#allocation69_spill] sm:$0xff] %v2973_v27 }
 0x199   :  { %v1821_v23 = vpop.eup %1820 }
 0x19a   :  { %v1823_v26 = vpop.eup %1822  ;;  %v512_v2 = vadd.f32 1.0, %v1821_v23  ;;  %v377_v23 = vld [vmem:[#allocation2 + $0x28] sm:$0xff]  ;;  %1658 = vperm.xlu1 %1805, %v1656_v51   ;;  %v2991_v51 = vld [vmem:[#allocation5 + $0x38] sm:$0xff] }
 0x19b   :  { %v514_v14 = vmul.f32 %v1823_v26, %v511_v48  ;;  %vm519_vm14 = vweird.f32 %v1823_v26  ;;  %3964 = vst [vmem:[#allocation77_spill] sm:$0xff] %v2991_v51 }
 0x19c   :  { %1824 = vrcp.f32 %v512_v2  ;;  %vm520_vm0 = vmor %vm518_vm15, %vm519_vm14  ;;  %v539_v36 = vand.u32 2147483648, %v512_v2  ;;  %v537_v31 = vand.u32 2147483647, %v512_v2  ;;  %vm533_vm5 = vweird.f32 %v512_v2 }
 0x19d   :  { %v515_v19 = vsub.f32 1.0, %v514_v14 }
 0x19e   :  { %vm538_vm8 = vcmp.eq.f32.partialorder %v537_v31, 8.507059e+37  ;;  %v2967_v31 = vld [vmem:[#allocation5 + $0xf8] sm:$0xff] }
 0x19f   :  { %v516_v35 = vmul.f32 %v1823_v26, %v515_v19  ;;  %3956 = vst [vmem:[#allocation66_spill] sm:$0xff] %v2967_v31 }
 0x1a1   :  { %v517_v8 = vadd.f32 %v1823_v26, %v516_v35  ;;  %v540_v35 = vor.u32 1.1754944e-38, %v539_v36  ;;  %v2788_v36 = vld [vmem:[#allocation5 + $0x2e0] sm:$0xff] }
 0x1a2   :  { %v1825_v57 = vpop.eup %1824 }
 0x1a3   :  { %v529_v38 = vmul.f32 %v1825_v57, %v512_v2  ;;  %v521_v40 = vsel %vm520_vm0, %v1823_v26, %v517_v8  ;;  %vm534_vm4 = vweird.f32 %v1825_v57  ;;  %v2791_v2 = vld [vmem:[#allocation5 + $0x2e8] sm:$0xff] }
 0x1a4   :  { %v526_v14 = vsel %vm523_vm2, %v525_v11, %v521_v40  ;;  %vm535_vm6 = vmor %vm533_vm5, %vm534_vm4  ;;  %v555_v40 = vpop.permute.xlu0 %554 }
 0x1a5   :  { %v530_v19 = vsub.f32 1.0, %v529_v38  ;;  %v544_v22 = vmul.f32 %v543_v44, %v526_v14  ;;  %vm556_vm9 = vcmp.eq.s32.totalorder %v555_v40, 1  ;;  %v2807_v14 = vld [vmem:[#allocation5 + $0x288] sm:$0xff]  ;;  %v559_v40 = vld [vmem:[#allocation2 + $0x30] sm:$0xff] }
 0x1a7   :  { %v531_v17 = vmul.f32 %v1825_v57, %v530_v19  ;;  %v545_v48 = vadd.f32 %v544_v22, %v377_v23  ;;  %v2804_v23 = vld [vmem:[#allocation5 + $0x280] sm:$0xff]  ;;  %v2961_v22 = vld [vmem:[#allocation5 + $0x128] sm:$0xff] }
 0x1a8   :  { %v2958_v19 = vld [vmem:[#allocation5 + $0x120] sm:$0xff]  ;;  %3954 = vst [vmem:[#allocation64_spill] sm:$0xff] %v2961_v22 }
 0x1a9   :  { %v532_v26 = vadd.f32 %v1825_v57, %v531_v17  ;;  %1826 = vtanh.f32 %v545_v48  ;;  %3953 = vst [vmem:[#allocation33_spill] sm:$0xff] %v2958_v19  ;;  %v2964_v17 = vld [vmem:[#allocation5 + $0xf0] sm:$0xff]  ;;  %v2970_v48 = vld [vmem:[#allocation5 + $0xc0] sm:$0xff] }
 0x1aa   :  { %3955 = vst [vmem:[#allocation36_spill] sm:$0xff] %v2964_v17 }
 0x1ab   :  { %v536_v47 = vsel %vm535_vm6, %v1825_v57, %v532_v26  ;;  %v2799_v57 = vld [vmem:[#allocation5 + $0x2b8] sm:$0xff]  ;;  %3957 = vst [vmem:[#allocation39_spill] sm:$0xff] %v2970_v48  ;;  %v2976_v26 = vld [vmem:[#allocation5 + $0x90] sm:$0xff] }
 0x1ac   :  { %v541_v34 = vsel %vm538_vm8, %v540_v35, %v536_v47  ;;  %3959 = vst [vmem:[#allocation42_spill] sm:$0xff] %v2976_v26  ;;  %v2979_v35 = vld [vmem:[#allocation5 + $0x98] sm:$0xff]  ;;  %v2982_v47 = vld [vmem:[#allocation5 + $0x60] sm:$0xff] }
 0x1ad   :  { %v547_v20 = vsub.f32 1.0, %v541_v34  ;;  %v549_v38 = vmul.f32 %v541_v34, %v2657_v32  ;;  %3960 = vst [vmem:[#allocation72_spill] sm:$0xff] %v2979_v35  ;;  %v2985_v34 = vld [vmem:[#allocation5 + $0x68] sm:$0xff] }
 0x1ae   :  { %3961 = vst [vmem:[#allocation46_spill] sm:$0xff] %v2982_v47 }
 0x1af   :  { %v1827_v8 = vpop.eup %1826  ;;  %3962 = vst [vmem:[#allocation75_spill] sm:$0xff] %v2985_v34 }
 0x1b0   :  { %v548_v11 = vmul.f32 %v1827_v8, %v547_v20  ;;  %v2988_v20 = vld [vmem:[#allocation5 + $0x30] sm:$0xff]  ;;  %v2994_v8 = vld [vmem:[#allocation5] sm:$0xff] }
 0x1b1   :  { %3963 = vst [vmem:[#allocation50_spill] sm:$0xff] %v2988_v20 }
 0x1b2   :  { %v550_v44 = vadd.f32 %v549_v38, %v548_v11  ;;  %3965 = vst [vmem:[#allocation54_spill] sm:$0xff] %v2994_v8  ;;  %v2997_v11 = vld [vmem:[#allocation5 + $0x8] sm:$0xff] }
 0x1b3   :  { %3966 = vst [vmem:[#allocation58_spill] sm:$0xff] %v2997_v11 }
 0x1b4   :  { %v2782_v0 = vsel %vm556_vm9, %v550_v44, %v2657_v32  ;;  %v2796_v32 = vld [vmem:[#allocation5 + $0x2b0] sm:$0xff] }
 0x1b5   :  { %580 = vmatmul.f32.vlgmr.msrb.gmra.mxu0 %v2782_v0  ;;  %600 = vmatmul.f32.vlgmr.msrb.gmra.mxu1 %v2782_v0 }
 0x1b6   :  { %620 = vmatmul.f32.vlgmr.msrb.gmra.mxu2 %v2782_v0  ;;  %640 = vmatmul.f32.vlgmr.msrb.gmra.mxu3 %v2782_v0 }
 0x1b7   :  { %788 = vmatpush.msrb.mxu0 %v2788_v36  ;;  %808 = vmatpush.msrb.mxu1 %v2791_v2 }
 0x1b8   :  { %828 = vmatpush.msrb.mxu2 %v2362_v54  ;;  %848 = vmatpush.msrb.mxu3 %v2376_v58  ;;  %v2814_v54 = vld [vmem:[#allocation5 + $0x250] sm:$0xff]  ;;  %v2822_v58 = vld [vmem:[#allocation5 + $0x220] sm:$0xff] }
 0x1b9   :  { %789 = vmatpush.msrb.mxu0 %v2796_v32  ;;  %809 = vmatpush.msrb.mxu1 %v2799_v57 }
 0x1ba   :  { %829 = vmatpush.msrb.mxu2 %v3837_v18  ;;  %849 = vmatpush.msrb.mxu3 %v2386_v62  ;;  %v2817_v18 = vld [vmem:[#allocation5 + $0x258] sm:$0xff] }
 0x1bb   :  { %790 = vmatpush.msrb.mxu0 %v2804_v23  ;;  %810 = vmatpush.msrb.mxu1 %v2807_v14  ;;  %v2833_v62 = vld [vmem:[#allocation5 + $0x1f8] sm:$0xff] }
 0x1bc   :  { %830 = vmatpush.msrb.mxu2 %v3840_v21  ;;  %850 = vmatpush.msrb.mxu3 %v2398_v60  ;;  %v2825_v21 = vld [vmem:[#allocation5 + $0x228] sm:$0xff]  ;;  %v2830_v60 = vld [vmem:[#allocation5 + $0x1f0] sm:$0xff] }
 0x1bd   :  { %660 = vmatmul.f32.vlgmr.msra.gmra.mxu0 %v2782_v0  ;;  %680 = vmatmul.f32.vlgmr.msra.gmra.mxu1 %v2782_v0 }
 0x1be   :  { %791 = vmatpush.msrb.mxu0 %v2814_v54  ;;  %811 = vmatpush.msrb.mxu1 %v2817_v18 }
 0x1bf   :  { %831 = vmatpush.msrb.mxu2 %v3844_v41  ;;  %851 = vmatpush.msrb.mxu3 %v3871_v3  ;;  %v2838_v41 = vld [vmem:[#allocation5 + $0x1c0] sm:$0xff]  ;;  %v2841_v3 = vld [vmem:[#allocation5 + $0x1c8] sm:$0xff] }
 0x1c0   :  { %792 = vmatpush.msrb.mxu0 %v2822_v58  ;;  %812 = vmatpush.msrb.mxu1 %v2825_v21 }
 0x1c1   :  { %832 = vmatpush.msrb.mxu2 %v3847_v15  ;;  %852 = vmatpush.msrb.mxu3 %v3874_v6  ;;  %v2846_v15 = vld [vmem:[#allocation5 + $0x190] sm:$0xff]  ;;  %v2849_v6 = vld [vmem:[#allocation5 + $0x198] sm:$0xff] }
 0x1c2   :  { %793 = vmatpush.msrb.mxu0 %v2830_v60  ;;  %813 = vmatpush.msrb.mxu1 %v2833_v62 }
 0x1c3   :  { %833 = vmatpush.msrb.mxu2 %v3850_v43  ;;  %853 = vmatpush.msrb.mxu3 %v3877_v25  ;;  %v2854_v43 = vld [vmem:[#allocation5 + $0x160] sm:$0xff]  ;;  %v2857_v25 = vld [vmem:[#allocation5 + $0x168] sm:$0xff] }
 0x1c4   :  { %794 = vmatpush.msrb.mxu0 %v2838_v41  ;;  %814 = vmatpush.msrb.mxu1 %v2841_v3 }
 0x1c5   :  { %834 = vmatpush.msrb.mxu2 %v3853_v9  ;;  %854 = vmatpush.msrb.mxu3 %v2441_v29  ;;  %v2863_v9 = vld [vmem:[#allocation5 + $0x138] sm:$0xff]  ;;  %v2922_v29 = vld [vmem:[#allocation5 + $0x240] sm:$0xff] }
 0x1c6   :  { %795 = vmatpush.msrb.mxu0 %v2846_v15  ;;  %815 = vmatpush.msrb.mxu1 %v2849_v6  ;;  %3927 = vst [vmem:[#allocation63_spill] sm:$0xff] %v2863_v9 }
 0x1c7   :  { %835 = vmatpush.msrb.mxu2 %v3856_v53  ;;  %855 = vmatpush.msrb.mxu3 %v3882_v30  ;;  %v2869_v53 = vld [vmem:[#allocation5 + $0x108] sm:$0xff]  ;;  %3941 = vst [vmem:[#allocation44_spill] sm:$0xff] %v2922_v29 }
 0x1c8   :  { %796 = vmatpush.msrb.mxu0 %v2854_v43  ;;  %816 = vmatpush.msrb.mxu1 %v2857_v25  ;;  %3928 = vst [vmem:[#allocation65_spill] sm:$0xff] %v2869_v53  ;;  %v2937_v30 = vld [vmem:[#allocation5 + $0x1e8] sm:$0xff] }
 0x1c9   :  { %836 = vmatpush.msrb.mxu2 %v3858_v12  ;;  %856 = vmatpush.msrb.mxu3 %v2465_v45  ;;  %v2875_v12 = vld [vmem:[#allocation5 + $0xd8] sm:$0xff]  ;;  %v2910_v45 = vld [vmem:[#allocation5 + $0x2a0] sm:$0xff]  ;;  %3946 = vst [vmem:[#allocation74_spill] sm:$0xff] %v2937_v30 }
 0x1ca   :  { %797 = vmatpush.msrb.mxu0 %v3885_v55  ;;  %817 = vmatpush.msrb.mxu1 %v2863_v9  ;;  %3929 = vst [vmem:[#allocation67_spill] sm:$0xff] %v2875_v12  ;;  %v2940_v55 = vld [vmem:[#allocation5 + $0x1b0] sm:$0xff] }
 0x1cb   :  { %837 = vmatpush.msrb.mxu2 %v3861_v33  ;;  %857 = vmatpush.msrb.mxu3 %v2472_v10  ;;  %v2881_v10 = vld [vmem:[#allocation5 + $0xa8] sm:$0xff]  ;;  %v2887_v33 = vld [vmem:[#allocation5 + $0x78] sm:$0xff]  ;;  %3937 = vst [vmem:[#allocation81_spill] sm:$0xff] %v2910_v45 }
 0x1cc   :  { %798 = vmatpush.msrb.mxu0 %v3887_v39  ;;  %818 = vmatpush.msrb.mxu1 %v2869_v53  ;;  %3930 = vst [vmem:[#allocation70_spill] sm:$0xff] %v2881_v10  ;;  %v2943_v39 = vld [vmem:[#allocation5 + $0x1b8] sm:$0xff] }
 0x1cd   :  { %838 = vmatpush.msrb.mxu2 %v2467_v37  ;;  %858 = vmatpush.msrb.mxu3 %v2480_v5  ;;  %3931 = vst [vmem:[#allocation73_spill] sm:$0xff] %v2887_v33  ;;  %v2907_v37 = vld [vmem:[#allocation5 + $0x2d8] sm:$0xff]  ;;  %v2928_v5 = vld [vmem:[#allocation5 + $0x210] sm:$0xff] }
 0x1ce   :  { %799 = vmatpush.msrb.mxu0 %v3889_v52  ;;  %819 = vmatpush.msrb.mxu1 %v2875_v12  ;;  %3936 = vst [vmem:[#allocation20_spill] sm:$0xff] %v2907_v37  ;;  %v2946_v52 = vld [vmem:[#allocation5 + $0x180] sm:$0xff] }
 0x1cf   :  { %839 = vmatpush.msrb.mxu2 %v3864_v24  ;;  %859 = vmatpush.msrb.mxu3 %v2489_v7  ;;  %v2893_v24 = vld [vmem:[#allocation5 + $0x48] sm:$0xff]  ;;  %3943 = vst [vmem:[#allocation71_spill] sm:$0xff] %v2928_v5  ;;  %v2931_v7 = vld [vmem:[#allocation5 + $0x218] sm:$0xff] }
 0x1d0   :  { %800 = vmatpush.msrb.mxu0 %v3891_v42  ;;  %820 = vmatpush.msrb.mxu1 %v2881_v10  ;;  %3932 = vst [vmem:[#allocation76_spill] sm:$0xff] %v2893_v24  ;;  %v2949_v42 = vld [vmem:[#allocation5 + $0x188] sm:$0xff] }
 0x1d1   :  { %840 = vmatpush.msrb.mxu2 %v2483_v56  ;;  %860 = vmatpush.msrb.mxu3 %v2497_v13  ;;  %v2899_v13 = vld [vmem:[#allocation5 + $0x18] sm:$0xff]  ;;  %v2916_v56 = vld [vmem:[#allocation5 + $0x270] sm:$0xff]  ;;  %3944 = vst [vmem:[#allocation48_spill] sm:$0xff] %v2931_v7 }
 0x1d2   :  { %801 = vmatpush.msrb.mxu0 %v3893_v46  ;;  %821 = vmatpush.msrb.mxu1 %v2887_v33  ;;  %3933 = vst [vmem:[#allocation78_spill] sm:$0xff] %v2899_v13  ;;  %v2952_v46 = vld [vmem:[#allocation5 + $0x150] sm:$0xff] }
 0x1d3   :  { %841 = vmatpush.msrb.mxu2 %v3867_v4  ;;  %861 = vmatpush.msrb.mxu3 %v2504_v16  ;;  %v3934_v4 = vld [vmem:[#allocation83_spill] sm:$0xff]  ;;  %v2904_v16 = vld [vmem:[#allocation5 + $0x2d0] sm:$0xff]  ;;  %3939 = vst [vmem:[#allocation19_spill] sm:$0xff] %v2916_v56 }
 0x1d4   :  { %802 = vmatpush.msrb.mxu0 %v3895_v28  ;;  %822 = vmatpush.msrb.mxu1 %v2893_v24  ;;  %3935 = vst [vmem:[#allocation80_spill] sm:$0xff] %v2904_v16  ;;  %v2955_v28 = vld [vmem:[#allocation5 + $0x158] sm:$0xff] }
 0x1d5   :  { %842 = vmatpush.msrb.mxu2 %v2499_v63  ;;  %862 = vmatpush.msrb.mxu3 %v2512_v59  ;;  %v2925_v63 = vld [vmem:[#allocation5 + $0x248] sm:$0xff]  ;;  %v2934_v59 = vld [vmem:[#allocation5 + $0x1e0] sm:$0xff]  ;;  %3947 = vst [vmem:[#allocation52_spill] sm:$0xff] %v2940_v55 }
 0x1d6   :  { %803 = vmatpush.msrb.mxu0 %v2454_v49  ;;  %823 = vmatpush.msrb.mxu1 %v2899_v13  ;;  %v2913_v49 = vld [vmem:[#allocation5 + $0x2a8] sm:$0xff]  ;;  %3942 = vst [vmem:[#allocation21_spill] sm:$0xff] %v2925_v63 }
 0x1d7   :  { %843 = vmatpush.msrb.mxu2 %v2507_v61  ;;  %863 = vmatpush.msrb.mxu3 %v3934_v4  ;;  %3938 = vst [vmem:[#allocation82_spill] sm:$0xff] %v2913_v49  ;;  %v2919_v61 = vld [vmem:[#allocation5 + $0x278] sm:$0xff] }
 0x1d8   :  { %932 = vmatpush.msra.mxu0 %v2904_v16  ;;  %952 = vmatpush.msra.mxu1 %v2907_v37  ;;  %3940 = vst [vmem:[#allocation68_spill] sm:$0xff] %v2919_v61  ;;  %v560_v4 = vld [vmem:[#allocation2 + $0x38] sm:$0xff] }
 0x1d9   :  { %3945 = vst [vmem:[#allocation24_spill] sm:$0xff] %v2934_v59 }
 0x1da   :  { %933 = vmatpush.msra.mxu0 %v2910_v45  ;;  %953 = vmatpush.msra.mxu1 %v2913_v49  ;;  %3948 = vst [vmem:[#allocation27_spill] sm:$0xff] %v2943_v39 }
 0x1db   :  { %3949 = vst [vmem:[#allocation56_spill] sm:$0xff] %v2946_v52 }
 0x1dc   :  { %934 = vmatpush.msra.mxu0 %v2916_v56  ;;  %954 = vmatpush.msra.mxu1 %v2919_v61  ;;  %3950 = vst [vmem:[#allocation30_spill] sm:$0xff] %v2949_v42 }
 0x1dd   :  { %3951 = vst [vmem:[#allocation79_spill] sm:$0xff] %v2952_v46 }
 0x1de   :  { %935 = vmatpush.msra.mxu0 %v2922_v29  ;;  %955 = vmatpush.msra.mxu1 %v2925_v63  ;;  %3952 = vst [vmem:[#allocation62_spill] sm:$0xff] %v2955_v28 }
 0x1e0   :  { %936 = vmatpush.msra.mxu0 %v2928_v5  ;;  %956 = vmatpush.msra.mxu1 %v2931_v7 }
 0x1e2   :  { %937 = vmatpush.msra.mxu0 %v2934_v59  ;;  %957 = vmatpush.msra.mxu1 %v2937_v30 }
 0x1e4   :  { %938 = vmatpush.msra.mxu0 %v2940_v55  ;;  %958 = vmatpush.msra.mxu1 %v2943_v39 }
 0x1e6   :  { %939 = vmatpush.msra.mxu0 %v2946_v52  ;;  %959 = vmatpush.msra.mxu1 %v2949_v42 }
 0x1e8   :  { %940 = vmatpush.msra.mxu0 %v2952_v46  ;;  %960 = vmatpush.msra.mxu1 %v2955_v28 }
 0x1ea   :  { %941 = vmatpush.msra.mxu0 %v2958_v19  ;;  %961 = vmatpush.msra.mxu1 %v2961_v22 }
 0x1ec   :  { %942 = vmatpush.msra.mxu0 %v2964_v17  ;;  %962 = vmatpush.msra.mxu1 %v2967_v31 }
 0x1ee   :  { %943 = vmatpush.msra.mxu0 %v2970_v48  ;;  %963 = vmatpush.msra.mxu1 %v2973_v27 }
 0x1f0   :  { %944 = vmatpush.msra.mxu0 %v2976_v26  ;;  %964 = vmatpush.msra.mxu1 %v2979_v35 }
 0x1f2   :  { %945 = vmatpush.msra.mxu0 %v2982_v47  ;;  %965 = vmatpush.msra.mxu1 %v2985_v34 }
 0x1f4   :  { %946 = vmatpush.msra.mxu0 %v2988_v20  ;;  %966 = vmatpush.msra.mxu1 %v2991_v51 }
 0x1f6   :  { %947 = vmatpush.msra.mxu0 %v2994_v8  ;;  %967 = vmatpush.msra.mxu1 %v2997_v11 }
 0x232   :  { %v581_v38 = vpop.f32.mrf.mxu0  ;;  %v601_v1 = vpop.f32.mrf.mxu1 }
 0x239   :  { %v641_v44 = vpop.f32.mrf.mxu3 }
 0x23a   :  { %v684_v20 = vsel %vm189_vm3, %v581_v38, %v641_v44  ;;  %v661_v47 = vpop.f32.mrf.mxu0  ;;  %v681_v44 = vpop.f32.mrf.mxu1 }
 0x23b   :  { %v687_v35 = vadd.f32 %v684_v20, %v559_v40  ;;  %v685_v51 = vsel %vm189_vm3, %v601_v1, %v661_v47  ;;  %v621_v1 = vpop.f32.mrf.mxu2 }
 0x23c   :  { %v688_v26 = vadd.f32 %v685_v51, %v560_v4  ;;  %v561_v4 = vld [vmem:[#allocation2 + $0x40] sm:$0xff] }
 0x23d   :  { %v1774_v27 = vmul.f32 -1.442695, %v687_v35 }
 0x23e   :  { %v1775_v8 = vmul.f32 -1.442695, %v688_v26 }
 0x23f   :  { %1828 = vpow2.f32 %v1774_v27  ;;  %v686_v27 = vsel %vm189_vm3, %v621_v1, %v681_v44  ;;  %v739_v1 = vpop.permute.xlu1 %738 }
 0x240   :  { %1830 = vpow2.f32 %v1775_v8  ;;  %vm740_vm2 = vcmp.eq.s32.totalorder %v739_v1, 1  ;;  %v3096_v1 = vld [vmem:[#allocation5 + $0x148] sm:$0xff] }
 0x241   :  { %3969 = vst [vmem:[#allocation17_spill] sm:$0xff] %v3096_v1 }
 0x245   :  { %v1829_v48 = vpop.eup %1828 }
 0x246   :  { %v1831_v11 = vpop.eup %1830  ;;  %v695_v31 = vadd.f32 1.0, %v1829_v48 }
 0x247   :  { %v696_v17 = vadd.f32 1.0, %v1831_v11  ;;  %v727_v11 = vadd.f32 %v686_v27, %v2651_v50 }
 0x248   :  { %1832 = vrcp.f32 %v695_v31  ;;  %v708_v46 = vand.u32 2147483648, %v695_v31  ;;  %v706_v26 = vand.u32 2147483647, %v695_v31  ;;  %vm702_vm11 = vweird.f32 %v695_v31 }
 0x249   :  { %1834 = vrcp.f32 %v696_v17  ;;  %vm717_vm15 = vweird.f32 %v696_v17  ;;  %v721_v52 = vand.u32 2147483647, %v696_v17 }
 0x24a   :  { %v709_v51 = vor.u32 1.1754944e-38, %v708_v46  ;;  %vm707_vm13 = vcmp.eq.f32.partialorder %v706_v26, 8.507059e+37 }
 0x24b   :  { %vm722_vm1 = vcmp.eq.f32.partialorder %v721_v52, 8.507059e+37  ;;  %v3020_v52 = vld [vmem:[#allocation5 + $0x2f8] sm:$0xff] }
 0x24e   :  { %v1833_v22 = vpop.eup %1832 }
 0x24f   :  { %v1835_v19 = vpop.eup %1834  ;;  %v698_v28 = vmul.f32 %v1833_v22, %v695_v31  ;;  %vm703_vm10 = vweird.f32 %v1833_v22 }
 0x250   :  { %v713_v38 = vmul.f32 %v1835_v19, %v696_v17  ;;  %vm704_vm12 = vmor %vm702_vm11, %vm703_vm10  ;;  %vm718_vm14 = vweird.f32 %v1835_v19 }
 0x251   :  { %v699_v20 = vsub.f32 1.0, %v698_v28  ;;  %vm719_vm0 = vmor %vm717_vm15, %vm718_vm14 }
 0x252   :  { %v714_v40 = vsub.f32 1.0, %v713_v38 }
 0x253   :  { %v700_v47 = vmul.f32 %v1833_v22, %v699_v20  ;;  %v723_v20 = vand.u32 2147483648, %v696_v17  ;;  %v3036_v17 = vld [vmem:[#allocation5 + $0x298] sm:$0xff] }
 0x254   :  { %v715_v35 = vmul.f32 %v1835_v19, %v714_v40 }
 0x255   :  { %v701_v48 = vadd.f32 %v1833_v22, %v700_v47  ;;  %v724_v40 = vor.u32 1.1754944e-38, %v723_v20  ;;  %v3075_v20 = vld [vmem:[#allocation5 + $0x1a0] sm:$0xff] }
 0x256   :  { %v716_v38 = vadd.f32 %v1835_v19, %v715_v35  ;;  %v3043_v35 = vld [vmem:[#allocation5 + $0x260] sm:$0xff] }
 0x257   :  { %v705_v8 = vsel %vm704_vm12, %v1833_v22, %v701_v48  ;;  %v3046_v48 = vld [vmem:[#allocation5 + $0x268] sm:$0xff] }
 0x258   :  { %v710_v28 = vsel %vm707_vm13, %v709_v51, %v705_v8  ;;  %v720_v44 = vsel %vm719_vm0, %v1835_v19, %v716_v38  ;;  %v3033_v19 = vld [vmem:[#allocation5 + $0x290] sm:$0xff]  ;;  %v3054_v8 = vld [vmem:[#allocation5 + $0x238] sm:$0xff] }
 0x259   :  { %v728_v42 = vmul.f32 %v727_v11, %v710_v28  ;;  %v725_v31 = vsel %vm722_vm1, %v724_v40, %v720_v44  ;;  %v3051_v51 = vld [vmem:[#allocation5 + $0x230] sm:$0xff]  ;;  %v3059_v11 = vld [vmem:[#allocation5 + $0x200] sm:$0xff]  ;;  %v3070_v38 = vld [vmem:[#allocation5 + $0x1d8] sm:$0xff] }
 0x25a   :  { %v731_v46 = vsub.f32 1.0, %v725_v31  ;;  %v733_v50 = vmul.f32 %v725_v31, %v2782_v0  ;;  %v3067_v28 = vld [vmem:[#allocation5 + $0x1d0] sm:$0xff]  ;;  %v3078_v44 = vld [vmem:[#allocation5 + $0x1a8] sm:$0xff]  ;;  %v3086_v31 = vld [vmem:[#allocation5 + $0x178] sm:$0xff] }
 0x25b   :  { %v729_v39 = vadd.f32 %v728_v42, %v561_v4  ;;  %v3028_v42 = vld [vmem:[#allocation5 + $0x2c8] sm:$0xff]  ;;  %v3083_v40 = vld [vmem:[#allocation5 + $0x170] sm:$0xff] }
 0x25c   :  { %v3062_v4 = vld [vmem:[#allocation5 + $0x208] sm:$0xff] }
 0x25d   :  { %1836 = vtanh.f32 %v729_v39  ;;  %v3017_v39 = vld [vmem:[#allocation5 + $0x2f0] sm:$0xff] }
 0x263   :  { %v1837_v22 = vpop.eup %1836 }
 0x264   :  { %v732_v47 = vmul.f32 %v1837_v22, %v731_v46  ;;  %v3089_v46 = vld [vmem:[#allocation5 + $0x130] sm:$0xff]  ;;  %v3093_v22 = vld [vmem:[#allocation5 + $0x140] sm:$0xff] }
 0x265   :  { %3968 = vst [vmem:[#allocation15_spill] sm:$0xff] %v3093_v22 }
 0x266   :  { %v734_v26 = vadd.f32 %v733_v50, %v732_v47  ;;  %v3099_v47 = vld [vmem:[#allocation5 + $0x100] sm:$0xff]  ;;  %v3103_v50 = vld [vmem:[#allocation5 + $0x110] sm:$0xff] }
 0x267   :  { %3970 = vst [vmem:[#allocation18_spill] sm:$0xff] %v3099_v47 }
 0x268   :  { %v3009_v27 = vsel %vm740_vm2, %v734_v26, %v2782_v0  ;;  %v3025_v0 = vld [vmem:[#allocation5 + $0x2c0] sm:$0xff]  ;;  %3971 = vst [vmem:[#allocation16_spill] sm:$0xff] %v3103_v50  ;;  %v3106_v26 = vld [vmem:[#allocation5 + $0x118] sm:$0xff] }
 0x269   :  { %764 = vmatmul.f32.vlgmr.msra.gmra.mxu2 %v3009_v27  ;;  %784 = vmatmul.f32.vlgmr.msra.gmra.mxu3 %v3009_v27  ;;  %3972 = vst [vmem:[#allocation22_spill] sm:$0xff] %v3106_v26 }
 0x26a   :  { %804 = vmatmul.f32.vlgmr.msrb.gmra.mxu0 %v3009_v27  ;;  %824 = vmatmul.f32.vlgmr.msrb.gmra.mxu1 %v3009_v27 }
 0x26b   :  { %972 = vmatpush.msra.mxu2 %v2788_v36  ;;  %992 = vmatpush.msra.mxu3 %v2791_v2 }
 0x26c   :  { %1012 = vmatpush.msrb.mxu0 %v3017_v39  ;;  %1032 = vmatpush.msrb.mxu1 %v3020_v52 }
 0x26d   :  { %973 = vmatpush.msra.mxu2 %v2796_v32  ;;  %993 = vmatpush.msra.mxu3 %v2799_v57 }
 0x26e   :  { %1013 = vmatpush.msrb.mxu0 %v3025_v0  ;;  %1033 = vmatpush.msrb.mxu1 %v3028_v42 }
 0x26f   :  { %974 = vmatpush.msra.mxu2 %v2804_v23  ;;  %994 = vmatpush.msra.mxu3 %v2807_v14 }
 0x270   :  { %1014 = vmatpush.msrb.mxu0 %v3033_v19  ;;  %1034 = vmatpush.msrb.mxu1 %v3036_v17 }
 0x271   :  { %844 = vmatmul.f32.vlgmr.msrb.gmra.mxu2 %v3009_v27  ;;  %864 = vmatmul.f32.vlgmr.msrb.gmra.mxu3 %v3009_v27 }
 0x272   :  { %975 = vmatpush.msra.mxu2 %v2814_v54  ;;  %995 = vmatpush.msra.mxu3 %v2817_v18 }
 0x273   :  { %1015 = vmatpush.msrb.mxu0 %v3043_v35  ;;  %1035 = vmatpush.msrb.mxu1 %v3046_v48 }
 0x274   :  { %976 = vmatpush.msra.mxu2 %v2822_v58  ;;  %996 = vmatpush.msra.mxu3 %v2825_v21 }
 0x275   :  { %1016 = vmatpush.msrb.mxu0 %v3051_v51  ;;  %1036 = vmatpush.msrb.mxu1 %v3054_v8 }
 0x276   :  { %977 = vmatpush.msra.mxu2 %v2830_v60  ;;  %997 = vmatpush.msra.mxu3 %v2833_v62 }
 0x277   :  { %1017 = vmatpush.msrb.mxu0 %v3059_v11  ;;  %1037 = vmatpush.msrb.mxu1 %v3062_v4 }
 0x278   :  { %978 = vmatpush.msra.mxu2 %v2838_v41  ;;  %998 = vmatpush.msra.mxu3 %v2841_v3 }
 0x279   :  { %1018 = vmatpush.msrb.mxu0 %v3067_v28  ;;  %1038 = vmatpush.msrb.mxu1 %v3070_v38 }
 0x27a   :  { %979 = vmatpush.msra.mxu2 %v2846_v15  ;;  %999 = vmatpush.msra.mxu3 %v2849_v6 }
 0x27b   :  { %1019 = vmatpush.msrb.mxu0 %v3075_v20  ;;  %1039 = vmatpush.msrb.mxu1 %v3078_v44 }
 0x27c   :  { %980 = vmatpush.msra.mxu2 %v2854_v43  ;;  %1000 = vmatpush.msra.mxu3 %v2857_v25 }
 0x27d   :  { %1020 = vmatpush.msrb.mxu0 %v3083_v40  ;;  %1040 = vmatpush.msrb.mxu1 %v3086_v31 }
 0x27e   :  { %981 = vmatpush.msra.mxu2 %v3089_v46  ;;  %1001 = vmatpush.msra.mxu3 %v2863_v9  ;;  %v3109_v9 = vld [vmem:[#allocation5 + $0xd0] sm:$0xff] }
 0x27f   :  { %1021 = vmatpush.msrb.mxu0 %v3093_v22  ;;  %1041 = vmatpush.msrb.mxu1 %v3096_v1  ;;  %3973 = vst [vmem:[#allocation25_spill] sm:$0xff] %v3109_v9  ;;  %v3113_v1 = vld [vmem:[#allocation5 + $0xe0] sm:$0xff] }
 0x280   :  { %982 = vmatpush.msra.mxu2 %v3099_v47  ;;  %1002 = vmatpush.msra.mxu3 %v2869_v53  ;;  %3974 = vst [vmem:[#allocation23_spill] sm:$0xff] %v3113_v1  ;;  %v3116_v47 = vld [vmem:[#allocation5 + $0xe8] sm:$0xff]  ;;  %v3119_v53 = vld [vmem:[#allocation5 + $0xa0] sm:$0xff] }
 0x281   :  { %1022 = vmatpush.msrb.mxu0 %v3103_v50  ;;  %1042 = vmatpush.msrb.mxu1 %v3106_v26  ;;  %3975 = vst [vmem:[#allocation28_spill] sm:$0xff] %v3116_v47  ;;  %v3123_v26 = vld [vmem:[#allocation5 + $0xb0] sm:$0xff] }
 0x282   :  { %983 = vmatpush.msra.mxu2 %v3109_v9  ;;  %1003 = vmatpush.msra.mxu3 %v2875_v12  ;;  %3976 = vst [vmem:[#allocation26_spill] sm:$0xff] %v3119_v53  ;;  %v3126_v9 = vld [vmem:[#allocation5 + $0xb8] sm:$0xff]  ;;  %v3129_v12 = vld [vmem:[#allocation5 + $0x70] sm:$0xff] }
 0x283   :  { %1023 = vmatpush.msrb.mxu0 %v3113_v1  ;;  %1043 = vmatpush.msrb.mxu1 %v3116_v47  ;;  %3977 = vst [vmem:[#allocation31_spill] sm:$0xff] %v3123_v26  ;;  %v3133_v47 = vld [vmem:[#allocation5 + $0x80] sm:$0xff] }
 0x284   :  { %984 = vmatpush.msra.mxu2 %v3119_v53  ;;  %1004 = vmatpush.msra.mxu3 %v2881_v10  ;;  %3978 = vst [vmem:[#allocation29_spill] sm:$0xff] %v3126_v9  ;;  %v3136_v53 = vld [vmem:[#allocation5 + $0x88] sm:$0xff]  ;;  %v3139_v10 = vld [vmem:[#allocation5 + $0x40] sm:$0xff] }
 0x285   :  { %1024 = vmatpush.msrb.mxu0 %v3123_v26  ;;  %1044 = vmatpush.msrb.mxu1 %v3126_v9  ;;  %3979 = vst [vmem:[#allocation34_spill] sm:$0xff] %v3129_v12  ;;  %v3143_v9 = vld [vmem:[#allocation5 + $0x50] sm:$0xff] }
 0x286   :  { %985 = vmatpush.msra.mxu2 %v3129_v12  ;;  %1005 = vmatpush.msra.mxu3 %v2887_v33  ;;  %3980 = vst [vmem:[#allocation32_spill] sm:$0xff] %v3133_v47  ;;  %v3146_v12 = vld [vmem:[#allocation5 + $0x58] sm:$0xff]  ;;  %v3149_v33 = vld [vmem:[#allocation5 + $0x10] sm:$0xff] }
 0x287   :  { %1025 = vmatpush.msrb.mxu0 %v3133_v47  ;;  %3981 = vst [vmem:[#allocation37_spill] sm:$0xff] %v3136_v53  ;;  %1045 = vmatpush.msrb.mxu1 %v3136_v53  ;;  %v3153_v53 = vld [vmem:[#allocation5 + $0x20] sm:$0xff] }
 0x288   :  { %3982 = vst [vmem:[#allocation35_spill] sm:$0xff] %v3139_v10  ;;  %986 = vmatpush.msra.mxu2 %v3139_v10  ;;  %1006 = vmatpush.msra.mxu3 %v2893_v24  ;;  %v3156_v10 = vld [vmem:[#allocation5 + $0x28] sm:$0xff]  ;;  %v745_v24 = vld [vmem:[#allocation2 + $0x58] sm:$0xff] }
 0x289   :  { %3983 = vst [vmem:[#allocation40_spill] sm:$0xff] %v3143_v9  ;;  %1026 = vmatpush.msrb.mxu0 %v3143_v9  ;;  %1046 = vmatpush.msrb.mxu1 %v3146_v12 }
 0x28a   :  { %3984 = vst [vmem:[#allocation38_spill] sm:$0xff] %v3146_v12  ;;  %987 = vmatpush.msra.mxu2 %v3149_v33  ;;  %1007 = vmatpush.msra.mxu3 %v2899_v13 }
 0x28b   :  { %3985 = vst [vmem:[#allocation43_spill] sm:$0xff] %v3149_v33  ;;  %1027 = vmatpush.msrb.mxu0 %v3153_v53  ;;  %1047 = vmatpush.msrb.mxu1 %v3156_v10 }
 0x28c   :  { %3986 = vst [vmem:[#allocation41_spill] sm:$0xff] %v3153_v53  ;;  %1116 = vmatpush.msrb.mxu2 %v2904_v16  ;;  %1136 = vmatpush.msrb.mxu3 %v2907_v37 }
 0x28d   :  { %3987 = vst [vmem:[#allocation47_spill] sm:$0xff] %v3156_v10 }
 0x28e   :  { %1117 = vmatpush.msrb.mxu2 %v2910_v45  ;;  %1137 = vmatpush.msrb.mxu3 %v2913_v49  ;;  %v3988_v45 = vld [vmem:[#allocation27_spill] sm:$0xff]  ;;  %v3989_v49 = vld [vmem:[#allocation56_spill] sm:$0xff] }
 0x290   :  { %1118 = vmatpush.msrb.mxu2 %v2916_v56  ;;  %1138 = vmatpush.msrb.mxu3 %v2919_v61  ;;  %v3990_v56 = vld [vmem:[#allocation30_spill] sm:$0xff]  ;;  %v3991_v61 = vld [vmem:[#allocation79_spill] sm:$0xff] }
 0x292   :  { %1119 = vmatpush.msrb.mxu2 %v2922_v29  ;;  %1139 = vmatpush.msrb.mxu3 %v2925_v63  ;;  %v3992_v29 = vld [vmem:[#allocation62_spill] sm:$0xff]  ;;  %v3993_v63 = vld [vmem:[#allocation33_spill] sm:$0xff] }
 0x294   :  { %1120 = vmatpush.msrb.mxu2 %v2928_v5  ;;  %1140 = vmatpush.msrb.mxu3 %v2931_v7  ;;  %v3994_v5 = vld [vmem:[#allocation64_spill] sm:$0xff] }
 0x295   :  { %v3995_v7 = vld [vmem:[#allocation36_spill] sm:$0xff] }
 0x296   :  { %1121 = vmatpush.msrb.mxu2 %v2934_v59  ;;  %1141 = vmatpush.msrb.mxu3 %v2937_v30  ;;  %v3996_v59 = vld [vmem:[#allocation66_spill] sm:$0xff]  ;;  %v3997_v30 = vld [vmem:[#allocation39_spill] sm:$0xff] }
 0x298   :  { %1122 = vmatpush.msrb.mxu2 %v2940_v55  ;;  %1142 = vmatpush.msrb.mxu3 %v3988_v45  ;;  %v3998_v55 = vld [vmem:[#allocation69_spill] sm:$0xff]  ;;  %v3999_v45 = vld [vmem:[#allocation42_spill] sm:$0xff] }
 0x29a   :  { %1123 = vmatpush.msrb.mxu2 %v3989_v49  ;;  %1143 = vmatpush.msrb.mxu3 %v3990_v56  ;;  %v4000_v49 = vld [vmem:[#allocation72_spill] sm:$0xff]  ;;  %v4001_v56 = vld [vmem:[#allocation46_spill] sm:$0xff] }
 0x29c   :  { %1124 = vmatpush.msrb.mxu2 %v3991_v61  ;;  %1144 = vmatpush.msrb.mxu3 %v3992_v29  ;;  %v4002_v61 = vld [vmem:[#allocation75_spill] sm:$0xff]  ;;  %v4003_v29 = vld [vmem:[#allocation50_spill] sm:$0xff] }
 0x29e   :  { %1125 = vmatpush.msrb.mxu2 %v3993_v63  ;;  %1145 = vmatpush.msrb.mxu3 %v3994_v5  ;;  %v4004_v63 = vld [vmem:[#allocation77_spill] sm:$0xff]  ;;  %v4005_v5 = vld [vmem:[#allocation54_spill] sm:$0xff] }
 0x2a0   :  { %1126 = vmatpush.msrb.mxu2 %v3995_v7  ;;  %1146 = vmatpush.msrb.mxu3 %v3996_v59  ;;  %v4006_v7 = vld [vmem:[#allocation58_spill] sm:$0xff]  ;;  %v743_v59 = vld [vmem:[#allocation2 + $0x48] sm:$0xff] }
 0x2a2   :  { %1127 = vmatpush.msrb.mxu2 %v3997_v30  ;;  %1147 = vmatpush.msrb.mxu3 %v3998_v55 }
 0x2a4   :  { %1128 = vmatpush.msrb.mxu2 %v3999_v45  ;;  %1148 = vmatpush.msrb.mxu3 %v4000_v49 }
 0x2a6   :  { %1129 = vmatpush.msrb.mxu2 %v4001_v56  ;;  %1149 = vmatpush.msrb.mxu3 %v4002_v61  ;;  %v744_v56 = vld [vmem:[#allocation2 + $0x50] sm:$0xff] }
 0x2a8   :  { %1130 = vmatpush.msrb.mxu2 %v4003_v29  ;;  %1150 = vmatpush.msrb.mxu3 %v4004_v63 }
 0x2aa   :  { %1131 = vmatpush.msrb.mxu2 %v4005_v5  ;;  %1151 = vmatpush.msrb.mxu3 %v4006_v7 }
 0x2e7   :  { %v825_v30 = vpop.f32.mrf.mxu1 }
 0x2ec   :  { %v765_v37 = vpop.f32.mrf.mxu2  ;;  %v785_v16 = vpop.f32.mrf.mxu3 }
 0x2ed   :  { %v868_v45 = vsel %vm189_vm3, %v765_v37, %v825_v30 }
 0x2ee   :  { %v871_v55 = vadd.f32 %v868_v45, %v743_v59 }
 0x2f0   :  { %v1777_v49 = vmul.f32 -1.442695, %v871_v55 }
 0x2f2   :  { %1838 = vpow2.f32 %v1777_v49  ;;  %v1779_v49 = vld [vmem:[%s3521_s1 + $0x20] sm:$0xff] }
 0x2f3   :  { %vm1103_vm4 = vcmp.gt.f32.partialorder %v1779_v49, 0.0  ;;  %v3207_v49 = vld [vmem:[%s3522_s2] sm:$0xff] }
 0x2f4   :  { %v845_v61 = vpop.f32.mrf.mxu2  ;;  %v865_v37 = vpop.f32.mrf.mxu3  ;;  %4008 = vst [vmem:[#allocation45_spill] sm:$0xff] %v3207_v49 }
 0x2f5   :  { %v869_v29 = vsel %vm189_vm3, %v785_v16, %v845_v61  ;;  %v805_v16 = vpop.f32.mrf.mxu0 }
 0x2f6   :  { %v872_v63 = vadd.f32 %v869_v29, %v744_v56 }
 0x2f8   :  { %v1839_v10 = vpop.eup %1838  ;;  %v1778_v5 = vmul.f32 -1.442695, %v872_v63  ;;  %v1782_v63 = vld [vmem:[%s3521_s1 + $0x28] sm:$0xff] }
 0x2f9   :  { %v879_v53 = vadd.f32 1.0, %v1839_v10  ;;  %v4007_v10 = vmov 0   ;;  %vm1287_vm8 = vcmp.gt.f32.partialorder %v1782_v63, 0.0 }
 0x2fa   :  { %1840 = vpow2.f32 %v1778_v5  ;;  %v1104_v29 = vsel %vm1103_vm4, 1, %v4007_v10  ;;  %v870_v5 = vsel %vm189_vm3, %v805_v16, %v865_v37 }
 0x2fb   :  { %1842 = vrcp.f32 %v879_v53  ;;  %v892_v59 = vand.u32 2147483648, %v879_v53  ;;  %v890_v61 = vand.u32 2147483647, %v879_v53  ;;  %1106 = vperm.xlu2 %1806, %v1104_v29   ;;  %vm886_vm6 = vweird.f32 %v879_v53 }
 0x2fc   :  { %v911_v9 = vadd.f32 %v3207_v49, %v870_v5 }
 0x2fd   :  { %v893_v30 = vor.u32 1.1754944e-38, %v892_v59  ;;  %vm891_vm9 = vcmp.eq.f32.partialorder %v890_v61, 8.507059e+37 }
 0x300   :  { %v1841_v7 = vpop.eup %1840 }
 0x301   :  { %v1843_v13 = vpop.eup %1842  ;;  %v880_v33 = vadd.f32 1.0, %v1841_v7 }
 0x302   :  { %v882_v12 = vmul.f32 %v1843_v13, %v879_v53  ;;  %vm887_vm5 = vweird.f32 %v1843_v13  ;;  %v1288_v53 = vsel %vm1287_vm8, 1, %v4007_v10 }
 0x303   :  { %1844 = vrcp.f32 %v880_v33  ;;  %vm888_vm7 = vmor %vm886_vm6, %vm887_vm5  ;;  %v905_v59 = vand.u32 2147483647, %v880_v33  ;;  %1290 = vperm.xlu2 %1806, %v1288_v53   ;;  %vm901_vm11 = vweird.f32 %v880_v33  ;;  %v4016_v53 = vld [vmem:[#allocation28_spill] sm:$0xff] }
 0x304   :  { %v883_v45 = vsub.f32 1.0, %v882_v12 }
 0x305   :  { %vm906_vm13 = vcmp.eq.f32.partialorder %v905_v59, 8.507059e+37  ;;  %v4019_v59 = vld [vmem:[#allocation29_spill] sm:$0xff] }
 0x306   :  { %v884_v56 = vmul.f32 %v1843_v13, %v883_v45 }
 0x308   :  { %v885_v12 = vadd.f32 %v1843_v13, %v884_v56  ;;  %v907_v56 = vand.u32 2147483648, %v880_v33 }
 0x309   :  { %v1845_v7 = vpop.eup %1844 }
 0x30a   :  { %v897_v55 = vmul.f32 %v1845_v7, %v880_v33  ;;  %v889_v45 = vsel %vm888_vm7, %v1843_v13, %v885_v12  ;;  %vm902_vm10 = vweird.f32 %v1845_v7  ;;  %v908_v61 = vor.u32 1.1754944e-38, %v907_v56  ;;  %v4009_v33 = vld [vmem:[#allocation63_spill] sm:$0xff]  ;;  %v4017_v56 = vld [vmem:[#allocation26_spill] sm:$0xff] }
 0x30b   :  { %v894_v34 = vsel %vm891_vm9, %v893_v30, %v889_v45  ;;  %vm903_vm12 = vmor %vm901_vm11, %vm902_vm10 }
 0x30c   :  { %v898_v37 = vsub.f32 1.0, %v897_v55  ;;  %v912_v16 = vmul.f32 %v911_v9, %v894_v34  ;;  %v923_v34 = vpop.permute.xlu1 %922 }
 0x30d   :  { %vm924_vm14 = vcmp.eq.s32.totalorder %v923_v34, 1  ;;  %v4028_v34 = vld [vmem:[#allocation78_spill] sm:$0xff] }
 0x30e   :  { %v899_v29 = vmul.f32 %v1845_v7, %v898_v37  ;;  %v913_v63 = vadd.f32 %v912_v16, %v745_v24  ;;  %v4010_v24 = vld [vmem:[#allocation17_spill] sm:$0xff]  ;;  %v4015_v16 = vld [vmem:[#allocation67_spill] sm:$0xff] }
 0x30f   :  { %v4014_v37 = vld [vmem:[#allocation25_spill] sm:$0xff] }
 0x310   :  { %v900_v13 = vadd.f32 %v1845_v7, %v899_v29  ;;  %1846 = vtanh.f32 %v913_v63  ;;  %v4018_v29 = vld [vmem:[#allocation70_spill] sm:$0xff] }
 0x311   :  { %v4020_v63 = vld [vmem:[#allocation34_spill] sm:$0xff] }
 0x312   :  { %v904_v12 = vsel %vm903_vm12, %v1845_v7, %v900_v13  ;;  %v4012_v7 = vld [vmem:[#allocation65_spill] sm:$0xff] }
 0x313   :  { %v909_v5 = vsel %vm906_vm13, %v908_v61, %v904_v12  ;;  %v4021_v13 = vld [vmem:[#allocation73_spill] sm:$0xff]  ;;  %v4023_v12 = vld [vmem:[#allocation35_spill] sm:$0xff] }
 0x314   :  { %v915_v49 = vsub.f32 1.0, %v909_v5  ;;  %v917_v9 = vmul.f32 %v909_v5, %v3009_v27  ;;  %v4022_v61 = vld [vmem:[#allocation37_spill] sm:$0xff]  ;;  %v4024_v5 = vld [vmem:[#allocation76_spill] sm:$0xff] }
 0x316   :  { %v1847_v30 = vpop.eup %1846 }
 0x317   :  { %v916_v55 = vmul.f32 %v1847_v30, %v915_v49  ;;  %v4013_v49 = vld [vmem:[#allocation22_spill] sm:$0xff]  ;;  %v4025_v30 = vld [vmem:[#allocation40_spill] sm:$0xff] }
 0x319   :  { %v918_v10 = vadd.f32 %v917_v9, %v916_v55  ;;  %v4026_v55 = vld [vmem:[#allocation38_spill] sm:$0xff]  ;;  %v4027_v9 = vld [vmem:[#allocation43_spill] sm:$0xff] }
 0x31b   :  { %v3213_v45 = vsel %vm924_vm14, %v918_v10, %v3009_v27  ;;  %v4011_v27 = vld [vmem:[#allocation18_spill] sm:$0xff]  ;;  %v4029_v10 = vld [vmem:[#allocation41_spill] sm:$0xff] }
 0x31c   :  { %948 = vmatmul.f32.vlgmr.msra.gmra.mxu0 %v3213_v45  ;;  %968 = vmatmul.f32.vlgmr.msra.gmra.mxu1 %v3213_v45 }
 0x31d   :  { %988 = vmatmul.f32.vlgmr.msra.gmra.mxu2 %v3213_v45  ;;  %1008 = vmatmul.f32.vlgmr.msra.gmra.mxu3 %v3213_v45 }
 0x31e   :  { %1156 = vmatpush.msra.mxu0 %v2788_v36  ;;  %1176 = vmatpush.msra.mxu1 %v2791_v2 }
 0x31f   :  { %1196 = vmatpush.msra.mxu2 %v3017_v39  ;;  %1216 = vmatpush.msra.mxu3 %v3020_v52 }
 0x320   :  { %1157 = vmatpush.msra.mxu0 %v2796_v32  ;;  %1177 = vmatpush.msra.mxu1 %v2799_v57 }
 0x321   :  { %1197 = vmatpush.msra.mxu2 %v3025_v0  ;;  %1217 = vmatpush.msra.mxu3 %v3028_v42 }
 0x322   :  { %1158 = vmatpush.msra.mxu0 %v2804_v23  ;;  %1178 = vmatpush.msra.mxu1 %v2807_v14 }
 0x323   :  { %1198 = vmatpush.msra.mxu2 %v3033_v19  ;;  %1218 = vmatpush.msra.mxu3 %v3036_v17 }
 0x324   :  { %1028 = vmatmul.f32.vlgmr.msrb.gmra.mxu0 %v3213_v45  ;;  %1048 = vmatmul.f32.vlgmr.msrb.gmra.mxu1 %v3213_v45 }
 0x325   :  { %1159 = vmatpush.msra.mxu0 %v2814_v54  ;;  %1179 = vmatpush.msra.mxu1 %v2817_v18 }
 0x326   :  { %1199 = vmatpush.msra.mxu2 %v3043_v35  ;;  %1219 = vmatpush.msra.mxu3 %v3046_v48 }
 0x327   :  { %1160 = vmatpush.msra.mxu0 %v2822_v58  ;;  %1180 = vmatpush.msra.mxu1 %v2825_v21 }
 0x328   :  { %1200 = vmatpush.msra.mxu2 %v3051_v51  ;;  %1220 = vmatpush.msra.mxu3 %v3054_v8 }
 0x329   :  { %1161 = vmatpush.msra.mxu0 %v2830_v60  ;;  %1181 = vmatpush.msra.mxu1 %v2833_v62 }
 0x32a   :  { %1201 = vmatpush.msra.mxu2 %v3059_v11  ;;  %1221 = vmatpush.msra.mxu3 %v3062_v4 }
 0x32b   :  { %1162 = vmatpush.msra.mxu0 %v2838_v41  ;;  %1182 = vmatpush.msra.mxu1 %v2841_v3 }
 0x32c   :  { %1202 = vmatpush.msra.mxu2 %v3067_v28  ;;  %1222 = vmatpush.msra.mxu3 %v3070_v38 }
 0x32d   :  { %1163 = vmatpush.msra.mxu0 %v2846_v15  ;;  %1183 = vmatpush.msra.mxu1 %v2849_v6 }
 0x32e   :  { %1203 = vmatpush.msra.mxu2 %v3075_v20  ;;  %1223 = vmatpush.msra.mxu3 %v3078_v44 }
 0x32f   :  { %1164 = vmatpush.msra.mxu0 %v2854_v43  ;;  %1184 = vmatpush.msra.mxu1 %v2857_v25 }
 0x330   :  { %1204 = vmatpush.msra.mxu2 %v3083_v40  ;;  %1224 = vmatpush.msra.mxu3 %v3086_v31 }
 0x331   :  { %1165 = vmatpush.msra.mxu0 %v3089_v46  ;;  %1185 = vmatpush.msra.mxu1 %v4009_v33 }
 0x332   :  { %1205 = vmatpush.msra.mxu2 %v3093_v22  ;;  %1225 = vmatpush.msra.mxu3 %v4010_v24 }
 0x333   :  { %1166 = vmatpush.msra.mxu0 %v4011_v27  ;;  %1186 = vmatpush.msra.mxu1 %v4012_v7  ;;  %v929_v7 = vld [vmem:[#allocation2 + $0x70] sm:$0xff] }
 0x334   :  { %1206 = vmatpush.msra.mxu2 %v3103_v50  ;;  %1226 = vmatpush.msra.mxu3 %v4013_v49 }
 0x335   :  { %1167 = vmatpush.msra.mxu0 %v4014_v37  ;;  %1187 = vmatpush.msra.mxu1 %v4015_v16 }
 0x336   :  { %1207 = vmatpush.msra.mxu2 %v3113_v1  ;;  %1227 = vmatpush.msra.mxu3 %v4016_v53 }
 0x337   :  { %1168 = vmatpush.msra.mxu0 %v4017_v56  ;;  %1188 = vmatpush.msra.mxu1 %v4018_v29 }
 0x338   :  { %1208 = vmatpush.msra.mxu2 %v3123_v26  ;;  %1228 = vmatpush.msra.mxu3 %v4019_v59 }
 0x339   :  { %1169 = vmatpush.msra.mxu0 %v4020_v63  ;;  %1189 = vmatpush.msra.mxu1 %v4021_v13  ;;  %v4030_v63 = vld [vmem:[#allocation47_spill] sm:$0xff]  ;;  %v4031_v13 = vld [vmem:[#allocation80_spill] sm:$0xff] }
 0x33a   :  { %1209 = vmatpush.msra.mxu2 %v3133_v47  ;;  %1229 = vmatpush.msra.mxu3 %v4022_v61  ;;  %v4032_v47 = vld [vmem:[#allocation20_spill] sm:$0xff]  ;;  %v4033_v61 = vld [vmem:[#allocation81_spill] sm:$0xff] }
 0x33b   :  { %1170 = vmatpush.msra.mxu0 %v4023_v12  ;;  %1190 = vmatpush.msra.mxu1 %v4024_v5  ;;  %v4034_v12 = vld [vmem:[#allocation82_spill] sm:$0xff]  ;;  %v4035_v5 = vld [vmem:[#allocation19_spill] sm:$0xff] }
 0x33c   :  { %1210 = vmatpush.msra.mxu2 %v4025_v30  ;;  %1230 = vmatpush.msra.mxu3 %v4026_v55  ;;  %v4036_v30 = vld [vmem:[#allocation68_spill] sm:$0xff] }
 0x33d   :  { %1171 = vmatpush.msra.mxu0 %v4027_v9  ;;  %1191 = vmatpush.msra.mxu1 %v4028_v34  ;;  %v4037_v55 = vld [vmem:[#allocation44_spill] sm:$0xff]  ;;  %v4038_v9 = vld [vmem:[#allocation21_spill] sm:$0xff]  ;;  %v4039_v34 = vld [vmem:[#allocation71_spill] sm:$0xff] }
 0x33e   :  { %1211 = vmatpush.msra.mxu2 %v4029_v10  ;;  %1231 = vmatpush.msra.mxu3 %v4030_v63  ;;  %v4040_v10 = vld [vmem:[#allocation48_spill] sm:$0xff] }
 0x33f   :  { %1300 = vmatpush.msrb.mxu0 %v4031_v13  ;;  %1320 = vmatpush.msrb.mxu1 %v4032_v47  ;;  %v4041_v63 = vld [vmem:[#allocation24_spill] sm:$0xff]  ;;  %v4042_v13 = vld [vmem:[#allocation74_spill] sm:$0xff] }
 0x340   :  { %v4043_v47 = vld [vmem:[#allocation52_spill] sm:$0xff] }
 0x341   :  { %1301 = vmatpush.msrb.mxu0 %v4033_v61  ;;  %1321 = vmatpush.msrb.mxu1 %v4034_v12  ;;  %v4044_v61 = vld [vmem:[#allocation27_spill] sm:$0xff]  ;;  %v4045_v12 = vld [vmem:[#allocation56_spill] sm:$0xff] }
 0x343   :  { %1302 = vmatpush.msrb.mxu0 %v4035_v5  ;;  %1322 = vmatpush.msrb.mxu1 %v4036_v30  ;;  %v4046_v5 = vld [vmem:[#allocation30_spill] sm:$0xff]  ;;  %v4047_v30 = vld [vmem:[#allocation79_spill] sm:$0xff] }
 0x345   :  { %1303 = vmatpush.msrb.mxu0 %v4037_v55  ;;  %1323 = vmatpush.msrb.mxu1 %v4038_v9  ;;  %v4048_v55 = vld [vmem:[#allocation62_spill] sm:$0xff]  ;;  %v4049_v9 = vld [vmem:[#allocation33_spill] sm:$0xff] }
 0x347   :  { %1304 = vmatpush.msrb.mxu0 %v4039_v34  ;;  %1324 = vmatpush.msrb.mxu1 %v4040_v10  ;;  %v4050_v34 = vld [vmem:[#allocation64_spill] sm:$0xff] }
 0x348   :  { %v4051_v10 = vld [vmem:[#allocation36_spill] sm:$0xff] }
 0x349   :  { %1305 = vmatpush.msrb.mxu0 %v4041_v63  ;;  %1325 = vmatpush.msrb.mxu1 %v4042_v13  ;;  %v4052_v63 = vld [vmem:[#allocation66_spill] sm:$0xff]  ;;  %v4053_v13 = vld [vmem:[#allocation39_spill] sm:$0xff] }
 0x34b   :  { %1306 = vmatpush.msrb.mxu0 %v4043_v47  ;;  %1326 = vmatpush.msrb.mxu1 %v4044_v61  ;;  %v4054_v47 = vld [vmem:[#allocation69_spill] sm:$0xff]  ;;  %v4055_v61 = vld [vmem:[#allocation42_spill] sm:$0xff] }
 0x34d   :  { %1307 = vmatpush.msrb.mxu0 %v4045_v12  ;;  %1327 = vmatpush.msrb.mxu1 %v4046_v5  ;;  %v4056_v12 = vld [vmem:[#allocation72_spill] sm:$0xff]  ;;  %v4057_v5 = vld [vmem:[#allocation46_spill] sm:$0xff] }
 0x34f   :  { %1308 = vmatpush.msrb.mxu0 %v4047_v30  ;;  %1328 = vmatpush.msrb.mxu1 %v4048_v55  ;;  %v4058_v30 = vld [vmem:[#allocation75_spill] sm:$0xff]  ;;  %v4059_v55 = vld [vmem:[#allocation50_spill] sm:$0xff] }
 0x351   :  { %1309 = vmatpush.msrb.mxu0 %v4049_v9  ;;  %1329 = vmatpush.msrb.mxu1 %v4050_v34  ;;  %v4060_v9 = vld [vmem:[#allocation77_spill] sm:$0xff]  ;;  %v4061_v34 = vld [vmem:[#allocation54_spill] sm:$0xff] }
 0x353   :  { %1310 = vmatpush.msrb.mxu0 %v4051_v10  ;;  %1330 = vmatpush.msrb.mxu1 %v4052_v63  ;;  %v4062_v10 = vld [vmem:[#allocation58_spill] sm:$0xff] }
 0x355   :  { %1311 = vmatpush.msrb.mxu0 %v4053_v13  ;;  %1331 = vmatpush.msrb.mxu1 %v4054_v47  ;;  %v927_v13 = vld [vmem:[#allocation2 + $0x60] sm:$0xff]  ;;  %v928_v47 = vld [vmem:[#allocation2 + $0x68] sm:$0xff] }
 0x357   :  { %1312 = vmatpush.msrb.mxu0 %v4055_v61  ;;  %1332 = vmatpush.msrb.mxu1 %v4056_v12 }
 0x359   :  { %1313 = vmatpush.msrb.mxu0 %v4057_v5  ;;  %1333 = vmatpush.msrb.mxu1 %v4058_v30 }
 0x35b   :  { %1314 = vmatpush.msrb.mxu0 %v4059_v55  ;;  %1334 = vmatpush.msrb.mxu1 %v4060_v9 }
 0x35d   :  { %1315 = vmatpush.msrb.mxu0 %v4061_v34  ;;  %1335 = vmatpush.msrb.mxu1 %v4062_v10 }
 0x399   :  { %v949_v63 = vpop.f32.mrf.mxu0  ;;  %v969_v26 = vpop.f32.mrf.mxu1 }
 0x3a0   :  { %v1009_v59 = vpop.f32.mrf.mxu3 }
 0x3a1   :  { %v1052_v12 = vsel %vm189_vm3, %v949_v63, %v1009_v59  ;;  %v1029_v29 = vpop.f32.mrf.mxu0  ;;  %v1049_v63 = vpop.f32.mrf.mxu1 }
 0x3a2   :  { %v1055_v5 = vadd.f32 %v1052_v12, %v927_v13  ;;  %v1053_v30 = vsel %vm189_vm3, %v969_v26, %v1029_v29  ;;  %v989_v26 = vpop.f32.mrf.mxu2 }
 0x3a3   :  { %v1056_v55 = vadd.f32 %v1053_v30, %v928_v47 }
 0x3a4   :  { %v1780_v56 = vmul.f32 -1.442695, %v1055_v5 }
 0x3a5   :  { %v1781_v9 = vmul.f32 -1.442695, %v1056_v55 }
 0x3a6   :  { %1848 = vpow2.f32 %v1780_v56  ;;  %v1054_v56 = vsel %vm189_vm3, %v989_v26, %v1049_v63  ;;  %v1107_v26 = vpop.permute.xlu2 %1106 }
 0x3a7   :  { %1850 = vpow2.f32 %v1781_v9  ;;  %vm1108_vm8 = vcmp.eq.s32.totalorder %v1107_v26, 1  ;;  %v4103_v26 = vld [vmem:[#allocation52_spill] sm:$0xff] }
 0x3ac   :  { %v1849_v34 = vpop.eup %1848 }
 0x3ad   :  { %v1851_v10 = vpop.eup %1850  ;;  %v1063_v53 = vadd.f32 1.0, %v1849_v34  ;;  %v4064_v34 = vld [vmem:[#allocation45_spill] sm:$0xff] }
 0x3ae   :  { %v1064_v1 = vadd.f32 1.0, %v1851_v10  ;;  %v1095_v10 = vadd.f32 %v4064_v34, %v1054_v56 }
 0x3af   :  { %1852 = vrcp.f32 %v1063_v53  ;;  %v1076_v50 = vand.u32 2147483648, %v1063_v53  ;;  %v1074_v29 = vand.u32 2147483647, %v1063_v53  ;;  %vm1070_vm0 = vweird.f32 %v1063_v53 }
 0x3b0   :  { %1854 = vrcp.f32 %v1064_v1  ;;  %vm1085_vm5 = vweird.f32 %v1064_v1  ;;  %v1089_v24 = vand.u32 2147483647, %v1064_v1 }
 0x3b1   :  { %v1077_v55 = vor.u32 1.1754944e-38, %v1076_v50  ;;  %vm1075_vm2 = vcmp.eq.f32.partialorder %v1074_v29, 8.507059e+37 }
 0x3b2   :  { %vm1090_vm7 = vcmp.eq.f32.partialorder %v1089_v24, 8.507059e+37  ;;  %v4087_v24 = vld [vmem:[#allocation43_spill] sm:$0xff] }
 0x3b5   :  { %v1853_v16 = vpop.eup %1852 }
 0x3b6   :  { %v1855_v37 = vpop.eup %1854  ;;  %v1066_v49 = vmul.f32 %v1853_v16, %v1063_v53  ;;  %vm1071_vm15 = vweird.f32 %v1853_v16 }
 0x3b7   :  { %v1081_v59 = vmul.f32 %v1855_v37, %v1064_v1  ;;  %vm1072_vm1 = vmor %vm1070_vm0, %vm1071_vm15  ;;  %vm1086_vm4 = vweird.f32 %v1855_v37 }
 0x3b8   :  { %v1067_v13 = vsub.f32 1.0, %v1066_v49  ;;  %vm1087_vm6 = vmor %vm1085_vm5, %vm1086_vm4 }
 0x3b9   :  { %v1082_v12 = vsub.f32 1.0, %v1081_v59 }
 0x3ba   :  { %v1068_v47 = vmul.f32 %v1853_v16, %v1067_v13  ;;  %v1091_v13 = vand.u32 2147483648, %v1064_v1  ;;  %v4084_v1 = vld [vmem:[#allocation76_spill] sm:$0xff] }
 0x3bb   :  { %v1083_v5 = vmul.f32 %v1855_v37, %v1082_v12 }
 0x3bc   :  { %v1069_v30 = vadd.f32 %v1853_v16, %v1068_v47  ;;  %v1092_v12 = vor.u32 1.1754944e-38, %v1091_v13  ;;  %v4097_v13 = vld [vmem:[#allocation44_spill] sm:$0xff] }
 0x3bd   :  { %v1084_v59 = vadd.f32 %v1855_v37, %v1083_v5 }
 0x3be   :  { %v1073_v9 = vsel %vm1072_vm1, %v1853_v16, %v1069_v30  ;;  %v4091_v30 = vld [vmem:[#allocation80_spill] sm:$0xff] }
 0x3bf   :  { %v1078_v49 = vsel %vm1075_vm2, %v1077_v55, %v1073_v9  ;;  %v1088_v63 = vsel %vm1087_vm6, %v1855_v37, %v1084_v59  ;;  %v4090_v37 = vld [vmem:[#allocation47_spill] sm:$0xff]  ;;  %v4092_v55 = vld [vmem:[#allocation20_spill] sm:$0xff]  ;;  %v4093_v9 = vld [vmem:[#allocation81_spill] sm:$0xff] }
 0x3c0   :  { %v1096_v27 = vmul.f32 %v1095_v10, %v1078_v49  ;;  %v1093_v53 = vsel %vm1090_vm7, %v1092_v12, %v1088_v63  ;;  %v4094_v10 = vld [vmem:[#allocation82_spill] sm:$0xff]  ;;  %v4095_v49 = vld [vmem:[#allocation19_spill] sm:$0xff]  ;;  %v4096_v59 = vld [vmem:[#allocation68_spill] sm:$0xff] }
 0x3c1   :  { %v1099_v50 = vsub.f32 1.0, %v1093_v53  ;;  %v1101_v29 = vmul.f32 %v1093_v53, %v3213_v45  ;;  %v4098_v63 = vld [vmem:[#allocation21_spill] sm:$0xff]  ;;  %v4099_v12 = vld [vmem:[#allocation71_spill] sm:$0xff]  ;;  %v4100_v53 = vld [vmem:[#allocation48_spill] sm:$0xff] }
 0x3c2   :  { %v1097_v22 = vadd.f32 %v1096_v27, %v929_v7  ;;  %v4088_v27 = vld [vmem:[#allocation78_spill] sm:$0xff]  ;;  %v4089_v7 = vld [vmem:[#allocation41_spill] sm:$0xff] }
 0x3c4   :  { %1856 = vtanh.f32 %v1097_v22  ;;  %v4083_v22 = vld [vmem:[#allocation35_spill] sm:$0xff] }
 0x3ca   :  { %v1857_v16 = vpop.eup %1856 }
 0x3cb   :  { %v1100_v47 = vmul.f32 %v1857_v16, %v1099_v50  ;;  %v4101_v50 = vld [vmem:[#allocation24_spill] sm:$0xff]  ;;  %v4102_v16 = vld [vmem:[#allocation74_spill] sm:$0xff] }
 0x3cd   :  { %v1102_v56 = vadd.f32 %v1101_v29, %v1100_v47  ;;  %v4104_v47 = vld [vmem:[#allocation27_spill] sm:$0xff]  ;;  %v4105_v29 = vld [vmem:[#allocation56_spill] sm:$0xff] }
 0x3cf   :  { %v3326_v5 = vsel %vm1108_vm8, %v1102_v56, %v3213_v45  ;;  %v4085_v45 = vld [vmem:[#allocation40_spill] sm:$0xff]  ;;  %v4106_v56 = vld [vmem:[#allocation30_spill] sm:$0xff] }
 0x3d0   :  { %1132 = vmatmul.f32.vlgmr.msrb.gmra.mxu2 %v3326_v5  ;;  %1152 = vmatmul.f32.vlgmr.msrb.gmra.mxu3 %v3326_v5 }
 0x3d1   :  { %1172 = vmatmul.f32.vlgmr.msra.gmra.mxu0 %v3326_v5  ;;  %1192 = vmatmul.f32.vlgmr.msra.gmra.mxu1 %v3326_v5 }
 0x3d2   :  { %1340 = vmatpush.msrb.mxu2 %v2788_v36  ;;  %1360 = vmatpush.msrb.mxu3 %v2791_v2  ;;  %v4065_v36 = vld [vmem:[#allocation15_spill] sm:$0xff]  ;;  %v4066_v2 = vld [vmem:[#allocation17_spill] sm:$0xff] }
 0x3d3   :  { %1380 = vmatpush.msra.mxu0 %v3017_v39  ;;  %1400 = vmatpush.msra.mxu1 %v3020_v52 }
 0x3d4   :  { %1341 = vmatpush.msrb.mxu2 %v2796_v32  ;;  %1361 = vmatpush.msrb.mxu3 %v2799_v57  ;;  %v4067_v32 = vld [vmem:[#allocation18_spill] sm:$0xff]  ;;  %v4068_v57 = vld [vmem:[#allocation65_spill] sm:$0xff] }
 0x3d5   :  { %1381 = vmatpush.msra.mxu0 %v3025_v0  ;;  %1401 = vmatpush.msra.mxu1 %v3028_v42 }
 0x3d6   :  { %1342 = vmatpush.msrb.mxu2 %v2804_v23  ;;  %1362 = vmatpush.msrb.mxu3 %v2807_v14  ;;  %v4069_v23 = vld [vmem:[#allocation16_spill] sm:$0xff]  ;;  %v4070_v14 = vld [vmem:[#allocation22_spill] sm:$0xff] }
 0x3d7   :  { %1382 = vmatpush.msra.mxu0 %v3033_v19  ;;  %1402 = vmatpush.msra.mxu1 %v3036_v17 }
 0x3d8   :  { %1212 = vmatmul.f32.vlgmr.msra.gmra.mxu2 %v3326_v5  ;;  %1232 = vmatmul.f32.vlgmr.msra.gmra.mxu3 %v3326_v5 }
 0x3d9   :  { %1343 = vmatpush.msrb.mxu2 %v2814_v54  ;;  %1363 = vmatpush.msrb.mxu3 %v2817_v18  ;;  %v4071_v54 = vld [vmem:[#allocation25_spill] sm:$0xff]  ;;  %v4072_v18 = vld [vmem:[#allocation67_spill] sm:$0xff] }
 0x3da   :  { %1383 = vmatpush.msra.mxu0 %v3043_v35  ;;  %1403 = vmatpush.msra.mxu1 %v3046_v48 }
 0x3db   :  { %1344 = vmatpush.msrb.mxu2 %v2822_v58  ;;  %1364 = vmatpush.msrb.mxu3 %v2825_v21  ;;  %v4073_v58 = vld [vmem:[#allocation23_spill] sm:$0xff]  ;;  %v4074_v21 = vld [vmem:[#allocation28_spill] sm:$0xff] }
 0x3dc   :  { %1384 = vmatpush.msra.mxu0 %v3051_v51  ;;  %1404 = vmatpush.msra.mxu1 %v3054_v8 }
 0x3dd   :  { %1345 = vmatpush.msrb.mxu2 %v2830_v60  ;;  %1365 = vmatpush.msrb.mxu3 %v2833_v62  ;;  %v4075_v60 = vld [vmem:[#allocation26_spill] sm:$0xff] }
 0x3de   :  { %1385 = vmatpush.msra.mxu0 %v3059_v11  ;;  %1405 = vmatpush.msra.mxu1 %v3062_v4  ;;  %v4076_v62 = vld [vmem:[#allocation70_spill] sm:$0xff] }
 0x3df   :  { %1346 = vmatpush.msrb.mxu2 %v2838_v41  ;;  %1366 = vmatpush.msrb.mxu3 %v2841_v3  ;;  %v4077_v41 = vld [vmem:[#allocation31_spill] sm:$0xff]  ;;  %v4078_v3 = vld [vmem:[#allocation29_spill] sm:$0xff] }
 0x3e0   :  { %1386 = vmatpush.msra.mxu0 %v3067_v28  ;;  %1406 = vmatpush.msra.mxu1 %v3070_v38 }
 0x3e1   :  { %1347 = vmatpush.msrb.mxu2 %v2846_v15  ;;  %1367 = vmatpush.msrb.mxu3 %v2849_v6  ;;  %v4079_v15 = vld [vmem:[#allocation34_spill] sm:$0xff]  ;;  %v4080_v6 = vld [vmem:[#allocation73_spill] sm:$0xff] }
 0x3e2   :  { %1387 = vmatpush.msra.mxu0 %v3075_v20  ;;  %1407 = vmatpush.msra.mxu1 %v3078_v44 }
 0x3e3   :  { %1348 = vmatpush.msrb.mxu2 %v2854_v43  ;;  %1368 = vmatpush.msrb.mxu3 %v2857_v25  ;;  %v4081_v43 = vld [vmem:[#allocation32_spill] sm:$0xff]  ;;  %v4082_v25 = vld [vmem:[#allocation37_spill] sm:$0xff] }
 0x3e4   :  { %1388 = vmatpush.msra.mxu0 %v3083_v40  ;;  %1408 = vmatpush.msra.mxu1 %v3086_v31 }
 0x3e5   :  { %1349 = vmatpush.msrb.mxu2 %v3089_v46  ;;  %1369 = vmatpush.msrb.mxu3 %v4009_v33  ;;  %v4086_v33 = vld [vmem:[#allocation38_spill] sm:$0xff] }
 0x3e6   :  { %1389 = vmatpush.msra.mxu0 %v4065_v36  ;;  %1409 = vmatpush.msra.mxu1 %v4066_v2 }
 0x3e7   :  { %1350 = vmatpush.msrb.mxu2 %v4067_v32  ;;  %1370 = vmatpush.msrb.mxu3 %v4068_v57  ;;  %v4107_v57 = vld [vmem:[#allocation79_spill] sm:$0xff] }
 0x3e8   :  { %1390 = vmatpush.msra.mxu0 %v4069_v23  ;;  %1410 = vmatpush.msra.mxu1 %v4070_v14 }
 0x3e9   :  { %1351 = vmatpush.msrb.mxu2 %v4071_v54  ;;  %1371 = vmatpush.msrb.mxu3 %v4072_v18  ;;  %v4108_v18 = vld [vmem:[#allocation62_spill] sm:$0xff] }
 0x3ea   :  { %1391 = vmatpush.msra.mxu0 %v4073_v58  ;;  %1411 = vmatpush.msra.mxu1 %v4074_v21 }
 0x3eb   :  { %1352 = vmatpush.msrb.mxu2 %v4075_v60  ;;  %1372 = vmatpush.msrb.mxu3 %v4076_v62  ;;  %v4109_v62 = vld [vmem:[#allocation33_spill] sm:$0xff] }
 0x3ec   :  { %1392 = vmatpush.msra.mxu0 %v4077_v41  ;;  %1412 = vmatpush.msra.mxu1 %v4078_v3 }
 0x3ed   :  { %1353 = vmatpush.msrb.mxu2 %v4079_v15  ;;  %1373 = vmatpush.msrb.mxu3 %v4080_v6  ;;  %v4110_v6 = vld [vmem:[#allocation64_spill] sm:$0xff] }
 0x3ee   :  { %1393 = vmatpush.msra.mxu0 %v4081_v43  ;;  %1413 = vmatpush.msra.mxu1 %v4082_v25 }
 0x3ef   :  { %1354 = vmatpush.msrb.mxu2 %v4083_v22  ;;  %1374 = vmatpush.msrb.mxu3 %v4084_v1  ;;  %v4111_v1 = vld [vmem:[#allocation36_spill] sm:$0xff] }
 0x3f0   :  { %1394 = vmatpush.msra.mxu0 %v4085_v45  ;;  %1414 = vmatpush.msra.mxu1 %v4086_v33 }
 0x3f1   :  { %1355 = vmatpush.msrb.mxu2 %v4087_v24  ;;  %1375 = vmatpush.msrb.mxu3 %v4088_v27  ;;  %v4112_v27 = vld [vmem:[#allocation66_spill] sm:$0xff] }
 0x3f2   :  { %1395 = vmatpush.msra.mxu0 %v4089_v7  ;;  %1415 = vmatpush.msra.mxu1 %v4090_v37 }
 0x3f3   :  { %1484 = vmatpush.msra.mxu2 %v4091_v30  ;;  %1504 = vmatpush.msra.mxu3 %v4092_v55  ;;  %v4113_v30 = vld [vmem:[#allocation39_spill] sm:$0xff]  ;;  %v4114_v55 = vld [vmem:[#allocation69_spill] sm:$0xff] }
 0x3f5   :  { %1485 = vmatpush.msra.mxu2 %v4093_v9  ;;  %1505 = vmatpush.msra.mxu3 %v4094_v10  ;;  %v4115_v9 = vld [vmem:[#allocation42_spill] sm:$0xff]  ;;  %v4116_v10 = vld [vmem:[#allocation72_spill] sm:$0xff] }
 0x3f7   :  { %1486 = vmatpush.msra.mxu2 %v4095_v49  ;;  %1506 = vmatpush.msra.mxu3 %v4096_v59  ;;  %v4117_v49 = vld [vmem:[#allocation46_spill] sm:$0xff]  ;;  %v4118_v59 = vld [vmem:[#allocation75_spill] sm:$0xff] }
 0x3f9   :  { %1487 = vmatpush.msra.mxu2 %v4097_v13  ;;  %1507 = vmatpush.msra.mxu3 %v4098_v63  ;;  %v4119_v13 = vld [vmem:[#allocation50_spill] sm:$0xff]  ;;  %v4120_v63 = vld [vmem:[#allocation77_spill] sm:$0xff] }
 0x3fb   :  { %1488 = vmatpush.msra.mxu2 %v4099_v12  ;;  %1508 = vmatpush.msra.mxu3 %v4100_v53  ;;  %v4121_v12 = vld [vmem:[#allocation54_spill] sm:$0xff] }
 0x3fc   :  { %v4122_v53 = vld [vmem:[#allocation58_spill] sm:$0xff] }
 0x3fd   :  { %1489 = vmatpush.msra.mxu2 %v4101_v50  ;;  %1509 = vmatpush.msra.mxu3 %v4102_v16  ;;  %v1111_v50 = vld [vmem:[#allocation2 + $0x78] sm:$0xff] }
 0x3ff   :  { %1490 = vmatpush.msra.mxu2 %v4103_v26  ;;  %1510 = vmatpush.msra.mxu3 %v4104_v47 }
 0x401   :  { %1491 = vmatpush.msra.mxu2 %v4105_v29  ;;  %1511 = vmatpush.msra.mxu3 %v4106_v56 }
 0x403   :  { %1492 = vmatpush.msra.mxu2 %v4107_v57  ;;  %1512 = vmatpush.msra.mxu3 %v4108_v18  ;;  %v1112_v57 = vld [vmem:[#allocation2 + $0x80] sm:$0xff] }
 0x405   :  { %1493 = vmatpush.msra.mxu2 %v4109_v62  ;;  %1513 = vmatpush.msra.mxu3 %v4110_v6 }
 0x407   :  { %1494 = vmatpush.msra.mxu2 %v4111_v1  ;;  %1514 = vmatpush.msra.mxu3 %v4112_v27 }
 0x409   :  { %1495 = vmatpush.msra.mxu2 %v4113_v30  ;;  %1515 = vmatpush.msra.mxu3 %v4114_v55 }
 0x40b   :  { %1496 = vmatpush.msra.mxu2 %v4115_v9  ;;  %1516 = vmatpush.msra.mxu3 %v4116_v10 }
 0x40d   :  { %1497 = vmatpush.msra.mxu2 %v4117_v49  ;;  %1517 = vmatpush.msra.mxu3 %v4118_v59 }
 0x40f   :  { %1498 = vmatpush.msra.mxu2 %v4119_v13  ;;  %1518 = vmatpush.msra.mxu3 %v4120_v63 }
 0x411   :  { %1499 = vmatpush.msra.mxu2 %v4121_v12  ;;  %1519 = vmatpush.msra.mxu3 %v4122_v53 }
 0x44e   :  { %v1193_v16 = vpop.f32.mrf.mxu1  ;;  %v1173_v53 = vpop.f32.mrf.mxu0 }
 0x453   :  { %v1133_v26 = vpop.f32.mrf.mxu2  ;;  %v1153_v18 = vpop.f32.mrf.mxu3 }
 0x454   :  { %v1236_v47 = vsel %vm189_vm3, %v1133_v26, %v1193_v16 }
 0x455   :  { %v1239_v29 = vadd.f32 %v1236_v47, %v1111_v50 }
 0x457   :  { %v1783_v56 = vmul.f32 -1.442695, %v1239_v29 }
 0x459   :  { %1858 = vpow2.f32 %v1783_v56 }
 0x45b   :  { %v1213_v62 = vpop.f32.mrf.mxu2  ;;  %v1233_v13 = vpop.f32.mrf.mxu3 }
 0x45c   :  { %v1237_v6 = vsel %vm189_vm3, %v1153_v18, %v1213_v62  ;;  %v1238_v26 = vsel %vm189_vm3, %v1173_v53, %v1233_v13 }
 0x45d   :  { %v1240_v1 = vadd.f32 %v1237_v6, %v1112_v57  ;;  %v1279_v62 = vadd.f32 %v4064_v34, %v1238_v26  ;;  %v1113_v6 = vld [vmem:[#allocation2 + $0x88] sm:$0xff] }
 0x45f   :  { %v1859_v27 = vpop.eup %1858  ;;  %v1784_v30 = vmul.f32 -1.442695, %v1240_v1 }
 0x460   :  { %v1247_v55 = vadd.f32 1.0, %v1859_v27 }
 0x461   :  { %1860 = vpow2.f32 %v1784_v30 }
 0x462   :  { %1862 = vrcp.f32 %v1247_v55  ;;  %v1260_v12 = vand.u32 2147483648, %v1247_v55  ;;  %v1258_v16 = vand.u32 2147483647, %v1247_v55  ;;  %vm1254_vm10 = vweird.f32 %v1247_v55 }
 0x464   :  { %v1261_v56 = vor.u32 1.1754944e-38, %v1260_v12  ;;  %vm1259_vm12 = vcmp.eq.f32.partialorder %v1258_v16, 8.507059e+37  ;;  %v1291_v16 = vpop.permute.xlu2 %1290 }
 0x465   :  { %vm1292_vm1 = vcmp.eq.s32.totalorder %v1291_v16, 1 }
 0x467   :  { %v1861_v9 = vpop.eup %1860 }
 0x468   :  { %v1863_v10 = vpop.eup %1862  ;;  %v1248_v49 = vadd.f32 1.0, %v1861_v9 }
 0x469   :  { %v1250_v59 = vmul.f32 %v1863_v10, %v1247_v55  ;;  %vm1255_vm9 = vweird.f32 %v1863_v10 }
 0x46a   :  { %1864 = vrcp.f32 %v1248_v49  ;;  %vm1256_vm11 = vmor %vm1254_vm10, %vm1255_vm9  ;;  %v1275_v9 = vand.u32 2147483648, %v1248_v49  ;;  %vm1269_vm14 = vweird.f32 %v1248_v49 }
 0x46b   :  { %v1251_v63 = vsub.f32 1.0, %v1250_v59 }
 0x46c   :  { %v1276_v55 = vor.u32 1.1754944e-38, %v1275_v9 }
 0x46d   :  { %v1252_v50 = vmul.f32 %v1863_v10, %v1251_v63  ;;  %v1273_v63 = vand.u32 2147483647, %v1248_v49 }
 0x46f   :  { %v1253_v47 = vadd.f32 %v1863_v10, %v1252_v50  ;;  %vm1274_vm0 = vcmp.eq.f32.partialorder %v1273_v63, 8.507059e+37 }
 0x470   :  { %v1865_v29 = vpop.eup %1864 }
 0x471   :  { %v1265_v57 = vmul.f32 %v1865_v29, %v1248_v49  ;;  %v1257_v18 = vsel %vm1256_vm11, %v1863_v10, %v1253_v47  ;;  %vm1270_vm13 = vweird.f32 %v1865_v29  ;;  %v1986_v49 = vld [vmem:[#allocation5 + $0x2e8] sm:$0xff] }
 0x472   :  { %v1262_v1 = vsel %vm1259_vm12, %v1261_v56, %v1257_v18  ;;  %vm1271_vm15 = vmor %vm1269_vm14, %vm1270_vm13  ;;  %v1989_v18 = vld [vmem:[#allocation5 + $0x280] sm:$0xff] }
 0x473   :  { %v1266_v27 = vsub.f32 1.0, %v1265_v57  ;;  %v1280_v30 = vmul.f32 %v1279_v62, %v1262_v1  ;;  %v1990_v62 = vld [vmem:[#allocation5 + $0x288] sm:$0xff] }
 0x475   :  { %v1267_v59 = vmul.f32 %v1865_v29, %v1266_v27  ;;  %v1281_v61 = vadd.f32 %v1280_v30, %v1113_v6  ;;  %v1997_v6 = vld [vmem:[#allocation5 + $0x1c0] sm:$0xff] }
 0x477   :  { %v1268_v13 = vadd.f32 %v1865_v29, %v1267_v59  ;;  %1866 = vtanh.f32 %v1281_v61  ;;  %v1985_v61 = vld [vmem:[#allocation5 + $0x2e0] sm:$0xff] }
 0x479   :  { %v1272_v12 = vsel %vm1271_vm15, %v1865_v29, %v1268_v13  ;;  %v1987_v29 = vld [vmem:[#allocation5 + $0x2b0] sm:$0xff] }
 0x47a   :  { %v1277_v10 = vsel %vm1274_vm0, %v1276_v55, %v1272_v12 }
 0x47b   :  { %v1283_v53 = vsub.f32 1.0, %v1277_v10  ;;  %v1285_v47 = vmul.f32 %v1277_v10, %v3326_v5 }
 0x47d   :  { %v1867_v50 = vpop.eup %1866 }
 0x47e   :  { %v1284_v26 = vmul.f32 %v1867_v50, %v1283_v53 }
 0x480   :  { %v1286_v56 = vadd.f32 %v1285_v47, %v1284_v26  ;;  %v1297_v47 = vld [vmem:[#allocation2 + $0xa0] sm:$0xff] }
 0x482   :  { %v3439_v57 = vsel %vm1292_vm1, %v1286_v56, %v3326_v5  ;;  %v1988_v5 = vld [vmem:[#allocation5 + $0x2b8] sm:$0xff] }
 0x483   :  { %1316 = vmatmul.f32.vlgmr.msrb.gmra.mxu0 %v3439_v57  ;;  %1336 = vmatmul.f32.vlgmr.msrb.gmra.mxu1 %v3439_v57 }
 0x484   :  { %1356 = vmatmul.f32.vlgmr.msrb.gmra.mxu2 %v3439_v57  ;;  %1376 = vmatmul.f32.vlgmr.msrb.gmra.mxu3 %v3439_v57 }
 0x485   :  { %1524 = vmatpush.msrb.mxu0 %v1985_v61  ;;  %1544 = vmatpush.msrb.mxu1 %v1986_v49 }
 0x486   :  { %1564 = vmatpush.msrb.mxu2 %v3017_v39  ;;  %1584 = vmatpush.msrb.mxu3 %v3020_v52  ;;  %v1991_v39 = vld [vmem:[#allocation5 + $0x250] sm:$0xff]  ;;  %v1992_v52 = vld [vmem:[#allocation5 + $0x258] sm:$0xff] }
 0x487   :  { %1525 = vmatpush.msrb.mxu0 %v1987_v29  ;;  %1545 = vmatpush.msrb.mxu1 %v1988_v5 }
 0x488   :  { %1565 = vmatpush.msrb.mxu2 %v3025_v0  ;;  %1585 = vmatpush.msrb.mxu3 %v3028_v42  ;;  %v1993_v0 = vld [vmem:[#allocation5 + $0x220] sm:$0xff]  ;;  %v1994_v42 = vld [vmem:[#allocation5 + $0x228] sm:$0xff] }
 0x489   :  { %1526 = vmatpush.msrb.mxu0 %v1989_v18  ;;  %1546 = vmatpush.msrb.mxu1 %v1990_v62 }
 0x48a   :  { %1566 = vmatpush.msrb.mxu2 %v3033_v19  ;;  %1586 = vmatpush.msrb.mxu3 %v3036_v17  ;;  %v1995_v19 = vld [vmem:[#allocation5 + $0x1f0] sm:$0xff]  ;;  %v1996_v17 = vld [vmem:[#allocation5 + $0x1f8] sm:$0xff] }
 0x48b   :  { %1396 = vmatmul.f32.vlgmr.msra.gmra.mxu0 %v3439_v57  ;;  %1416 = vmatmul.f32.vlgmr.msra.gmra.mxu1 %v3439_v57 }
 0x48c   :  { %1527 = vmatpush.msrb.mxu0 %v1991_v39  ;;  %1547 = vmatpush.msrb.mxu1 %v1992_v52 }
 0x48d   :  { %1567 = vmatpush.msrb.mxu2 %v3043_v35  ;;  %1587 = vmatpush.msrb.mxu3 %v3046_v48  ;;  %v1998_v35 = vld [vmem:[#allocation5 + $0x1c8] sm:$0xff]  ;;  %v1999_v48 = vld [vmem:[#allocation5 + $0x190] sm:$0xff] }
 0x48e   :  { %1528 = vmatpush.msrb.mxu0 %v1993_v0  ;;  %1548 = vmatpush.msrb.mxu1 %v1994_v42  ;;  %v1475_v42 = vpop.permute.xlu0 %1474 }
 0x48f   :  { %1568 = vmatpush.msrb.mxu2 %v3051_v51  ;;  %1588 = vmatpush.msrb.mxu3 %v3054_v8  ;;  %v2000_v51 = vld [vmem:[#allocation5 + $0x198] sm:$0xff]  ;;  %v2001_v8 = vld [vmem:[#allocation5 + $0x160] sm:$0xff]  ;;  %vm1476_vm11 = vcmp.eq.s32.totalorder %v1475_v42, 1 }
 0x490   :  { %1529 = vmatpush.msrb.mxu0 %v1995_v19  ;;  %1549 = vmatpush.msrb.mxu1 %v1996_v17 }
 0x491   :  { %1569 = vmatpush.msrb.mxu2 %v3059_v11  ;;  %1589 = vmatpush.msrb.mxu3 %v3062_v4  ;;  %v2002_v11 = vld [vmem:[#allocation5 + $0x168] sm:$0xff]  ;;  %v2003_v4 = vld [vmem:[#allocation5 + $0x138] sm:$0xff] }
 0x492   :  { %1530 = vmatpush.msrb.mxu0 %v1997_v6  ;;  %1550 = vmatpush.msrb.mxu1 %v1998_v35  ;;  %v1693_v35 = vld [vmem:[#allocation7 + $0x78] sm:$0xff] }
 0x493   :  { %1570 = vmatpush.msrb.mxu2 %v3067_v28  ;;  %1590 = vmatpush.msrb.mxu3 %v3070_v38  ;;  %v2004_v28 = vld [vmem:[#allocation5 + $0x108] sm:$0xff]  ;;  %v2005_v38 = vld [vmem:[#allocation5 + $0xd8] sm:$0xff] }
 0x494   :  { %1531 = vmatpush.msrb.mxu0 %v1999_v48  ;;  %1551 = vmatpush.msrb.mxu1 %v2000_v51  ;;  %v1692_v48 = vld [vmem:[#allocation7 + $0x70] sm:$0xff]  ;;  %v1677_v51 = vld [vmem:[#allocation8 + $0x78] sm:$0xff] }
 0x495   :  { %1571 = vmatpush.msrb.mxu2 %v3075_v20  ;;  %1591 = vmatpush.msrb.mxu3 %v3078_v44  ;;  %v2006_v20 = vld [vmem:[#allocation5 + $0xa8] sm:$0xff]  ;;  %v2007_v44 = vld [vmem:[#allocation5 + $0x78] sm:$0xff] }
 0x496   :  { %1532 = vmatpush.msrb.mxu0 %v2001_v8  ;;  %1552 = vmatpush.msrb.mxu1 %v2002_v11  ;;  %v1676_v8 = vld [vmem:[#allocation8 + $0x70] sm:$0xff]  ;;  %v1690_v11 = vld [vmem:[#allocation7 + $0x60] sm:$0xff] }
 0x497   :  { %1572 = vmatpush.msrb.mxu2 %v3083_v40  ;;  %1592 = vmatpush.msrb.mxu3 %v3086_v31  ;;  %v2008_v40 = vld [vmem:[#allocation5 + $0x48] sm:$0xff]  ;;  %v2009_v31 = vld [vmem:[#allocation5 + $0x18] sm:$0xff] }
 0x498   :  { %1533 = vmatpush.msrb.mxu0 %v3089_v46  ;;  %1553 = vmatpush.msrb.mxu1 %v2003_v4  ;;  %v1675_v4 = vld [vmem:[#allocation8 + $0x68] sm:$0xff] }
 0x499   :  { %1573 = vmatpush.msrb.mxu2 %v4065_v36  ;;  %1593 = vmatpush.msrb.mxu3 %v4066_v2  ;;  %v1295_v36 = vld [vmem:[#allocation2 + $0x90] sm:$0xff] }
 0x49a   :  { %1534 = vmatpush.msrb.mxu0 %v4067_v32  ;;  %1554 = vmatpush.msrb.mxu1 %v2004_v28  ;;  %v1296_v32 = vld [vmem:[#allocation2 + $0x98] sm:$0xff] }
 0x49b   :  { %1574 = vmatpush.msrb.mxu2 %v4069_v23  ;;  %1594 = vmatpush.msrb.mxu3 %v4070_v14  ;;  %v1689_v28 = vld [vmem:[#allocation7 + $0x58] sm:$0xff] }
 0x49c   :  { %1535 = vmatpush.msrb.mxu0 %v4071_v54  ;;  %1555 = vmatpush.msrb.mxu1 %v2005_v38  ;;  %v1674_v38 = vld [vmem:[#allocation8 + $0x60] sm:$0xff] }
 0x49d   :  { %1575 = vmatpush.msrb.mxu2 %v4073_v58  ;;  %1595 = vmatpush.msrb.mxu3 %v4074_v21 }
 0x49e   :  { %1536 = vmatpush.msrb.mxu0 %v4075_v60  ;;  %1556 = vmatpush.msrb.mxu1 %v2006_v20  ;;  %v1688_v20 = vld [vmem:[#allocation7 + $0x50] sm:$0xff] }
 0x49f   :  { %1576 = vmatpush.msrb.mxu2 %v4077_v41  ;;  %1596 = vmatpush.msrb.mxu3 %v4078_v3 }
 0x4a0   :  { %1537 = vmatpush.msrb.mxu0 %v4079_v15  ;;  %1557 = vmatpush.msrb.mxu1 %v2007_v44  ;;  %v1673_v44 = vld [vmem:[#allocation8 + $0x58] sm:$0xff] }
 0x4a1   :  { %1577 = vmatpush.msrb.mxu2 %v4081_v43  ;;  %1597 = vmatpush.msrb.mxu3 %v4082_v25 }
 0x4a2   :  { %1538 = vmatpush.msrb.mxu0 %v4083_v22  ;;  %1558 = vmatpush.msrb.mxu1 %v2008_v40  ;;  %v1687_v40 = vld [vmem:[#allocation7 + $0x48] sm:$0xff] }
 0x4a3   :  { %1578 = vmatpush.msrb.mxu2 %v4085_v45  ;;  %1598 = vmatpush.msrb.mxu3 %v4086_v33 }
 0x4a4   :  { %1539 = vmatpush.msrb.mxu0 %v4087_v24  ;;  %1559 = vmatpush.msrb.mxu1 %v2009_v31  ;;  %v1672_v31 = vld [vmem:[#allocation8 + $0x50] sm:$0xff] }
 0x4a5   :  { %1579 = vmatpush.msrb.mxu2 %v4089_v7  ;;  %1599 = vmatpush.msrb.mxu3 %v4090_v37 }
 0x4a6   :  { %1694 = vmatpush.msra.mxu0 %v1693_v35  ;;  %1717 = vmatpush.msra.mxu1 %v1677_v51  ;;  %v2010_v35 = vld [vmem:[%s3522_s2] sm:$0xff]  ;;  %v1481_v51 = vld [vmem:[#allocation2 + $0xb8] sm:$0xff] }
 0x4a8   :  { %1695 = vmatpush.msra.mxu0 %v1692_v48  ;;  %1718 = vmatpush.msra.mxu1 %v1676_v8 }
 0x4aa   :  { %1719 = vmatpush.msra.mxu1 %v1675_v4 }
 0x4ac   :  { %1720 = vmatpush.msra.mxu1 %v1674_v38 }
 0x4ae   :  { %1721 = vmatpush.msra.mxu1 %v1673_v44 }
 0x4b0   :  { %1722 = vmatpush.msra.mxu1 %v1672_v31 }
 0x500   :  { %v1317_v46 = vpop.f32.mrf.mxu0  ;;  %v1337_v23 = vpop.f32.mrf.mxu1 }
 0x507   :  { %v1377_v2 = vpop.f32.mrf.mxu3  ;;  %v1357_v59 = vpop.f32.mrf.mxu2 }
 0x508   :  { %v1420_v54 = vsel %vm189_vm3, %v1317_v46, %v1377_v2  ;;  %v1397_v58 = vpop.f32.mrf.mxu0  ;;  %v1417_v1 = vpop.f32.mrf.mxu1  ;;  %v1479_v46 = vld [vmem:[#allocation2 + $0xa8] sm:$0xff] }
 0x509   :  { %v1423_v21 = vadd.f32 %v1420_v54, %v1295_v36  ;;  %v1421_v60 = vsel %vm189_vm3, %v1337_v23, %v1397_v58  ;;  %v1422_v12 = vsel %vm189_vm3, %v1357_v59, %v1417_v1  ;;  %v1686_v36 = vld [vmem:[#allocation7 + $0x40] sm:$0xff]  ;;  %v1671_v2 = vld [vmem:[#allocation8 + $0x48] sm:$0xff]  ;;  %v1685_v58 = vld [vmem:[#allocation7 + $0x38] sm:$0xff] }
 0x50a   :  { %v1424_v41 = vadd.f32 %v1421_v60, %v1296_v32  ;;  %v1463_v16 = vadd.f32 %v4064_v34, %v1422_v12  ;;  %1723 = vmatpush.msra.mxu1 %v1671_v2  ;;  %v1659_v2 = vpop.permute.xlu1 %1658 }
 0x50b   :  { %v1786_v3 = vmul.f32 -1.442695, %v1423_v21  ;;  %v1670_v21 = vld [vmem:[#allocation8 + $0x40] sm:$0xff] }
 0x50c   :  { %v1787_v15 = vmul.f32 -1.442695, %v1424_v41  ;;  %1724 = vmatpush.msra.mxu1 %v1670_v21  ;;  %v1684_v41 = vld [vmem:[#allocation7 + $0x30] sm:$0xff] }
 0x50d   :  { %1868 = vpow2.f32 %v1786_v3  ;;  %v1669_v3 = vld [vmem:[#allocation8 + $0x38] sm:$0xff] }
 0x50e   :  { %1870 = vpow2.f32 %v1787_v15  ;;  %1725 = vmatpush.msra.mxu1 %v1669_v3 }
 0x513   :  { %v1869_v43 = vpop.eup %1868 }
 0x514   :  { %v1871_v25 = vpop.eup %1870  ;;  %v1431_v22 = vadd.f32 1.0, %v1869_v43  ;;  %v1683_v43 = vld [vmem:[#allocation7 + $0x28] sm:$0xff] }
 0x515   :  { %v1432_v45 = vadd.f32 1.0, %v1871_v25  ;;  %v1668_v25 = vld [vmem:[#allocation8 + $0x30] sm:$0xff] }
 0x516   :  { %1872 = vrcp.f32 %v1431_v22  ;;  %v1444_v9 = vand.u32 2147483648, %v1431_v22  ;;  %v1442_v13 = vand.u32 2147483647, %v1431_v22  ;;  %vm1438_vm4 = vweird.f32 %v1431_v22  ;;  %1726 = vmatpush.msra.mxu1 %v1668_v25 }
 0x517   :  { %1874 = vrcp.f32 %v1432_v45  ;;  %v1459_v61 = vand.u32 2147483648, %v1432_v45  ;;  %vm1453_vm8 = vweird.f32 %v1432_v45  ;;  %v1457_v29 = vand.u32 2147483647, %v1432_v45 }
 0x518   :  { %v1445_v53 = vor.u32 1.1754944e-38, %v1444_v9  ;;  %vm1443_vm6 = vcmp.eq.f32.partialorder %v1442_v13, 8.507059e+37  ;;  %v1665_v9 = vld [vmem:[#allocation8 + $0x18] sm:$0xff]  ;;  %v1664_v13 = vld [vmem:[#allocation8 + $0x10] sm:$0xff] }
 0x519   :  { %v1460_v62 = vor.u32 1.1754944e-38, %v1459_v61  ;;  %vm1458_vm10 = vcmp.eq.f32.partialorder %v1457_v29, 8.507059e+37 }
 0x51c   :  { %v1873_v33 = vpop.eup %1872 }
 0x51d   :  { %v1875_v24 = vpop.eup %1874  ;;  %v1434_v7 = vmul.f32 %v1873_v33, %v1431_v22  ;;  %vm1439_vm2 = vweird.f32 %v1873_v33  ;;  %v1682_v22 = vld [vmem:[#allocation7 + $0x20] sm:$0xff] }
 0x51e   :  { %v1449_v37 = vmul.f32 %v1875_v24, %v1432_v45  ;;  %vm1440_vm5 = vmor %vm1438_vm4, %vm1439_vm2  ;;  %vm1454_vm7 = vweird.f32 %v1875_v24  ;;  %v1667_v45 = vld [vmem:[#allocation8 + $0x28] sm:$0xff]  ;;  %vm1660_vm4 = vcmp.eq.s32.totalorder %v1659_v2, 1 }
 0x51f   :  { %v1435_v27 = vsub.f32 1.0, %v1434_v7  ;;  %vm1455_vm9 = vmor %vm1453_vm8, %vm1454_vm7  ;;  %v1666_v7 = vld [vmem:[#allocation8 + $0x20] sm:$0xff]  ;;  %1727 = vmatpush.msra.mxu1 %v1667_v45 }
 0x520   :  { %v1450_v30 = vsub.f32 1.0, %v1449_v37 }
 0x521   :  { %v1436_v63 = vmul.f32 %v1873_v33, %v1435_v27  ;;  %1728 = vmatpush.msra.mxu1 %v1666_v7 }
 0x522   :  { %v1451_v55 = vmul.f32 %v1875_v24, %v1450_v30  ;;  %v1680_v30 = vld [vmem:[#allocation7 + $0x10] sm:$0xff] }
 0x523   :  { %v1437_v10 = vadd.f32 %v1873_v33, %v1436_v63  ;;  %v1679_v63 = vld [vmem:[#allocation7 + $0x8] sm:$0xff]  ;;  %1729 = vmatpush.msra.mxu1 %v1665_v9 }
 0x524   :  { %v1452_v26 = vadd.f32 %v1875_v24, %v1451_v55 }
 0x525   :  { %v1441_v50 = vsel %vm1440_vm5, %v1873_v33, %v1437_v10  ;;  %v1480_v33 = vld [vmem:[#allocation2 + $0xb0] sm:$0xff]  ;;  %1730 = vmatpush.msra.mxu1 %v1664_v13 }
 0x526   :  { %v1446_v56 = vsel %vm1443_vm6, %v1445_v53, %v1441_v50  ;;  %v1456_v18 = vsel %vm1455_vm9, %v1875_v24, %v1452_v26  ;;  %v1681_v24 = vld [vmem:[#allocation7 + $0x18] sm:$0xff]  ;;  %v1678_v53 = vld [vmem:[#allocation7] sm:$0xff]  ;;  %v1663_v50 = vld [vmem:[#allocation8 + $0x8] sm:$0xff] }
 0x527   :  { %v1464_v49 = vmul.f32 %v1463_v16, %v1446_v56  ;;  %v1461_v39 = vsel %vm1458_vm10, %v1460_v62, %v1456_v18  ;;  %1731 = vmatpush.msra.mxu1 %v1663_v50  ;;  %v1662_v16 = vld [vmem:[#allocation8] sm:$0xff] }
 0x528   :  { %v1467_v52 = vsub.f32 1.0, %v1461_v39  ;;  %v1469_v34 = vmul.f32 %v1461_v39, %v3439_v57 }
 0x529   :  { %v1465_v5 = vadd.f32 %v1464_v49, %v1297_v47  ;;  %1732 = vmatpush.msra.mxu1 %v1662_v16 }
 0x52b   :  { %1876 = vtanh.f32 %v1465_v5 }
 0x531   :  { %v1877_v0 = vpop.eup %1876 }
 0x532   :  { %v1468_v19 = vmul.f32 %v1877_v0, %v1467_v52 }
 0x534   :  { %v1470_v17 = vadd.f32 %v1469_v34, %v1468_v19 }
 0x536   :  { %v3495_v6 = vsel %vm1476_vm11, %v1470_v17, %v3439_v57  ;;  %v1691_v57 = vld [vmem:[#allocation7 + $0x68] sm:$0xff] }
 0x537   :  { %1500 = vmatmul.f32.vlgmr.msra.gmra.mxu2 %v3495_v6  ;;  %1520 = vmatmul.f32.vlgmr.msra.gmra.mxu3 %v3495_v6 }
 0x538   :  { %1540 = vmatmul.f32.vlgmr.msrb.gmra.mxu0 %v3495_v6  ;;  %1560 = vmatmul.f32.vlgmr.msrb.gmra.mxu1 %v3495_v6 }
 0x539   :  { %1696 = vmatpush.msra.mxu0 %v1691_v57 }
 0x53b   :  { %1697 = vmatpush.msra.mxu0 %v1690_v11 }
 0x53d   :  { %1698 = vmatpush.msra.mxu0 %v1689_v28 }
 0x53f   :  { %1580 = vmatmul.f32.vlgmr.msrb.gmra.mxu2 %v3495_v6  ;;  %1600 = vmatmul.f32.vlgmr.msrb.gmra.mxu3 %v3495_v6 }
 0x540   :  { %1699 = vmatpush.msra.mxu0 %v1688_v20 }
 0x542   :  { %1700 = vmatpush.msra.mxu0 %v1687_v40 }
 0x544   :  { %1701 = vmatpush.msra.mxu0 %v1686_v36 }
 0x546   :  { %1702 = vmatpush.msra.mxu0 %v1685_v58 }
 0x548   :  { %1703 = vmatpush.msra.mxu0 %v1684_v41 }
 0x54a   :  { %1704 = vmatpush.msra.mxu0 %v1683_v43 }
 0x54c   :  { %1705 = vmatpush.msra.mxu0 %v1682_v22 }
 0x54e   :  { %1706 = vmatpush.msra.mxu0 %v1681_v24 }
 0x550   :  { %1707 = vmatpush.msra.mxu0 %v1680_v30 }
 0x552   :  { %1708 = vmatpush.msra.mxu0 %v1679_v63 }
 0x554   :  { %1709 = vmatpush.msra.mxu0 %v1678_v53 }
 0x5b5   :  { %v1561_v32 = vpop.f32.mrf.mxu1  ;;  %v1541_v18 = vpop.f32.mrf.mxu0 }
 0x5ba   :  { %v1501_v23 = vpop.f32.mrf.mxu2  ;;  %v1521_v37 = vpop.f32.mrf.mxu3 }
 0x5bb   :  { %v1604_v54 = vsel %vm189_vm3, %v1501_v23, %v1561_v32 }
 0x5bc   :  { %v1607_v60 = vadd.f32 %v1604_v54, %v1479_v46 }
 0x5be   :  { %v1789_v15 = vmul.f32 -1.442695, %v1607_v60  ;;  %v1807_v60 = vld [vmem:[%s3526_s6] ss:$0 sm:$0xff] }
 0x5c0   :  { %1878 = vpow2.f32 %v1789_v15 }
 0x5c2   :  { %v1581_v1 = vpop.f32.mrf.mxu2  ;;  %v1601_v49 = vpop.f32.mrf.mxu3 }
 0x5c3   :  { %v1605_v27 = vsel %vm189_vm3, %v1521_v37, %v1581_v1  ;;  %v1606_v52 = vsel %vm189_vm3, %v1541_v18, %v1601_v49 }
 0x5c4   :  { %v1608_v59 = vadd.f32 %v1605_v27, %v1480_v33  ;;  %v1647_v48 = vadd.f32 %v2010_v35, %v1606_v52 }
 0x5c6   :  { %v1879_v55 = vpop.eup %1878  ;;  %v1790_v12 = vmul.f32 -1.442695, %v1608_v59 }
 0x5c7   :  { %v1615_v10 = vadd.f32 1.0, %v1879_v55 }
 0x5c8   :  { %1880 = vpow2.f32 %v1790_v12 }
 0x5c9   :  { %1882 = vrcp.f32 %v1615_v10  ;;  %v1628_v5 = vand.u32 2147483648, %v1615_v10  ;;  %v1626_v39 = vand.u32 2147483647, %v1615_v10  ;;  %vm1622_vm13 = vweird.f32 %v1615_v10 }
 0x5cb   :  { %v1629_v19 = vor.u32 1.1754944e-38, %v1628_v5  ;;  %vm1627_vm15 = vcmp.eq.f32.partialorder %v1626_v39, 8.507059e+37 }
 0x5ce   :  { %v1881_v26 = vpop.eup %1880 }
 0x5cf   :  { %v1883_v47 = vpop.eup %1882  ;;  %v1616_v56 = vadd.f32 1.0, %v1881_v26 }
 0x5d0   :  { %v1618_v61 = vmul.f32 %v1883_v47, %v1615_v10  ;;  %vm1623_vm12 = vweird.f32 %v1883_v47 }
 0x5d1   :  { %1884 = vrcp.f32 %v1616_v56  ;;  %vm1624_vm14 = vmor %vm1622_vm13, %vm1623_vm12  ;;  %v1643_v4 = vand.u32 2147483648, %v1616_v56  ;;  %v1641_v38 = vand.u32 2147483647, %v1616_v56  ;;  %vm1637_vm0 = vweird.f32 %v1616_v56 }
 0x5d2   :  { %v1619_v29 = vsub.f32 1.0, %v1618_v61 }
 0x5d3   :  { %v1644_v44 = vor.u32 1.1754944e-38, %v1643_v4  ;;  %vm1642_vm2 = vcmp.eq.f32.partialorder %v1641_v38, 8.507059e+37 }
 0x5d4   :  { %v1620_v62 = vmul.f32 %v1883_v47, %v1619_v29 }
 0x5d6   :  { %v1621_v0 = vadd.f32 %v1883_v47, %v1620_v62 }
 0x5d7   :  { %v1885_v42 = vpop.eup %1884 }
 0x5d8   :  { %v1633_v34 = vmul.f32 %v1885_v42, %v1616_v56  ;;  %v1625_v17 = vsel %vm1624_vm14, %v1883_v47, %v1621_v0  ;;  %vm1638_vm3 = vweird.f32 %v1885_v42 }
 0x5d9   :  { %v1630_v57 = vsel %vm1627_vm15, %v1629_v19, %v1625_v17  ;;  %vm1639_vm1 = vmor %vm1637_vm0, %vm1638_vm3 }
 0x5da   :  { %v1634_v8 = vsub.f32 1.0, %v1633_v34  ;;  %v1648_v11 = vmul.f32 %v1647_v48, %v1630_v57 }
 0x5dc   :  { %v1649_v14 = vadd.f32 %v1648_v11, %v1481_v51  ;;  %v1635_v28 = vmul.f32 %v1885_v42, %v1634_v8 }
 0x5de   :  { %1886 = vtanh.f32 %v1649_v14  ;;  %v1636_v20 = vadd.f32 %v1885_v42, %v1635_v28 }
 0x5e0   :  { %v1640_v40 = vsel %vm1639_vm1, %v1885_v42, %v1636_v20 }
 0x5e1   :  { %v1645_v31 = vsel %vm1642_vm2, %v1644_v44, %v1640_v40 }
 0x5e2   :  { %v1651_v46 = vsub.f32 1.0, %v1645_v31  ;;  %v1653_v23 = vmul.f32 %v1645_v31, %v3495_v6 }
 0x5e4   :  { %v1887_v36 = vpop.eup %1886 }
 0x5e5   :  { %v1652_v32 = vmul.f32 %v1887_v36, %v1651_v46 }
 0x5e7   :  { %v1654_v54 = vadd.f32 %v1653_v23, %v1652_v32 }
 0x5e9   :  { %v1661_v58 = vsel %vm1660_vm4, %v1654_v54, %v3495_v6 }
 0x5ea   :  { %1710 = vmatmul.f32.vlgmr.msra.gmra.mxu0 %v1661_v58  ;;  %v1715_v21 = vrot.slane %v1661_v58, 4 }
 0x5ec   :  { %1733 = vmatmul.f32.vlgmr.msra.gmra.mxu1 %v1715_v21 }
 0x667   :  { %v1711_v41 = vpop.f32.mrf.mxu0 }
 0x669   :  { %v1734_v3 = vpop.f32.mrf.mxu1 }
 0x66a   :  { %v1735_v15 = vadd.f32 %v1734_v3, %v1711_v41 }
 0x66c   :  { %v1741_v43 = vadd.f32 %v1807_v60, %v1735_v15 }
 0x66e   :  { %1742 = vst [vmem:[#allocation10] sm:$0xf] %v1741_v43 }
 0x66f   :  { %1753 = dma.vmem_to_hbm [thread:$0]  %s1749_s21, 64, %s1751_s24, [#allocation4]  }
 0x670   :  { %2137 = dma.done.wait [#allocation4], 64  }
 0x671   :  { %2138 = vsyncadd [#allocation4], 4294967232 }
 0x672   :  { %1758 = vsyncpa [#allocation3], 1 }
 0x673   :  { %1759 = vsyncpa [#allocation6], 1 }
 0x674   :  { %1760 = vsyncpa [#allocation9], 1 }
 0x675   :  { %1761 = vsyncpa [#allocation4], 1 }

</bundles_post_ra>
